<compile_context>
chip_gen: v5e
topology: v5e:2x2
jax: 0.10.0
libtpu: 0.0.40
codegen_flags: <defaults>
</compile_context>

<pallas_src>
import jax
import jax.numpy as jnp
import numpy as np
from jax.experimental import pallas as pl
from jax.experimental.pallas import tpu as pltpu

LANE = 128
KH = 5                 # conv kernel size
OC1, OC2 = 16, 32      # conv output channels
NX1 = 14               # pooled output-x positions after conv1 (28 / 2)
NX2 = 5                # pooled output-x positions after conv2 (10 / 2)
L1 = NX1 * OC1         # 224 lanes of stage-1 activations (x2 * 16 + c)
L2 = NX2 * OC2         # 160 lanes of stage-2 activations (xp * 32 + c)


# ------------------------------ fused kernel --------------------------------

def _lenet_kernel(x_ref, t1_ref, b1_ref, t2_ref, b2_ref,
                  f1_ref, bf1_ref, f2_ref, bf2_ref, f3_ref, bf3_ref, o_ref):
    bs = x_ref.shape[0]
    f32, bf16 = jnp.float32, jnp.bfloat16

    def _pool(row_a, row_b, lanes, bias):
        # 2x2 max-pool: two pool-window row groups x two x-parity column halves,
        # then bias + ReLU (commutation with maxpool is exact).
        m = jnp.maximum(jnp.maximum(row_a[:, :lanes], row_a[:, lanes:]),
                        jnp.maximum(row_b[:, :lanes], row_b[:, lanes:]))
        return jnp.maximum(m + bias, 0.0)

    # -------- stage 1: conv1(5x5) + bias + ReLU + maxpool(2x2) --------------
    # Input rows are pre-grouped by (y % 4): xp row (y%4)*8 + y//4 holds image
    # row y, lanes are x*4 + c.  For kernel-row offset i and pool corner
    # (g = pooled-row parity, dy = row inside the window) the image rows needed
    # are {4m + r : m = 0..6} with r = 2g + dy + i -> one contiguous 7-row slice.
    acc1 = None
    for i in range(KH):
        pieces = []
        for g in (0, 1):              # parity of the pooled output row y2
            for dy in (0, 1):         # row inside the 2x2 pool window
                r = 2 * g + dy + i
                base = (r % 4) * 8 + r // 4
                for s in range(bs):
                    pieces.append(x_ref[s, base:base + 7, :])
        lhs = jnp.concatenate(pieces, axis=0).astype(bf16)           # (4*bs*7, 128)
        part = jnp.dot(lhs, t1_ref[i], preferred_element_type=f32)   # (4*bs*7, 448)
        acc1 = part if acc1 is None else acc1 + part

    n7 = bs * 7
    b1 = b1_ref[...]
    p1_ev = _pool(acc1[0 * n7:1 * n7], acc1[1 * n7:2 * n7], L1, b1)  # y2 even
    p1_od = _pool(acc1[2 * n7:3 * n7], acc1[3 * n7:4 * n7], L1, b1)  # y2 odd
    # p1_*[s*7 + m, x2*16 + c] = pooled conv1 activation at (y2 = 2m(+1), x2, c)

    # -------- stage 2: conv2(5x5) + bias + ReLU + maxpool(2x2) --------------
    acc2 = None
    for i in range(KH):
        pieces = []
        for dy in (0, 1):
            r = dy + i
            src = p1_ev if r % 2 == 0 else p1_od
            a0 = r // 2
            for s in range(bs):
                pieces.append(src[s * 7 + a0:s * 7 + a0 + 5, :])
        lhs = jnp.concatenate(pieces, axis=0).astype(bf16)           # (2*bs*5, 224)
        part = jnp.dot(lhs, t2_ref[i], preferred_element_type=f32)   # (2*bs*5, 320)
        acc2 = part if acc2 is None else acc2 + part

    n5 = bs * 5
    p2 = _pool(acc2[:n5], acc2[n5:], L2, b2_ref[...])                # (bs*5, 160)
    # p2[s*5 + yp, xp*32 + c] == torch conv2/pool2 output [s, c, yp, xp]

    # -------- stage 3: fc1 -> fc2 -> fc3 (compact K = 5*160 = 800) ----------
    h = None
    for y in range(NX2):
        rows = [p2[s * 5 + y:s * 5 + y + 1, :] for s in range(bs)]
        lhs = (jnp.concatenate(rows, axis=0) if bs > 1 else rows[0]).astype(bf16)
        part = jnp.dot(lhs, f1_ref[y], preferred_element_type=f32)   # (bs, 128)
        h = part if h is None else h + part
    h = jnp.maximum(h + bf1_ref[...], 0.0).astype(bf16)
    h = jnp.maximum(jnp.dot(h, f2_ref[...], preferred_element_type=f32)
                    + bf2_ref[...], 0.0).astype(bf16)
    out = jnp.dot(h, f3_ref[...], preferred_element_type=f32) + bf3_ref[...]
    o_ref[...] = out.astype(o_ref.dtype)


# ------------------------------ parameters ----------------------------------

def init_params(key):
    """PyTorch-layout params, U(-1/sqrt(fan_in), 1/sqrt(fan_in))."""
    def u(k, shape, fan_in):
        bound = 1.0 / float(fan_in) ** 0.5
        return jax.random.uniform(k, shape, jnp.float32, -bound, bound)

    ks = jax.random.split(key, 10)
    return {
        "conv1_w": u(ks[0], (16, 3, 5, 5), 3 * 25),
        "conv1_b": u(ks[1], (16,), 3 * 25),
        "conv2_w": u(ks[2], (32, 16, 5, 5), 16 * 25),
        "conv2_b": u(ks[3], (32,), 16 * 25),
        "fc1_w": u(ks[4], (120, 32 * 5 * 5), 32 * 5 * 5),
        "fc1_b": u(ks[5], (120,), 32 * 5 * 5),
        "fc2_w": u(ks[6], (84, 120), 120),
        "fc2_b": u(ks[7], (84,), 120),
        "fc3_w": u(ks[8], (10, 84), 84),
        "fc3_b": u(ks[9], (10,), 84),
    }


def _conv_toeplitz(w, w_in, cp):
    """Expand a torch-layout conv weight (OC, C, 5, 5) into 5 banded
    block-Toeplitz matrices keeping the output-x position in the lane dim and
    split by x-parity (for the fused 2x2 max-pool):

      t[i, x_in*cp + c, p*n_x2*OC + x2*OC + oc] = w[oc, c, i, x_in - (2*x2 + p)]
    """
    w = np.asarray(w, np.float32)
    oc_n, c_n, kh, kw = w.shape
    n_x2 = (w_in - kw + 1) // 2
    t = np.zeros((kh, w_in * cp, 2 * n_x2 * oc_n), np.float32)
    for i in range(kh):
        for p in range(2):
            for x2 in range(n_x2):
                for j in range(kw):
                    x_in = 2 * x2 + p + j
                    if x_in >= w_in:
                        continue
                    col = p * n_x2 * oc_n + x2 * oc_n
                    t[i, x_in * cp:x_in * cp + c_n, col:col + oc_n] = w[:, :, i, j].T
    return t


def prepare_params(p):
    """One-time weight re-layout (host-side numpy; off the hot path)."""
    out = {}
    out["t1"] = jnp.asarray(_conv_toeplitz(p["conv1_w"], 32, 4), jnp.bfloat16)
    out["b1"] = jnp.asarray(
        np.tile(np.asarray(p["conv1_b"], np.float32), NX1).reshape(1, L1))
    out["t2"] = jnp.asarray(_conv_toeplitz(p["conv2_w"], 14, OC1), jnp.bfloat16)
    out["b2"] = jnp.asarray(
        np.tile(np.asarray(p["conv2_b"], np.float32), NX2).reshape(1, L2))

    # fc1: torch flattens conv2 output as (c, y, x); the kernel's stage-2 rows
    # are y and lanes are x*32 + c, so permute to (y, x, c, o).  K stays the
    # compact 800 (5 dots of K=160), no padded 3200 slab.
    f1 = np.asarray(p["fc1_w"], np.float32).reshape(120, OC2, 5, 5)   # (o, c, y, x)
    f1 = f1.transpose(2, 3, 1, 0).reshape(NX2, NX2 * OC2, 120)        # (y, x*32+c, o)
    out["f1"] = jnp.asarray(np.pad(f1, ((0, 0), (0, 0), (0, LANE - 120))),
                            jnp.bfloat16)
    out["bf1"] = jnp.asarray(
        np.pad(np.asarray(p["fc1_b"], np.float32), (0, LANE - 120)).reshape(1, LANE))
    out["f2"] = jnp.asarray(
        np.pad(np.asarray(p["fc2_w"], np.float32).T,
               ((0, LANE - 120), (0, LANE - 84))), jnp.bfloat16)
    out["bf2"] = jnp.asarray(
        np.pad(np.asarray(p["fc2_b"], np.float32), (0, LANE - 84)).reshape(1, LANE))
    out["f3"] = jnp.asarray(
        np.pad(np.asarray(p["fc3_w"], np.float32).T,
               ((0, LANE - 84), (0, LANE - 10))), jnp.bfloat16)
    out["bf3"] = jnp.asarray(
        np.pad(np.asarray(p["fc3_b"], np.float32), (0, LANE - 10)).reshape(1, LANE))
    return out


# ------------------------------ forward pass ---------------------------------

def lenet_forward(prepped, x):
    """x: (N, 3, 32, 32) NCHW float32 -> logits (N, 10)."""
    n = x.shape[0]
    bs = n if n <= 8 else 8                      # samples per grid step
    n_pad = -(-n // bs) * bs
    if n_pad != n:
        x = jnp.pad(x, ((0, n_pad - n), (0, 0), (0, 0), (0, 0)))

    # Tiny one-copy layout prep (~24 KB): NCHW -> rows grouped by (y % 4) so the
    # kernel's pool-corner row slices are contiguous; lanes are x*4 + c.
    xp = jnp.pad(x.transpose(0, 2, 3, 1), ((0, 0), (0, 0), (0, 0), (0, 1)))
    xp = xp.reshape(n_pad, 8, 4, LANE).transpose(0, 2, 1, 3).reshape(n_pad, 32, LANE)

    out = pl.pallas_call(
        _lenet_kernel,
        out_shape=jax.ShapeDtypeStruct((n_pad, LANE), jnp.float32),
        grid_spec=pltpu.PrefetchScalarGridSpec(
            num_scalar_prefetch=0,
            grid=(n_pad // bs,),
            in_specs=[
                pl.BlockSpec((bs, 32, LANE), lambda b: (b, 0, 0)),
                pl.BlockSpec((KH, LANE, 2 * L1), lambda b: (0, 0, 0)),
                pl.BlockSpec((1, L1), lambda b: (0, 0)),
                pl.BlockSpec((KH, L1, 2 * L2), lambda b: (0, 0, 0)),
                pl.BlockSpec((1, L2), lambda b: (0, 0)),
                pl.BlockSpec((NX2, L2, LANE), lambda b: (0, 0, 0)),
                pl.BlockSpec((1, LANE), lambda b: (0, 0)),
                pl.BlockSpec((LANE, LANE), lambda b: (0, 0)),
                pl.BlockSpec((1, LANE), lambda b: (0, 0)),
                pl.BlockSpec((LANE, LANE), lambda b: (0, 0)),
                pl.BlockSpec((1, LANE), lambda b: (0, 0)),
            ],
            out_specs=pl.BlockSpec((bs, LANE), lambda b: (b, 0)),
        ),
        compiler_params=pltpu.CompilerParams(
            dimension_semantics=("parallel",)),
    )(xp, prepped["t1"], prepped["b1"], prepped["t2"], prepped["b2"],
      prepped["f1"], prepped["bf1"], prepped["f2"], prepped["bf2"],
      prepped["f3"], prepped["bf3"])
    return out[:n, :10]


# ------------------------------ pure-JAX reference ---------------------------

def lenet_reference(params, x):
    def conv(x, w, b):
        y = jax.lax.conv_general_dilated(
            x, w, window_strides=(1, 1), padding="VALID",
            dimension_numbers=("NCHW", "OIHW", "NCHW"))
        return jnp.maximum(y + b[None, :, None, None], 0.0)

    def pool(x):
        n, c, h, w = x.shape
        return x.reshape(n, c, h // 2, 2, w // 2, 2).max(axis=(3, 5))

    x = pool(conv(x, params["conv1_w"], params["conv1_b"]))
    x = pool(conv(x, params["conv2_w"], params["conv2_b"]))
    x = x.reshape(x.shape[0], -1)
    x = jnp.maximum(x @ params["fc1_w"].T + params["fc1_b"], 0.0)
    x = jnp.maximum(x @ params["fc2_w"].T + params["fc2_b"], 0.0)
    return x @ params["fc3_w"].T + params["fc3_b"]


# ------------------------------ main ------------------------------------------

if __name__ == "__main__":
    key = jax.random.PRNGKey(0)
    k_param, k_x = jax.random.split(key)
    params = init_params(k_param)
    prepped = prepare_params(params)      # one-time weight relayout, off hot path

    # LeNet's forward implies a 3x32x32 input; small batch of 2.
    x = jax.random.normal(k_x, (2, 3, 32, 32), dtype=jnp.float32)

    fwd = jax.jit(lenet_forward)
    out = jax.block_until_ready(fwd(prepped, x))

    ref = jax.block_until_ready(lenet_reference(params, x))
    assert out.shape == (2, 10)
    # bf16 weights / dot inputs with f32 accumulation -> loosened tolerance.
    assert jnp.allclose(out, ref, atol=2e-2, rtol=2e-2), "Pallas output mismatch"

    print("KERNEL_OK")
</pallas_src>

<mosaic_0001>
module attributes {stable_mosaic.version = 11 : i64} {
  func.func @_lenet_kernel(%arg0: i32, %arg1: memref<2x32x128xf32, #tpu.memory_space<vmem>>, %arg2: memref<5x128x448xbf16, #tpu.memory_space<vmem>>, %arg3: memref<1x224xf32, #tpu.memory_space<vmem>>, %arg4: memref<5x224x320xbf16, #tpu.memory_space<vmem>>, %arg5: memref<1x160xf32, #tpu.memory_space<vmem>>, %arg6: memref<5x160x128xbf16, #tpu.memory_space<vmem>>, %arg7: memref<1x128xf32, #tpu.memory_space<vmem>>, %arg8: memref<128x128xbf16, #tpu.memory_space<vmem>>, %arg9: memref<1x128xf32, #tpu.memory_space<vmem>>, %arg10: memref<128x128xbf16, #tpu.memory_space<vmem>>, %arg11: memref<1x128xf32, #tpu.memory_space<vmem>>, %arg12: memref<2x128xf32, #tpu.memory_space<vmem>>) attributes {dimension_semantics = [#tpu.dimension_semantics<parallel>], iteration_bounds = array<i64: 1>, scalar_prefetch = 0 : i64, scratch_operands = 0 : i64, tpu.core_type = #tpu.core_type<tc>, window_params = [{transform_indices = @transform_0, window_bounds = array<i64: 2, 32, 128>}, {pipeline_mode = #tpu.pipeline_mode<synchronous>, transform_indices = @transform_1, window_bounds = array<i64: 5, 128, 448>}, {pipeline_mode = #tpu.pipeline_mode<synchronous>, transform_indices = @transform_2, window_bounds = array<i64: 1, 224>}, {pipeline_mode = #tpu.pipeline_mode<synchronous>, transform_indices = @transform_3, window_bounds = array<i64: 5, 224, 320>}, {pipeline_mode = #tpu.pipeline_mode<synchronous>, transform_indices = @transform_4, window_bounds = array<i64: 1, 160>}, {pipeline_mode = #tpu.pipeline_mode<synchronous>, transform_indices = @transform_5, window_bounds = array<i64: 5, 160, 128>}, {pipeline_mode = #tpu.pipeline_mode<synchronous>, transform_indices = @transform_6, window_bounds = array<i64: 1, 128>}, {pipeline_mode = #tpu.pipeline_mode<synchronous>, transform_indices = @transform_7, window_bounds = array<i64: 128, 128>}, {pipeline_mode = #tpu.pipeline_mode<synchronous>, transform_indices = @transform_8, window_bounds = array<i64: 1, 128>}, {pipeline_mode = #tpu.pipeline_mode<synchronous>, transform_indices = @transform_9, window_bounds = array<i64: 128, 128>}, {pipeline_mode = #tpu.pipeline_mode<synchronous>, transform_indices = @transform_10, window_bounds = array<i64: 1, 128>}, {transform_indices = @transform_11, window_bounds = array<i64: 2, 128>}]} {
    %c0 = arith.constant 0 : index
    %c0_0 = arith.constant 0 : index
    %c0_1 = arith.constant 0 : index
    %0 = vector.load %arg1[%c0, %c0_0, %c0_1] : memref<2x32x128xf32, #tpu.memory_space<vmem>>, vector<1x7x128xf32>
    %1 = vector.shape_cast %0 : vector<1x7x128xf32> to vector<7x128xf32>
    %c1 = arith.constant 1 : index
    %c0_2 = arith.constant 0 : index
    %c0_3 = arith.constant 0 : index
    %2 = vector.load %arg1[%c1, %c0_2, %c0_3] : memref<2x32x128xf32, #tpu.memory_space<vmem>>, vector<1x7x128xf32>
    %3 = vector.shape_cast %2 : vector<1x7x128xf32> to vector<7x128xf32>
    %c0_4 = arith.constant 0 : index
    %c8 = arith.constant 8 : index
    %c0_5 = arith.constant 0 : index
    %4 = vector.load %arg1[%c0_4, %c8, %c0_5] : memref<2x32x128xf32, #tpu.memory_space<vmem>>, vector<1x7x128xf32>
    %5 = vector.shape_cast %4 : vector<1x7x128xf32> to vector<7x128xf32>
    %c1_6 = arith.constant 1 : index
    %c8_7 = arith.constant 8 : index
    %c0_8 = arith.constant 0 : index
    %6 = vector.load %arg1[%c1_6, %c8_7, %c0_8] : memref<2x32x128xf32, #tpu.memory_space<vmem>>, vector<1x7x128xf32>
    %7 = vector.shape_cast %6 : vector<1x7x128xf32> to vector<7x128xf32>
    %c0_9 = arith.constant 0 : index
    %c16 = arith.constant 16 : index
    %c0_10 = arith.constant 0 : index
    %8 = vector.load %arg1[%c0_9, %c16, %c0_10] : memref<2x32x128xf32, #tpu.memory_space<vmem>>, vector<1x7x128xf32>
    %9 = vector.shape_cast %8 : vector<1x7x128xf32> to vector<7x128xf32>
    %c1_11 = arith.constant 1 : index
    %c16_12 = arith.constant 16 : index
    %c0_13 = arith.constant 0 : index
    %10 = vector.load %arg1[%c1_11, %c16_12, %c0_13] : memref<2x32x128xf32, #tpu.memory_space<vmem>>, vector<1x7x128xf32>
    %11 = vector.shape_cast %10 : vector<1x7x128xf32> to vector<7x128xf32>
    %c0_14 = arith.constant 0 : index
    %c24 = arith.constant 24 : index
    %c0_15 = arith.constant 0 : index
    %12 = vector.load %arg1[%c0_14, %c24, %c0_15] : memref<2x32x128xf32, #tpu.memory_space<vmem>>, vector<1x7x128xf32>
    %13 = vector.shape_cast %12 : vector<1x7x128xf32> to vector<7x128xf32>
    %c1_16 = arith.constant 1 : index
    %c24_17 = arith.constant 24 : index
    %c0_18 = arith.constant 0 : index
    %14 = vector.load %arg1[%c1_16, %c24_17, %c0_18] : memref<2x32x128xf32, #tpu.memory_space<vmem>>, vector<1x7x128xf32>
    %15 = vector.shape_cast %14 : vector<1x7x128xf32> to vector<7x128xf32>
    %16 = tpu.concatenate %1, %3, %5, %7, %9, %11, %13, %15 in 0 : vector<7x128xf32>, vector<7x128xf32>, vector<7x128xf32>, vector<7x128xf32>, vector<7x128xf32>, vector<7x128xf32>, vector<7x128xf32>, vector<7x128xf32> -> vector<56x128xf32>
    %17 = arith.truncf %16 : vector<56x128xf32> to vector<56x128xbf16>
    %c0_19 = arith.constant 0 : index
    %c0_20 = arith.constant 0 : index
    %c0_21 = arith.constant 0 : index
    %18 = vector.load %arg2[%c0_19, %c0_20, %c0_21] : memref<5x128x448xbf16, #tpu.memory_space<vmem>>, vector<1x128x448xbf16>
    %19 = vector.shape_cast %18 : vector<1x128x448xbf16> to vector<128x448xbf16>
    %cst = arith.constant dense<0.000000e+00> : vector<56x448xf32>
    %20 = tpu.matmul %17, %19, %cst {dimension_numbers = #tpu.dot_dimension_numbers<[1], [0], [0], [1], [0, 0, 1, 1], [], []>} : vector<56x128xbf16>, vector<128x448xbf16>, vector<56x448xf32> -> vector<56x448xf32>
    %c0_22 = arith.constant 0 : index
    %c8_23 = arith.constant 8 : index
    %c0_24 = arith.constant 0 : index
    %21 = vector.load %arg1[%c0_22, %c8_23, %c0_24] : memref<2x32x128xf32, #tpu.memory_space<vmem>>, vector<1x7x128xf32>
    %22 = vector.shape_cast %21 : vector<1x7x128xf32> to vector<7x128xf32>
    %c1_25 = arith.constant 1 : index
    %c8_26 = arith.constant 8 : index
    %c0_27 = arith.constant 0 : index
    %23 = vector.load %arg1[%c1_25, %c8_26, %c0_27] : memref<2x32x128xf32, #tpu.memory_space<vmem>>, vector<1x7x128xf32>
    %24 = vector.shape_cast %23 : vector<1x7x128xf32> to vector<7x128xf32>
    %c0_28 = arith.constant 0 : index
    %c16_29 = arith.constant 16 : index
    %c0_30 = arith.constant 0 : index
    %25 = vector.load %arg1[%c0_28, %c16_29, %c0_30] : memref<2x32x128xf32, #tpu.memory_space<vmem>>, vector<1x7x128xf32>
    %26 = vector.shape_cast %25 : vector<1x7x128xf32> to vector<7x128xf32>
    %c1_31 = arith.constant 1 : index
    %c16_32 = arith.constant 16 : index
    %c0_33 = arith.constant 0 : index
    %27 = vector.load %arg1[%c1_31, %c16_32, %c0_33] : memref<2x32x128xf32, #tpu.memory_space<vmem>>, vector<1x7x128xf32>
    %28 = vector.shape_cast %27 : vector<1x7x128xf32> to vector<7x128xf32>
    %c0_34 = arith.constant 0 : index
    %c24_35 = arith.constant 24 : index
    %c0_36 = arith.constant 0 : index
    %29 = vector.load %arg1[%c0_34, %c24_35, %c0_36] : memref<2x32x128xf32, #tpu.memory_space<vmem>>, vector<1x7x128xf32>
    %30 = vector.shape_cast %29 : vector<1x7x128xf32> to vector<7x128xf32>
    %c1_37 = arith.constant 1 : index
    %c24_38 = arith.constant 24 : index
    %c0_39 = arith.constant 0 : index
    %31 = vector.load %arg1[%c1_37, %c24_38, %c0_39] : memref<2x32x128xf32, #tpu.memory_space<vmem>>, vector<1x7x128xf32>
    %32 = vector.shape_cast %31 : vector<1x7x128xf32> to vector<7x128xf32>
    %c0_40 = arith.constant 0 : index
    %c1_41 = arith.constant 1 : index
    %c0_42 = arith.constant 0 : index
    %33 = vector.load %arg1[%c0_40, %c1_41, %c0_42] : memref<2x32x128xf32, #tpu.memory_space<vmem>>, vector<1x7x128xf32>
    %34 = vector.shape_cast %33 : vector<1x7x128xf32> to vector<7x128xf32>
    %c1_43 = arith.constant 1 : index
    %c1_44 = arith.constant 1 : index
    %c0_45 = arith.constant 0 : index
    %35 = vector.load %arg1[%c1_43, %c1_44, %c0_45] : memref<2x32x128xf32, #tpu.memory_space<vmem>>, vector<1x7x128xf32>
    %36 = vector.shape_cast %35 : vector<1x7x128xf32> to vector<7x128xf32>
    %37 = tpu.concatenate %22, %24, %26, %28, %30, %32, %34, %36 in 0 : vector<7x128xf32>, vector<7x128xf32>, vector<7x128xf32>, vector<7x128xf32>, vector<7x128xf32>, vector<7x128xf32>, vector<7x128xf32>, vector<7x128xf32> -> vector<56x128xf32>
    %38 = arith.truncf %37 : vector<56x128xf32> to vector<56x128xbf16>
    %c1_46 = arith.constant 1 : index
    %c0_47 = arith.constant 0 : index
    %c0_48 = arith.constant 0 : index
    %39 = vector.load %arg2[%c1_46, %c0_47, %c0_48] : memref<5x128x448xbf16, #tpu.memory_space<vmem>>, vector<1x128x448xbf16>
    %40 = vector.shape_cast %39 : vector<1x128x448xbf16> to vector<128x448xbf16>
    %cst_49 = arith.constant dense<0.000000e+00> : vector<56x448xf32>
    %41 = tpu.matmul %38, %40, %cst_49 {dimension_numbers = #tpu.dot_dimension_numbers<[1], [0], [0], [1], [0, 0, 1, 1], [], []>} : vector<56x128xbf16>, vector<128x448xbf16>, vector<56x448xf32> -> vector<56x448xf32>
    %42 = arith.addf %20, %41 : vector<56x448xf32>
    %c0_50 = arith.constant 0 : index
    %c16_51 = arith.constant 16 : index
    %c0_52 = arith.constant 0 : index
    %43 = vector.load %arg1[%c0_50, %c16_51, %c0_52] : memref<2x32x128xf32, #tpu.memory_space<vmem>>, vector<1x7x128xf32>
    %44 = vector.shape_cast %43 : vector<1x7x128xf32> to vector<7x128xf32>
    %c1_53 = arith.constant 1 : index
    %c16_54 = arith.constant 16 : index
    %c0_55 = arith.constant 0 : index
    %45 = vector.load %arg1[%c1_53, %c16_54, %c0_55] : memref<2x32x128xf32, #tpu.memory_space<vmem>>, vector<1x7x128xf32>
    %46 = vector.shape_cast %45 : vector<1x7x128xf32> to vector<7x128xf32>
    %c0_56 = arith.constant 0 : index
    %c24_57 = arith.constant 24 : index
    %c0_58 = arith.constant 0 : index
    %47 = vector.load %arg1[%c0_56, %c24_57, %c0_58] : memref<2x32x128xf32, #tpu.memory_space<vmem>>, vector<1x7x128xf32>
    %48 = vector.shape_cast %47 : vector<1x7x128xf32> to vector<7x128xf32>
    %c1_59 = arith.constant 1 : index
    %c24_60 = arith.constant 24 : index
    %c0_61 = arith.constant 0 : index
    %49 = vector.load %arg1[%c1_59, %c24_60, %c0_61] : memref<2x32x128xf32, #tpu.memory_space<vmem>>, vector<1x7x128xf32>
    %50 = vector.shape_cast %49 : vector<1x7x128xf32> to vector<7x128xf32>
    %c0_62 = arith.constant 0 : index
    %c1_63 = arith.constant 1 : index
    %c0_64 = arith.constant 0 : index
    %51 = vector.load %arg1[%c0_62, %c1_63, %c0_64] : memref<2x32x128xf32, #tpu.memory_space<vmem>>, vector<1x7x128xf32>
    %52 = vector.shape_cast %51 : vector<1x7x128xf32> to vector<7x128xf32>
    %c1_65 = arith.constant 1 : index
    %c1_66 = arith.constant 1 : index
    %c0_67 = arith.constant 0 : index
    %53 = vector.load %arg1[%c1_65, %c1_66, %c0_67] : memref<2x32x128xf32, #tpu.memory_space<vmem>>, vector<1x7x128xf32>
    %54 = vector.shape_cast %53 : vector<1x7x128xf32> to vector<7x128xf32>
    %c0_68 = arith.constant 0 : index
    %c9 = arith.constant 9 : index
    %c0_69 = arith.constant 0 : index
    %55 = vector.load %arg1[%c0_68, %c9, %c0_69] : memref<2x32x128xf32, #tpu.memory_space<vmem>>, vector<1x7x128xf32>
    %56 = vector.shape_cast %55 : vector<1x7x128xf32> to vector<7x128xf32>
    %c1_70 = arith.constant 1 : index
    %c9_71 = arith.constant 9 : index
    %c0_72 = arith.constant 0 : index
    %57 = vector.load %arg1[%c1_70, %c9_71, %c0_72] : memref<2x32x128xf32, #tpu.memory_space<vmem>>, vector<1x7x128xf32>
    %58 = vector.shape_cast %57 : vector<1x7x128xf32> to vector<7x128xf32>
    %59 = tpu.concatenate %44, %46, %48, %50, %52, %54, %56, %58 in 0 : vector<7x128xf32>, vector<7x128xf32>, vector<7x128xf32>, vector<7x128xf32>, vector<7x128xf32>, vector<7x128xf32>, vector<7x128xf32>, vector<7x128xf32> -> vector<56x128xf32>
    %60 = arith.truncf %59 : vector<56x128xf32> to vector<56x128xbf16>
    %c2 = arith.constant 2 : index
    %c0_73 = arith.constant 0 : index
    %c0_74 = arith.constant 0 : index
    %61 = vector.load %arg2[%c2, %c0_73, %c0_74] : memref<5x128x448xbf16, #tpu.memory_space<vmem>>, vector<1x128x448xbf16>
    %62 = vector.shape_cast %61 : vector<1x128x448xbf16> to vector<128x448xbf16>
    %cst_75 = arith.constant dense<0.000000e+00> : vector<56x448xf32>
    %63 = tpu.matmul %60, %62, %cst_75 {dimension_numbers = #tpu.dot_dimension_numbers<[1], [0], [0], [1], [0, 0, 1, 1], [], []>} : vector<56x128xbf16>, vector<128x448xbf16>, vector<56x448xf32> -> vector<56x448xf32>
    %64 = arith.addf %42, %63 : vector<56x448xf32>
    %c0_76 = arith.constant 0 : index
    %c24_77 = arith.constant 24 : index
    %c0_78 = arith.constant 0 : index
    %65 = vector.load %arg1[%c0_76, %c24_77, %c0_78] : memref<2x32x128xf32, #tpu.memory_space<vmem>>, vector<1x7x128xf32>
    %66 = vector.shape_cast %65 : vector<1x7x128xf32> to vector<7x128xf32>
    %c1_79 = arith.constant 1 : index
    %c24_80 = arith.constant 24 : index
    %c0_81 = arith.constant 0 : index
    %67 = vector.load %arg1[%c1_79, %c24_80, %c0_81] : memref<2x32x128xf32, #tpu.memory_space<vmem>>, vector<1x7x128xf32>
    %68 = vector.shape_cast %67 : vector<1x7x128xf32> to vector<7x128xf32>
    %c0_82 = arith.constant 0 : index
    %c1_83 = arith.constant 1 : index
    %c0_84 = arith.constant 0 : index
    %69 = vector.load %arg1[%c0_82, %c1_83, %c0_84] : memref<2x32x128xf32, #tpu.memory_space<vmem>>, vector<1x7x128xf32>
    %70 = vector.shape_cast %69 : vector<1x7x128xf32> to vector<7x128xf32>
    %c1_85 = arith.constant 1 : index
    %c1_86 = arith.constant 1 : index
    %c0_87 = arith.constant 0 : index
    %71 = vector.load %arg1[%c1_85, %c1_86, %c0_87] : memref<2x32x128xf32, #tpu.memory_space<vmem>>, vector<1x7x128xf32>
    %72 = vector.shape_cast %71 : vector<1x7x128xf32> to vector<7x128xf32>
    %c0_88 = arith.constant 0 : index
    %c9_89 = arith.constant 9 : index
    %c0_90 = arith.constant 0 : index
    %73 = vector.load %arg1[%c0_88, %c9_89, %c0_90] : memref<2x32x128xf32, #tpu.memory_space<vmem>>, vector<1x7x128xf32>
    %74 = vector.shape_cast %73 : vector<1x7x128xf32> to vector<7x128xf32>
    %c1_91 = arith.constant 1 : index
    %c9_92 = arith.constant 9 : index
    %c0_93 = arith.constant 0 : index
    %75 = vector.load %arg1[%c1_91, %c9_92, %c0_93] : memref<2x32x128xf32, #tpu.memory_space<vmem>>, vector<1x7x128xf32>
    %76 = vector.shape_cast %75 : vector<1x7x128xf32> to vector<7x128xf32>
    %c0_94 = arith.constant 0 : index
    %c17 = arith.constant 17 : index
    %c0_95 = arith.constant 0 : index
    %77 = vector.load %arg1[%c0_94, %c17, %c0_95] : memref<2x32x128xf32, #tpu.memory_space<vmem>>, vector<1x7x128xf32>
    %78 = vector.shape_cast %77 : vector<1x7x128xf32> to vector<7x128xf32>
    %c1_96 = arith.constant 1 : index
    %c17_97 = arith.constant 17 : index
    %c0_98 = arith.constant 0 : index
    %79 = vector.load %arg1[%c1_96, %c17_97, %c0_98] : memref<2x32x128xf32, #tpu.memory_space<vmem>>, vector<1x7x128xf32>
    %80 = vector.shape_cast %79 : vector<1x7x128xf32> to vector<7x128xf32>
    %81 = tpu.concatenate %66, %68, %70, %72, %74, %76, %78, %80 in 0 : vector<7x128xf32>, vector<7x128xf32>, vector<7x128xf32>, vector<7x128xf32>, vector<7x128xf32>, vector<7x128xf32>, vector<7x128xf32>, vector<7x128xf32> -> vector<56x128xf32>
    %82 = arith.truncf %81 : vector<56x128xf32> to vector<56x128xbf16>
    %c3 = arith.constant 3 : index
    %c0_99 = arith.constant 0 : index
    %c0_100 = arith.constant 0 : index
    %83 = vector.load %arg2[%c3, %c0_99, %c0_100] : memref<5x128x448xbf16, #tpu.memory_space<vmem>>, vector<1x128x448xbf16>
    %84 = vector.shape_cast %83 : vector<1x128x448xbf16> to vector<128x448xbf16>
    %cst_101 = arith.constant dense<0.000000e+00> : vector<56x448xf32>
    %85 = tpu.matmul %82, %84, %cst_101 {dimension_numbers = #tpu.dot_dimension_numbers<[1], [0], [0], [1], [0, 0, 1, 1], [], []>} : vector<56x128xbf16>, vector<128x448xbf16>, vector<56x448xf32> -> vector<56x448xf32>
    %86 = arith.addf %64, %85 : vector<56x448xf32>
    %c0_102 = arith.constant 0 : index
    %c1_103 = arith.constant 1 : index
    %c0_104 = arith.constant 0 : index
    %87 = vector.load %arg1[%c0_102, %c1_103, %c0_104] : memref<2x32x128xf32, #tpu.memory_space<vmem>>, vector<1x7x128xf32>
    %88 = vector.shape_cast %87 : vector<1x7x128xf32> to vector<7x128xf32>
    %c1_105 = arith.constant 1 : index
    %c1_106 = arith.constant 1 : index
    %c0_107 = arith.constant 0 : index
    %89 = vector.load %arg1[%c1_105, %c1_106, %c0_107] : memref<2x32x128xf32, #tpu.memory_space<vmem>>, vector<1x7x128xf32>
    %90 = vector.shape_cast %89 : vector<1x7x128xf32> to vector<7x128xf32>
    %c0_108 = arith.constant 0 : index
    %c9_109 = arith.constant 9 : index
    %c0_110 = arith.constant 0 : index
    %91 = vector.load %arg1[%c0_108, %c9_109, %c0_110] : memref<2x32x128xf32, #tpu.memory_space<vmem>>, vector<1x7x128xf32>
    %92 = vector.shape_cast %91 : vector<1x7x128xf32> to vector<7x128xf32>
    %c1_111 = arith.constant 1 : index
    %c9_112 = arith.constant 9 : index
    %c0_113 = arith.constant 0 : index
    %93 = vector.load %arg1[%c1_111, %c9_112, %c0_113] : memref<2x32x128xf32, #tpu.memory_space<vmem>>, vector<1x7x128xf32>
    %94 = vector.shape_cast %93 : vector<1x7x128xf32> to vector<7x128xf32>
    %c0_114 = arith.constant 0 : index
    %c17_115 = arith.constant 17 : index
    %c0_116 = arith.constant 0 : index
    %95 = vector.load %arg1[%c0_114, %c17_115, %c0_116] : memref<2x32x128xf32, #tpu.memory_space<vmem>>, vector<1x7x128xf32>
    %96 = vector.shape_cast %95 : vector<1x7x128xf32> to vector<7x128xf32>
    %c1_117 = arith.constant 1 : index
    %c17_118 = arith.constant 17 : index
    %c0_119 = arith.constant 0 : index
    %97 = vector.load %arg1[%c1_117, %c17_118, %c0_119] : memref<2x32x128xf32, #tpu.memory_space<vmem>>, vector<1x7x128xf32>
    %98 = vector.shape_cast %97 : vector<1x7x128xf32> to vector<7x128xf32>
    %c0_120 = arith.constant 0 : index
    %c25 = arith.constant 25 : index
    %c0_121 = arith.constant 0 : index
    %99 = vector.load %arg1[%c0_120, %c25, %c0_121] : memref<2x32x128xf32, #tpu.memory_space<vmem>>, vector<1x7x128xf32>
    %100 = vector.shape_cast %99 : vector<1x7x128xf32> to vector<7x128xf32>
    %c1_122 = arith.constant 1 : index
    %c25_123 = arith.constant 25 : index
    %c0_124 = arith.constant 0 : index
    %101 = vector.load %arg1[%c1_122, %c25_123, %c0_124] : memref<2x32x128xf32, #tpu.memory_space<vmem>>, vector<1x7x128xf32>
    %102 = vector.shape_cast %101 : vector<1x7x128xf32> to vector<7x128xf32>
    %103 = tpu.concatenate %88, %90, %92, %94, %96, %98, %100, %102 in 0 : vector<7x128xf32>, vector<7x128xf32>, vector<7x128xf32>, vector<7x128xf32>, vector<7x128xf32>, vector<7x128xf32>, vector<7x128xf32>, vector<7x128xf32> -> vector<56x128xf32>
    %104 = arith.truncf %103 : vector<56x128xf32> to vector<56x128xbf16>
    %c4 = arith.constant 4 : index
    %c0_125 = arith.constant 0 : index
    %c0_126 = arith.constant 0 : index
    %105 = vector.load %arg2[%c4, %c0_125, %c0_126] : memref<5x128x448xbf16, #tpu.memory_space<vmem>>, vector<1x128x448xbf16>
    %106 = vector.shape_cast %105 : vector<1x128x448xbf16> to vector<128x448xbf16>
    %cst_127 = arith.constant dense<0.000000e+00> : vector<56x448xf32>
    %107 = tpu.matmul %104, %106, %cst_127 {dimension_numbers = #tpu.dot_dimension_numbers<[1], [0], [0], [1], [0, 0, 1, 1], [], []>} : vector<56x128xbf16>, vector<128x448xbf16>, vector<56x448xf32> -> vector<56x448xf32>
    %108 = arith.addf %86, %107 : vector<56x448xf32>
    %c0_128 = arith.constant 0 : index
    %c0_129 = arith.constant 0 : index
    %109 = vector.load %arg3[%c0_128, %c0_129] : memref<1x224xf32, #tpu.memory_space<vmem>>, vector<1x224xf32>
    %110 = vector.extract_strided_slice %108 {offsets = [0, 0], sizes = [14, 448], strides = [1, 1]} : vector<56x448xf32> to vector<14x448xf32>
    %111 = vector.extract_strided_slice %108 {offsets = [14, 0], sizes = [14, 448], strides = [1, 1]} : vector<56x448xf32> to vector<14x448xf32>
    %112 = vector.extract_strided_slice %110 {offsets = [0, 0], sizes = [14, 224], strides = [1, 1]} : vector<14x448xf32> to vector<14x224xf32>
    %113 = vector.extract_strided_slice %110 {offsets = [0, 224], sizes = [14, 224], strides = [1, 1]} : vector<14x448xf32> to vector<14x224xf32>
    %114 = arith.maximumf %112, %113 : vector<14x224xf32>
    %115 = vector.extract_strided_slice %111 {offsets = [0, 0], sizes = [14, 224], strides = [1, 1]} : vector<14x448xf32> to vector<14x224xf32>
    %116 = vector.extract_strided_slice %111 {offsets = [0, 224], sizes = [14, 224], strides = [1, 1]} : vector<14x448xf32> to vector<14x224xf32>
    %117 = arith.maximumf %115, %116 : vector<14x224xf32>
    %118 = arith.maximumf %114, %117 : vector<14x224xf32>
    %119 = vector.broadcast %109 : vector<1x224xf32> to vector<14x224xf32>
    %120 = arith.addf %118, %119 : vector<14x224xf32>
    %cst_130 = arith.constant 0.000000e+00 : f32
    %121 = vector.broadcast %cst_130 : f32 to vector<14x224xf32>
    %122 = arith.maximumf %120, %121 : vector<14x224xf32>
    %123 = vector.extract_strided_slice %108 {offsets = [28, 0], sizes = [14, 448], strides = [1, 1]} : vector<56x448xf32> to vector<14x448xf32>
    %124 = vector.extract_strided_slice %108 {offsets = [42, 0], sizes = [14, 448], strides = [1, 1]} : vector<56x448xf32> to vector<14x448xf32>
    %125 = vector.extract_strided_slice %123 {offsets = [0, 0], sizes = [14, 224], strides = [1, 1]} : vector<14x448xf32> to vector<14x224xf32>
    %126 = vector.extract_strided_slice %123 {offsets = [0, 224], sizes = [14, 224], strides = [1, 1]} : vector<14x448xf32> to vector<14x224xf32>
    %127 = arith.maximumf %125, %126 : vector<14x224xf32>
    %128 = vector.extract_strided_slice %124 {offsets = [0, 0], sizes = [14, 224], strides = [1, 1]} : vector<14x448xf32> to vector<14x224xf32>
    %129 = vector.extract_strided_slice %124 {offsets = [0, 224], sizes = [14, 224], strides = [1, 1]} : vector<14x448xf32> to vector<14x224xf32>
    %130 = arith.maximumf %128, %129 : vector<14x224xf32>
    %131 = arith.maximumf %127, %130 : vector<14x224xf32>
    %132 = vector.broadcast %109 : vector<1x224xf32> to vector<14x224xf32>
    %133 = arith.addf %131, %132 : vector<14x224xf32>
    %cst_131 = arith.constant 0.000000e+00 : f32
    %134 = vector.broadcast %cst_131 : f32 to vector<14x224xf32>
    %135 = arith.maximumf %133, %134 : vector<14x224xf32>
    %136 = vector.extract_strided_slice %122 {offsets = [0, 0], sizes = [5, 224], strides = [1, 1]} : vector<14x224xf32> to vector<5x224xf32>
    %137 = vector.extract_strided_slice %122 {offsets = [7, 0], sizes = [5, 224], strides = [1, 1]} : vector<14x224xf32> to vector<5x224xf32>
    %138 = vector.extract_strided_slice %135 {offsets = [0, 0], sizes = [5, 224], strides = [1, 1]} : vector<14x224xf32> to vector<5x224xf32>
    %139 = vector.extract_strided_slice %135 {offsets = [7, 0], sizes = [5, 224], strides = [1, 1]} : vector<14x224xf32> to vector<5x224xf32>
    %140 = tpu.concatenate %136, %137, %138, %139 in 0 : vector<5x224xf32>, vector<5x224xf32>, vector<5x224xf32>, vector<5x224xf32> -> vector<20x224xf32>
    %141 = arith.truncf %140 : vector<20x224xf32> to vector<20x224xbf16>
    %c0_132 = arith.constant 0 : index
    %c0_133 = arith.constant 0 : index
    %c0_134 = arith.constant 0 : index
    %142 = vector.load %arg4[%c0_132, %c0_133, %c0_134] : memref<5x224x320xbf16, #tpu.memory_space<vmem>>, vector<1x224x320xbf16>
    %143 = vector.shape_cast %142 : vector<1x224x320xbf16> to vector<224x320xbf16>
    %cst_135 = arith.constant dense<0.000000e+00> : vector<20x320xf32>
    %144 = tpu.matmul %141, %143, %cst_135 {dimension_numbers = #tpu.dot_dimension_numbers<[1], [0], [0], [1], [0, 0, 1, 1], [], []>} : vector<20x224xbf16>, vector<224x320xbf16>, vector<20x320xf32> -> vector<20x320xf32>
    %145 = vector.extract_strided_slice %135 {offsets = [0, 0], sizes = [5, 224], strides = [1, 1]} : vector<14x224xf32> to vector<5x224xf32>
    %146 = vector.extract_strided_slice %135 {offsets = [7, 0], sizes = [5, 224], strides = [1, 1]} : vector<14x224xf32> to vector<5x224xf32>
    %147 = vector.extract_strided_slice %122 {offsets = [1, 0], sizes = [5, 224], strides = [1, 1]} : vector<14x224xf32> to vector<5x224xf32>
    %148 = vector.extract_strided_slice %122 {offsets = [8, 0], sizes = [5, 224], strides = [1, 1]} : vector<14x224xf32> to vector<5x224xf32>
    %149 = tpu.concatenate %145, %146, %147, %148 in 0 : vector<5x224xf32>, vector<5x224xf32>, vector<5x224xf32>, vector<5x224xf32> -> vector<20x224xf32>
    %150 = arith.truncf %149 : vector<20x224xf32> to vector<20x224xbf16>
    %c1_136 = arith.constant 1 : index
    %c0_137 = arith.constant 0 : index
    %c0_138 = arith.constant 0 : index
    %151 = vector.load %arg4[%c1_136, %c0_137, %c0_138] : memref<5x224x320xbf16, #tpu.memory_space<vmem>>, vector<1x224x320xbf16>
    %152 = vector.shape_cast %151 : vector<1x224x320xbf16> to vector<224x320xbf16>
    %cst_139 = arith.constant dense<0.000000e+00> : vector<20x320xf32>
    %153 = tpu.matmul %150, %152, %cst_139 {dimension_numbers = #tpu.dot_dimension_numbers<[1], [0], [0], [1], [0, 0, 1, 1], [], []>} : vector<20x224xbf16>, vector<224x320xbf16>, vector<20x320xf32> -> vector<20x320xf32>
    %154 = arith.addf %144, %153 : vector<20x320xf32>
    %155 = vector.extract_strided_slice %122 {offsets = [1, 0], sizes = [5, 224], strides = [1, 1]} : vector<14x224xf32> to vector<5x224xf32>
    %156 = vector.extract_strided_slice %122 {offsets = [8, 0], sizes = [5, 224], strides = [1, 1]} : vector<14x224xf32> to vector<5x224xf32>
    %157 = vector.extract_strided_slice %135 {offsets = [1, 0], sizes = [5, 224], strides = [1, 1]} : vector<14x224xf32> to vector<5x224xf32>
    %158 = vector.extract_strided_slice %135 {offsets = [8, 0], sizes = [5, 224], strides = [1, 1]} : vector<14x224xf32> to vector<5x224xf32>
    %159 = tpu.concatenate %155, %156, %157, %158 in 0 : vector<5x224xf32>, vector<5x224xf32>, vector<5x224xf32>, vector<5x224xf32> -> vector<20x224xf32>
    %160 = arith.truncf %159 : vector<20x224xf32> to vector<20x224xbf16>
    %c2_140 = arith.constant 2 : index
    %c0_141 = arith.constant 0 : index
    %c0_142 = arith.constant 0 : index
    %161 = vector.load %arg4[%c2_140, %c0_141, %c0_142] : memref<5x224x320xbf16, #tpu.memory_space<vmem>>, vector<1x224x320xbf16>
    %162 = vector.shape_cast %161 : vector<1x224x320xbf16> to vector<224x320xbf16>
    %cst_143 = arith.constant dense<0.000000e+00> : vector<20x320xf32>
    %163 = tpu.matmul %160, %162, %cst_143 {dimension_numbers = #tpu.dot_dimension_numbers<[1], [0], [0], [1], [0, 0, 1, 1], [], []>} : vector<20x224xbf16>, vector<224x320xbf16>, vector<20x320xf32> -> vector<20x320xf32>
    %164 = arith.addf %154, %163 : vector<20x320xf32>
    %165 = vector.extract_strided_slice %135 {offsets = [1, 0], sizes = [5, 224], strides = [1, 1]} : vector<14x224xf32> to vector<5x224xf32>
    %166 = vector.extract_strided_slice %135 {offsets = [8, 0], sizes = [5, 224], strides = [1, 1]} : vector<14x224xf32> to vector<5x224xf32>
    %167 = vector.extract_strided_slice %122 {offsets = [2, 0], sizes = [5, 224], strides = [1, 1]} : vector<14x224xf32> to vector<5x224xf32>
    %168 = vector.extract_strided_slice %122 {offsets = [9, 0], sizes = [5, 224], strides = [1, 1]} : vector<14x224xf32> to vector<5x224xf32>
    %169 = tpu.concatenate %165, %166, %167, %168 in 0 : vector<5x224xf32>, vector<5x224xf32>, vector<5x224xf32>, vector<5x224xf32> -> vector<20x224xf32>
    %170 = arith.truncf %169 : vector<20x224xf32> to vector<20x224xbf16>
    %c3_144 = arith.constant 3 : index
    %c0_145 = arith.constant 0 : index
    %c0_146 = arith.constant 0 : index
    %171 = vector.load %arg4[%c3_144, %c0_145, %c0_146] : memref<5x224x320xbf16, #tpu.memory_space<vmem>>, vector<1x224x320xbf16>
    %172 = vector.shape_cast %171 : vector<1x224x320xbf16> to vector<224x320xbf16>
    %cst_147 = arith.constant dense<0.000000e+00> : vector<20x320xf32>
    %173 = tpu.matmul %170, %172, %cst_147 {dimension_numbers = #tpu.dot_dimension_numbers<[1], [0], [0], [1], [0, 0, 1, 1], [], []>} : vector<20x224xbf16>, vector<224x320xbf16>, vector<20x320xf32> -> vector<20x320xf32>
    %174 = arith.addf %164, %173 : vector<20x320xf32>
    %175 = vector.extract_strided_slice %122 {offsets = [2, 0], sizes = [5, 224], strides = [1, 1]} : vector<14x224xf32> to vector<5x224xf32>
    %176 = vector.extract_strided_slice %122 {offsets = [9, 0], sizes = [5, 224], strides = [1, 1]} : vector<14x224xf32> to vector<5x224xf32>
    %177 = vector.extract_strided_slice %135 {offsets = [2, 0], sizes = [5, 224], strides = [1, 1]} : vector<14x224xf32> to vector<5x224xf32>
    %178 = vector.extract_strided_slice %135 {offsets = [9, 0], sizes = [5, 224], strides = [1, 1]} : vector<14x224xf32> to vector<5x224xf32>
    %179 = tpu.concatenate %175, %176, %177, %178 in 0 : vector<5x224xf32>, vector<5x224xf32>, vector<5x224xf32>, vector<5x224xf32> -> vector<20x224xf32>
    %180 = arith.truncf %179 : vector<20x224xf32> to vector<20x224xbf16>
    %c4_148 = arith.constant 4 : index
    %c0_149 = arith.constant 0 : index
    %c0_150 = arith.constant 0 : index
    %181 = vector.load %arg4[%c4_148, %c0_149, %c0_150] : memref<5x224x320xbf16, #tpu.memory_space<vmem>>, vector<1x224x320xbf16>
    %182 = vector.shape_cast %181 : vector<1x224x320xbf16> to vector<224x320xbf16>
    %cst_151 = arith.constant dense<0.000000e+00> : vector<20x320xf32>
    %183 = tpu.matmul %180, %182, %cst_151 {dimension_numbers = #tpu.dot_dimension_numbers<[1], [0], [0], [1], [0, 0, 1, 1], [], []>} : vector<20x224xbf16>, vector<224x320xbf16>, vector<20x320xf32> -> vector<20x320xf32>
    %184 = arith.addf %174, %183 : vector<20x320xf32>
    %185 = vector.extract_strided_slice %184 {offsets = [0, 0], sizes = [10, 320], strides = [1, 1]} : vector<20x320xf32> to vector<10x320xf32>
    %186 = vector.extract_strided_slice %184 {offsets = [10, 0], sizes = [10, 320], strides = [1, 1]} : vector<20x320xf32> to vector<10x320xf32>
    %c0_152 = arith.constant 0 : index
    %c0_153 = arith.constant 0 : index
    %187 = vector.load %arg5[%c0_152, %c0_153] : memref<1x160xf32, #tpu.memory_space<vmem>>, vector<1x160xf32>
    %188 = vector.extract_strided_slice %185 {offsets = [0, 0], sizes = [10, 160], strides = [1, 1]} : vector<10x320xf32> to vector<10x160xf32>
    %189 = vector.extract_strided_slice %185 {offsets = [0, 160], sizes = [10, 160], strides = [1, 1]} : vector<10x320xf32> to vector<10x160xf32>
    %190 = arith.maximumf %188, %189 : vector<10x160xf32>
    %191 = vector.extract_strided_slice %186 {offsets = [0, 0], sizes = [10, 160], strides = [1, 1]} : vector<10x320xf32> to vector<10x160xf32>
    %192 = vector.extract_strided_slice %186 {offsets = [0, 160], sizes = [10, 160], strides = [1, 1]} : vector<10x320xf32> to vector<10x160xf32>
    %193 = arith.maximumf %191, %192 : vector<10x160xf32>
    %194 = arith.maximumf %190, %193 : vector<10x160xf32>
    %195 = vector.broadcast %187 : vector<1x160xf32> to vector<10x160xf32>
    %196 = arith.addf %194, %195 : vector<10x160xf32>
    %cst_154 = arith.constant 0.000000e+00 : f32
    %197 = vector.broadcast %cst_154 : f32 to vector<10x160xf32>
    %198 = arith.maximumf %196, %197 : vector<10x160xf32>
    %199 = vector.extract_strided_slice %198 {offsets = [0, 0], sizes = [1, 160], strides = [1, 1]} : vector<10x160xf32> to vector<1x160xf32>
    %200 = vector.extract_strided_slice %198 {offsets = [5, 0], sizes = [1, 160], strides = [1, 1]} : vector<10x160xf32> to vector<1x160xf32>
    %201 = tpu.concatenate %199, %200 in 0 : vector<1x160xf32>, vector<1x160xf32> -> vector<2x160xf32>
    %202 = arith.truncf %201 : vector<2x160xf32> to vector<2x160xbf16>
    %c0_155 = arith.constant 0 : index
    %c0_156 = arith.constant 0 : index
    %c0_157 = arith.constant 0 : index
    %203 = vector.load %arg6[%c0_155, %c0_156, %c0_157] : memref<5x160x128xbf16, #tpu.memory_space<vmem>>, vector<1x160x128xbf16>
    %204 = vector.shape_cast %203 : vector<1x160x128xbf16> to vector<160x128xbf16>
    %cst_158 = arith.constant dense<0.000000e+00> : vector<2x128xf32>
    %205 = tpu.matmul %202, %204, %cst_158 {dimension_numbers = #tpu.dot_dimension_numbers<[1], [0], [0], [1], [0, 0, 1, 1], [], []>} : vector<2x160xbf16>, vector<160x128xbf16>, vector<2x128xf32> -> vector<2x128xf32>
    %206 = vector.extract_strided_slice %198 {offsets = [1, 0], sizes = [1, 160], strides = [1, 1]} : vector<10x160xf32> to vector<1x160xf32>
    %207 = vector.extract_strided_slice %198 {offsets = [6, 0], sizes = [1, 160], strides = [1, 1]} : vector<10x160xf32> to vector<1x160xf32>
    %208 = tpu.concatenate %206, %207 in 0 : vector<1x160xf32>, vector<1x160xf32> -> vector<2x160xf32>
    %209 = arith.truncf %208 : vector<2x160xf32> to vector<2x160xbf16>
    %c1_159 = arith.constant 1 : index
    %c0_160 = arith.constant 0 : index
    %c0_161 = arith.constant 0 : index
    %210 = vector.load %arg6[%c1_159, %c0_160, %c0_161] : memref<5x160x128xbf16, #tpu.memory_space<vmem>>, vector<1x160x128xbf16>
    %211 = vector.shape_cast %210 : vector<1x160x128xbf16> to vector<160x128xbf16>
    %cst_162 = arith.constant dense<0.000000e+00> : vector<2x128xf32>
    %212 = tpu.matmul %209, %211, %cst_162 {dimension_numbers = #tpu.dot_dimension_numbers<[1], [0], [0], [1], [0, 0, 1, 1], [], []>} : vector<2x160xbf16>, vector<160x128xbf16>, vector<2x128xf32> -> vector<2x128xf32>
    %213 = arith.addf %205, %212 : vector<2x128xf32>
    %214 = vector.extract_strided_slice %198 {offsets = [2, 0], sizes = [1, 160], strides = [1, 1]} : vector<10x160xf32> to vector<1x160xf32>
    %215 = vector.extract_strided_slice %198 {offsets = [7, 0], sizes = [1, 160], strides = [1, 1]} : vector<10x160xf32> to vector<1x160xf32>
    %216 = tpu.concatenate %214, %215 in 0 : vector<1x160xf32>, vector<1x160xf32> -> vector<2x160xf32>
    %217 = arith.truncf %216 : vector<2x160xf32> to vector<2x160xbf16>
    %c2_163 = arith.constant 2 : index
    %c0_164 = arith.constant 0 : index
    %c0_165 = arith.constant 0 : index
    %218 = vector.load %arg6[%c2_163, %c0_164, %c0_165] : memref<5x160x128xbf16, #tpu.memory_space<vmem>>, vector<1x160x128xbf16>
    %219 = vector.shape_cast %218 : vector<1x160x128xbf16> to vector<160x128xbf16>
    %cst_166 = arith.constant dense<0.000000e+00> : vector<2x128xf32>
    %220 = tpu.matmul %217, %219, %cst_166 {dimension_numbers = #tpu.dot_dimension_numbers<[1], [0], [0], [1], [0, 0, 1, 1], [], []>} : vector<2x160xbf16>, vector<160x128xbf16>, vector<2x128xf32> -> vector<2x128xf32>
    %221 = arith.addf %213, %220 : vector<2x128xf32>
    %222 = vector.extract_strided_slice %198 {offsets = [3, 0], sizes = [1, 160], strides = [1, 1]} : vector<10x160xf32> to vector<1x160xf32>
    %223 = vector.extract_strided_slice %198 {offsets = [8, 0], sizes = [1, 160], strides = [1, 1]} : vector<10x160xf32> to vector<1x160xf32>
    %224 = tpu.concatenate %222, %223 in 0 : vector<1x160xf32>, vector<1x160xf32> -> vector<2x160xf32>
    %225 = arith.truncf %224 : vector<2x160xf32> to vector<2x160xbf16>
    %c3_167 = arith.constant 3 : index
    %c0_168 = arith.constant 0 : index
    %c0_169 = arith.constant 0 : index
    %226 = vector.load %arg6[%c3_167, %c0_168, %c0_169] : memref<5x160x128xbf16, #tpu.memory_space<vmem>>, vector<1x160x128xbf16>
    %227 = vector.shape_cast %226 : vector<1x160x128xbf16> to vector<160x128xbf16>
    %cst_170 = arith.constant dense<0.000000e+00> : vector<2x128xf32>
    %228 = tpu.matmul %225, %227, %cst_170 {dimension_numbers = #tpu.dot_dimension_numbers<[1], [0], [0], [1], [0, 0, 1, 1], [], []>} : vector<2x160xbf16>, vector<160x128xbf16>, vector<2x128xf32> -> vector<2x128xf32>
    %229 = arith.addf %221, %228 : vector<2x128xf32>
    %230 = vector.extract_strided_slice %198 {offsets = [4, 0], sizes = [1, 160], strides = [1, 1]} : vector<10x160xf32> to vector<1x160xf32>
    %231 = vector.extract_strided_slice %198 {offsets = [9, 0], sizes = [1, 160], strides = [1, 1]} : vector<10x160xf32> to vector<1x160xf32>
    %232 = tpu.concatenate %230, %231 in 0 : vector<1x160xf32>, vector<1x160xf32> -> vector<2x160xf32>
    %233 = arith.truncf %232 : vector<2x160xf32> to vector<2x160xbf16>
    %c4_171 = arith.constant 4 : index
    %c0_172 = arith.constant 0 : index
    %c0_173 = arith.constant 0 : index
    %234 = vector.load %arg6[%c4_171, %c0_172, %c0_173] : memref<5x160x128xbf16, #tpu.memory_space<vmem>>, vector<1x160x128xbf16>
    %235 = vector.shape_cast %234 : vector<1x160x128xbf16> to vector<160x128xbf16>
    %cst_174 = arith.constant dense<0.000000e+00> : vector<2x128xf32>
    %236 = tpu.matmul %233, %235, %cst_174 {dimension_numbers = #tpu.dot_dimension_numbers<[1], [0], [0], [1], [0, 0, 1, 1], [], []>} : vector<2x160xbf16>, vector<160x128xbf16>, vector<2x128xf32> -> vector<2x128xf32>
    %237 = arith.addf %229, %236 : vector<2x128xf32>
    %c0_175 = arith.constant 0 : index
    %c0_176 = arith.constant 0 : index
    %238 = vector.load %arg7[%c0_175, %c0_176] : memref<1x128xf32, #tpu.memory_space<vmem>>, vector<1x128xf32>
    %239 = vector.broadcast %238 : vector<1x128xf32> to vector<2x128xf32>
    %240 = arith.addf %237, %239 : vector<2x128xf32>
    %cst_177 = arith.constant 0.000000e+00 : f32
    %241 = vector.broadcast %cst_177 : f32 to vector<2x128xf32>
    %242 = arith.maximumf %240, %241 : vector<2x128xf32>
    %243 = arith.truncf %242 : vector<2x128xf32> to vector<2x128xbf16>
    %c0_178 = arith.constant 0 : index
    %c0_179 = arith.constant 0 : index
    %244 = vector.load %arg8[%c0_178, %c0_179] : memref<128x128xbf16, #tpu.memory_space<vmem>>, vector<128x128xbf16>
    %cst_180 = arith.constant dense<0.000000e+00> : vector<2x128xf32>
    %245 = tpu.matmul %243, %244, %cst_180 {dimension_numbers = #tpu.dot_dimension_numbers<[1], [0], [0], [1], [0, 0, 1, 1], [], []>} : vector<2x128xbf16>, vector<128x128xbf16>, vector<2x128xf32> -> vector<2x128xf32>
    %c0_181 = arith.constant 0 : index
    %c0_182 = arith.constant 0 : index
    %246 = vector.load %arg9[%c0_181, %c0_182] : memref<1x128xf32, #tpu.memory_space<vmem>>, vector<1x128xf32>
    %247 = vector.broadcast %246 : vector<1x128xf32> to vector<2x128xf32>
    %248 = arith.addf %245, %247 : vector<2x128xf32>
    %cst_183 = arith.constant 0.000000e+00 : f32
    %249 = vector.broadcast %cst_183 : f32 to vector<2x128xf32>
    %250 = arith.maximumf %248, %249 : vector<2x128xf32>
    %251 = arith.truncf %250 : vector<2x128xf32> to vector<2x128xbf16>
    %c0_184 = arith.constant 0 : index
    %c0_185 = arith.constant 0 : index
    %252 = vector.load %arg10[%c0_184, %c0_185] : memref<128x128xbf16, #tpu.memory_space<vmem>>, vector<128x128xbf16>
    %cst_186 = arith.constant dense<0.000000e+00> : vector<2x128xf32>
    %253 = tpu.matmul %251, %252, %cst_186 {dimension_numbers = #tpu.dot_dimension_numbers<[1], [0], [0], [1], [0, 0, 1, 1], [], []>} : vector<2x128xbf16>, vector<128x128xbf16>, vector<2x128xf32> -> vector<2x128xf32>
    %c0_187 = arith.constant 0 : index
    %c0_188 = arith.constant 0 : index
    %254 = vector.load %arg11[%c0_187, %c0_188] : memref<1x128xf32, #tpu.memory_space<vmem>>, vector<1x128xf32>
    %255 = vector.broadcast %254 : vector<1x128xf32> to vector<2x128xf32>
    %256 = arith.addf %253, %255 : vector<2x128xf32>
    %c0_189 = arith.constant 0 : index
    %c0_190 = arith.constant 0 : index
    %257 = vector.load %arg12[%c0_189, %c0_190] : memref<2x128xf32, #tpu.memory_space<vmem>>, vector<2x128xf32>
    tpu.vector_store %arg12[%c0_189, %c0_190], %256 {strides = array<i32>} : memref<2x128xf32, #tpu.memory_space<vmem>>, vector<2x128xf32>,
    return
  }
  func.func @transform_0(%arg0: i32) -> (i32, i32, i32) {
    %c0_i32 = arith.constant 0 : i32
    %c0_i32_0 = arith.constant 0 : i32
    %c0_i32_1 = arith.constant 0 : i32
    return %arg0, %c0_i32, %c0_i32_0 : i32, i32, i32
  }
  func.func @transform_1(%arg0: i32) -> (i32, i32, i32) {
    %c0_i32 = arith.constant 0 : i32
    %c0_i32_0 = arith.constant 0 : i32
    %c0_i32_1 = arith.constant 0 : i32
    %c0_i32_2 = arith.constant 0 : i32
    return %c0_i32, %c0_i32_0, %c0_i32_1 : i32, i32, i32
  }
  func.func @transform_2(%arg0: i32) -> (i32, i32) {
    %c0_i32 = arith.constant 0 : i32
    %c0_i32_0 = arith.constant 0 : i32
    %c0_i32_1 = arith.constant 0 : i32
    return %c0_i32, %c0_i32_0 : i32, i32
  }
  func.func @transform_3(%arg0: i32) -> (i32, i32, i32) {
    %c0_i32 = arith.constant 0 : i32
    %c0_i32_0 = arith.constant 0 : i32
    %c0_i32_1 = arith.constant 0 : i32
    %c0_i32_2 = arith.constant 0 : i32
    return %c0_i32, %c0_i32_0, %c0_i32_1 : i32, i32, i32
  }
  func.func @transform_4(%arg0: i32) -> (i32, i32) {
    %c0_i32 = arith.constant 0 : i32
    %c0_i32_0 = arith.constant 0 : i32
    %c0_i32_1 = arith.constant 0 : i32
    return %c0_i32, %c0_i32_0 : i32, i32
  }
  func.func @transform_5(%arg0: i32) -> (i32, i32, i32) {
    %c0_i32 = arith.constant 0 : i32
    %c0_i32_0 = arith.constant 0 : i32
    %c0_i32_1 = arith.constant 0 : i32
    %c0_i32_2 = arith.constant 0 : i32
    return %c0_i32, %c0_i32_0, %c0_i32_1 : i32, i32, i32
  }
  func.func @transform_6(%arg0: i32) -> (i32, i32) {
    %c0_i32 = arith.constant 0 : i32
    %c0_i32_0 = arith.constant 0 : i32
    %c0_i32_1 = arith.constant 0 : i32
    return %c0_i32, %c0_i32_0 : i32, i32
  }
  func.func @transform_7(%arg0: i32) -> (i32, i32) {
    %c0_i32 = arith.constant 0 : i32
    %c0_i32_0 = arith.constant 0 : i32
    %c0_i32_1 = arith.constant 0 : i32
    return %c0_i32, %c0_i32_0 : i32, i32
  }
  func.func @transform_8(%arg0: i32) -> (i32, i32) {
    %c0_i32 = arith.constant 0 : i32
    %c0_i32_0 = arith.constant 0 : i32
    %c0_i32_1 = arith.constant 0 : i32
    return %c0_i32, %c0_i32_0 : i32, i32
  }
  func.func @transform_9(%arg0: i32) -> (i32, i32) {
    %c0_i32 = arith.constant 0 : i32
    %c0_i32_0 = arith.constant 0 : i32
    %c0_i32_1 = arith.constant 0 : i32
    return %c0_i32, %c0_i32_0 : i32, i32
  }
  func.func @transform_10(%arg0: i32) -> (i32, i32) {
    %c0_i32 = arith.constant 0 : i32
    %c0_i32_0 = arith.constant 0 : i32
    %c0_i32_1 = arith.constant 0 : i32
    return %c0_i32, %c0_i32_0 : i32, i32
  }
  func.func @transform_11(%arg0: i32) -> (i32, i32) {
    %c0_i32 = arith.constant 0 : i32
    %c0_i32_0 = arith.constant 0 : i32
    return %arg0, %c0_i32 : i32, i32
  }
}

</mosaic_0001>

<bundles_post_ra>
// kernel: lenet_forward.1
= control target key start
LH: loop header
LB: loop body
LE: loop exit
PB: predicated region body
PF: predicated region fallthrough
CT: control target
= control target key end

     0   :  { %vm70_vm0 = vcmask 1046528   ;;  %vm72_vm1 = vcmask 1045504   ;;  %s11312_s0 = inlined_call_operand.vmem [shape: f32[2,32,128], index: 0, kind: input, shape index: {}]   ;;  %s11313_s1 = inlined_call_operand.vmem [shape: bf16[5,128,448], index: 1, kind: input, shape index: {}]   ;;  %s11314_s2 = inlined_call_operand.vmem [shape: f32[1,224], index: 2, kind: input, shape index: {}]   ;;  %s11315_s3 = inlined_call_operand.vmem [shape: bf16[5,224,320], index: 3, kind: input, shape index: {}]   ;;  %s11316_s4 = inlined_call_operand.vmem [shape: f32[1,160], index: 4, kind: input, shape index: {}]   ;;  %s11317_s5 = inlined_call_operand.vmem [shape: bf16[5,160,128], index: 5, kind: input, shape index: {}]   ;;  %s11318_s6 = inlined_call_operand.vmem [shape: f32[1,128], index: 6, kind: input, shape index: {}]   ;;  %s11319_s7 = inlined_call_operand.vmem [shape: bf16[128,128], index: 7, kind: input, shape index: {}]   ;;  %s11320_s8 = inlined_call_operand.vmem [shape: f32[1,128], index: 8, kind: input, shape index: {}]   ;;  %s11321_s9 = inlined_call_operand.vmem [shape: bf16[128,128], index: 9, kind: input, shape index: {}]   ;;  %s11322_s10 = inlined_call_operand.vmem [shape: f32[1,128], index: 10, kind: input, shape index: {}]   ;;  %s11323_s11 = inlined_call_operand.hbm [shape: f32[2,128], index: 11, kind: output, shape index: {}]  }
   0x1   :  { %v5154_v0 = vld [vmem:[%s11313_s1 + $0x1e0] sm:$0xf]  ;;  %v7284_v1 = vld [vmem:[%s11313_s1 + $0x1ec] sm:$0xf0]  ;;  %v7282_v2 = vld [vmem:[%s11313_s1 + $0x1e4] sm:$0xf] }
   0x2   :  { %v5155_v3 = vor.u32 %v7284_v1, %v5154_v0  ;;  %v5156_v4 = vld [vmem:[%s11313_s1 + $0x1f0] sm:$0xf0]  ;;  %v5162_v5 = vld [vmem:[%s11313_s1 + $0x1e8] sm:$0xf]  ;;  %v7285_v6 = vld [vmem:[%s11313_s1 + $0x1f4] sm:$0xf0] }
   0x3   :  { %v5159_v7 = vor.u32 %v7282_v2, %v5156_v4  ;;  %v5163_v8 = vor.u32 %v7285_v6, %v5162_v5  ;;  %v7283_v9 = vld [vmem:[%s11313_s1 + $0x1ec] sm:$0xf]  ;;  %v5164_v10 = vld [vmem:[%s11313_s1 + $0x1f8] sm:$0xf0]  ;;  %v5138_v11 = vld [vmem:[%s11313_s1 + $0x1c0] sm:$0xf] }
   0x4   :  { %342 = vmatpush.bf16.msra.mxu0 %v5155_v3  ;;  %v5167_v12 = vor.u32 %v7283_v9, %v5164_v10  ;;  %v7280_v13 = vld [vmem:[%s11313_s1 + $0x1cc] sm:$0xf0]  ;;  %v7278_v14 = vld [vmem:[%s11313_s1 + $0x1c4] sm:$0xf]  ;;  %v5140_v15 = vld [vmem:[%s11313_s1 + $0x1d0] sm:$0xf0] }
   0x5   :  { %370 = vmatpush.bf16.msra.mxu1 %v5159_v7  ;;  %398 = vmatpush.bf16.msra.mxu2 %v5163_v8  ;;  %v5139_v16 = vor.u32 %v7280_v13, %v5138_v11  ;;  %v5143_v17 = vor.u32 %v7278_v14, %v5140_v15  ;;  %v5146_v18 = vld [vmem:[%s11313_s1 + $0x1c8] sm:$0xf]  ;;  %v7281_v19 = vld [vmem:[%s11313_s1 + $0x1d4] sm:$0xf0]  ;;  %v7279_v20 = vld [vmem:[%s11313_s1 + $0x1cc] sm:$0xf] }
   0x6   :  { %426 = vmatpush.bf16.msra.mxu3 %v5167_v12  ;;  %v5147_v21 = vor.u32 %v7281_v19, %v5146_v18  ;;  %v5148_v22 = vld [vmem:[%s11313_s1 + $0x1d8] sm:$0xf0]  ;;  %v5122_v23 = vld [vmem:[%s11313_s1 + $0x1a0] sm:$0xf]  ;;  %v7276_v24 = vld [vmem:[%s11313_s1 + $0x1ac] sm:$0xf0] }
   0x7   :  { %v5151_v25 = vor.u32 %v7279_v20, %v5148_v22  ;;  %v7274_v26 = vld [vmem:[%s11313_s1 + $0x1a4] sm:$0xf]  ;;  %v5124_v27 = vld [vmem:[%s11313_s1 + $0x1b0] sm:$0xf0]  ;;  %v5130_v28 = vld [vmem:[%s11313_s1 + $0x1a8] sm:$0xf]  ;;  %v5123_v29 = vor.u32 %v7276_v24, %v5122_v23 }
   0x8   :  { %343 = vmatpush.bf16.msra.mxu0 %v5139_v16  ;;  %v7277_v30 = vld [vmem:[%s11313_s1 + $0x1b4] sm:$0xf0]  ;;  %v7275_v31 = vld [vmem:[%s11313_s1 + $0x1ac] sm:$0xf]  ;;  %v5132_v32 = vld [vmem:[%s11313_s1 + $0x1b8] sm:$0xf0]  ;;  %v5127_v33 = vor.u32 %v7274_v26, %v5124_v27 }
   0x9   :  { %371 = vmatpush.bf16.msra.mxu1 %v5143_v17  ;;  %399 = vmatpush.bf16.msra.mxu2 %v5147_v21  ;;  %v5131_v34 = vor.u32 %v7277_v30, %v5130_v28  ;;  %v5106_v35 = vld [vmem:[%s11313_s1 + $0x180] sm:$0xf]  ;;  %v7272_v36 = vld [vmem:[%s11313_s1 + $0x18c] sm:$0xf0]  ;;  %v7270_v37 = vld [vmem:[%s11313_s1 + $0x184] sm:$0xf]  ;;  %v5135_v38 = vor.u32 %v7275_v31, %v5132_v32 }
   0xa   :  { %427 = vmatpush.bf16.msra.mxu3 %v5151_v25  ;;  %v5108_v39 = vld [vmem:[%s11313_s1 + $0x190] sm:$0xf0]  ;;  %v5114_v40 = vld [vmem:[%s11313_s1 + $0x188] sm:$0xf]  ;;  %v7273_v41 = vld [vmem:[%s11313_s1 + $0x194] sm:$0xf0]  ;;  %v5107_v44 = vor.u32 %v7272_v36, %v5106_v35 }
   0xb   :  { %v7271_v42 = vld [vmem:[%s11313_s1 + $0x18c] sm:$0xf]  ;;  %v5116_v43 = vld [vmem:[%s11313_s1 + $0x198] sm:$0xf0]  ;;  %v5111_v45 = vor.u32 %v7270_v37, %v5108_v39  ;;  %v5115_v46 = vor.u32 %v7273_v41, %v5114_v40  ;;  %v5090_v47 = vld [vmem:[%s11313_s1 + $0x160] sm:$0xf] }
   0xc   :  { %344 = vmatpush.bf16.msra.mxu0 %v5123_v29  ;;  %v7268_v48 = vld [vmem:[%s11313_s1 + $0x16c] sm:$0xf0]  ;;  %v7266_v49 = vld [vmem:[%s11313_s1 + $0x164] sm:$0xf]  ;;  %v5119_v50 = vor.u32 %v7271_v42, %v5116_v43  ;;  %v5092_v51 = vld [vmem:[%s11313_s1 + $0x170] sm:$0xf0] }
   0xd   :  { %372 = vmatpush.bf16.msra.mxu1 %v5127_v33  ;;  %400 = vmatpush.bf16.msra.mxu2 %v5131_v34  ;;  %v5098_v52 = vld [vmem:[%s11313_s1 + $0x168] sm:$0xf]  ;;  %v7269_v53 = vld [vmem:[%s11313_s1 + $0x174] sm:$0xf0]  ;;  %v7267_v54 = vld [vmem:[%s11313_s1 + $0x16c] sm:$0xf]  ;;  %v5091_v56 = vor.u32 %v7268_v48, %v5090_v47  ;;  %v5095_v57 = vor.u32 %v7266_v49, %v5092_v51 }
   0xe   :  { %428 = vmatpush.bf16.msra.mxu3 %v5135_v38  ;;  %v5100_v55 = vld [vmem:[%s11313_s1 + $0x178] sm:$0xf0]  ;;  %v5099_v58 = vor.u32 %v7269_v53, %v5098_v52  ;;  %v5074_v59 = vld [vmem:[%s11313_s1 + $0x140] sm:$0xf]  ;;  %v7264_v60 = vld [vmem:[%s11313_s1 + $0x14c] sm:$0xf0] }
   0xf   :  { %v7262_v61 = vld [vmem:[%s11313_s1 + $0x144] sm:$0xf]  ;;  %v5103_v62 = vor.u32 %v7267_v54, %v5100_v55  ;;  %v5076_v63 = vld [vmem:[%s11313_s1 + $0x150] sm:$0xf0]  ;;  %v5082_v0 = vld [vmem:[%s11313_s1 + $0x148] sm:$0xf]  ;;  %v5075_v4 = vor.u32 %v7264_v60, %v5074_v59 }
  0x10   :  { %345 = vmatpush.bf16.msra.mxu0 %v5107_v44  ;;  %v7265_v1 = vld [vmem:[%s11313_s1 + $0x154] sm:$0xf0]  ;;  %v7263_v2 = vld [vmem:[%s11313_s1 + $0x14c] sm:$0xf]  ;;  %v5084_v3 = vld [vmem:[%s11313_s1 + $0x158] sm:$0xf0]  ;;  %v5079_v7 = vor.u32 %v7262_v61, %v5076_v63 }
  0x11   :  { %373 = vmatpush.bf16.msra.mxu1 %v5111_v45  ;;  %401 = vmatpush.bf16.msra.mxu2 %v5115_v46  ;;  %v5058_v5 = vld [vmem:[%s11313_s1 + $0x120] sm:$0xf]  ;;  %v7260_v6 = vld [vmem:[%s11313_s1 + $0x12c] sm:$0xf0]  ;;  %v5083_v8 = vor.u32 %v7265_v1, %v5082_v0  ;;  %v7258_v9 = vld [vmem:[%s11313_s1 + $0x124] sm:$0xf]  ;;  %v5087_v12 = vor.u32 %v7263_v2, %v5084_v3 }
  0x12   :  { %429 = vmatpush.bf16.msra.mxu3 %v5119_v50  ;;  %v5060_v10 = vld [vmem:[%s11313_s1 + $0x130] sm:$0xf0]  ;;  %v5066_v11 = vld [vmem:[%s11313_s1 + $0x128] sm:$0xf]  ;;  %v7261_v13 = vld [vmem:[%s11313_s1 + $0x134] sm:$0xf0]  ;;  %v5059_v19 = vor.u32 %v7260_v6, %v5058_v5 }
  0x13   :  { %v7259_v14 = vld [vmem:[%s11313_s1 + $0x12c] sm:$0xf]  ;;  %v5068_v16 = vld [vmem:[%s11313_s1 + $0x138] sm:$0xf0]  ;;  %v5042_v17 = vld [vmem:[%s11313_s1 + $0x100] sm:$0xf]  ;;  %v5063_v24 = vor.u32 %v7258_v9, %v5060_v10  ;;  %v5067_v25 = vor.u32 %v7261_v13, %v5066_v11 }
  0x14   :  { %346 = vmatpush.bf16.msra.mxu0 %v5091_v56  ;;  %v7924_v15 = vld [vmem:[%s11312_s0 + $0x28] sm:$0x7f]  ;;  %v7935_v18 = vld [vmem:[%s11312_s0 + $0x10] sm:$0x7f]  ;;  %v7254_v21 = vld [vmem:[%s11313_s1 + $0x104] sm:$0xf]  ;;  %v5071_v28 = vor.u32 %v7259_v14, %v5068_v16 }
  0x15   :  { %374 = vmatpush.bf16.msra.mxu1 %v5095_v57  ;;  %402 = vmatpush.bf16.msra.mxu2 %v5099_v58  ;;  %v7256_v20 = vld [vmem:[%s11313_s1 + $0x10c] sm:$0xf0]  ;;  %v122_v22 = vrot.slane %v7924_v15, 1  ;;  %v124_v23 = vrot.slane %v7935_v18, 2  ;;  %v5044_v26 = vld [vmem:[%s11313_s1 + $0x110] sm:$0xf0] }
  0x16   :  { %430 = vmatpush.bf16.msra.mxu3 %v5103_v62  ;;  %v7951_v27 = vld [vmem:[%s11312_s0 + $0x8] sm:$0x7f]  ;;  %v7257_v30 = vld [vmem:[%s11313_s1 + $0x114] sm:$0xf0]  ;;  %v5052_v32 = vld [vmem:[%s11313_s1 + $0x118] sm:$0xf0]  ;;  %v5043_v35 = vor.u32 %v7256_v20, %v5042_v17  ;;  %v5047_v40 = vor.u32 %v7254_v21, %v5044_v26 }
  0x17   :  { %v5050_v29 = vld [vmem:[%s11313_s1 + $0x108] sm:$0xf]  ;;  %v7255_v31 = vld [vmem:[%s11313_s1 + $0x10c] sm:$0xf]  ;;  %v7253_v34 = vld [vmem:[%s11313_s1 + $0xf4] sm:$0xf0]  ;;  %v138_v36 = vsel %vm70_vm0, %v7951_v27, %v122_v22  ;;  %v139_v37 = vsel %vm72_vm1, %v122_v22, %v124_v23 }
  0x18   :  { %347 = vmatpush.bf16.msra.mxu0 %v5075_v4  ;;  %v5290_v33 = vld [vmem:[%s11313_s1 + $0xe8] sm:$0xf]  ;;  %v7250_v38 = vld [vmem:[%s11313_s1 + $0xe4] sm:$0xf]  ;;  %v5284_v39 = vld [vmem:[%s11313_s1 + $0xf0] sm:$0xf0]  ;;  %v5051_v41 = vor.u32 %v7257_v30, %v5050_v29  ;;  %v5055_v42 = vor.u32 %v7255_v31, %v5052_v32  ;;  %v145_v45 = vpack.c.bf16 %v139_v37, %v138_v36 }
  0x19   :  { %375 = vmatpush.bf16.msra.mxu1 %v5079_v7  ;;  %403 = vmatpush.bf16.msra.mxu2 %v5083_v8  ;;  %v5291_v43 = vor.u32 %v7253_v34, %v5290_v33  ;;  %v5274_v44 = vld [vmem:[%s11313_s1 + $0xc8] sm:$0xf]  ;;  %v5287_v46 = vor.u32 %v7250_v38, %v5284_v39  ;;  %v7249_v47 = vld [vmem:[%s11313_s1 + $0xd4] sm:$0xf0]  ;;  %v7251_v48 = vld [vmem:[%s11313_s1 + $0xec] sm:$0xf] }
  0x1a   :  { %431 = vmatpush.bf16.msra.mxu3 %v5087_v12  ;;  %v5292_v49 = vld [vmem:[%s11313_s1 + $0xf8] sm:$0xf0]  ;;  %v7246_v50 = vld [vmem:[%s11313_s1 + $0xc4] sm:$0xf]  ;;  %v5268_v51 = vld [vmem:[%s11313_s1 + $0xd0] sm:$0xf0]  ;;  %v5275_v55 = vor.u32 %v7249_v47, %v5274_v44 }
  0x1b   :  { %v5258_v52 = vld [vmem:[%s11313_s1 + $0xa8] sm:$0xf]  ;;  %v7245_v53 = vld [vmem:[%s11313_s1 + $0xb4] sm:$0xf0]  ;;  %v7247_v54 = vld [vmem:[%s11313_s1 + $0xcc] sm:$0xf]  ;;  %v5295_v56 = vor.u32 %v7251_v48, %v5292_v49  ;;  %v5271_v59 = vor.u32 %v7246_v50, %v5268_v51 }
  0x1c   :  { %348 = vmatpush.bf16.msra.mxu0 %v5059_v19  ;;  %v5276_v57 = vld [vmem:[%s11313_s1 + $0xd8] sm:$0xf0]  ;;  %v7242_v58 = vld [vmem:[%s11313_s1 + $0xa4] sm:$0xf]  ;;  %v5252_v60 = vld [vmem:[%s11313_s1 + $0xb0] sm:$0xf0] }
  0x1d   :  { %376 = vmatpush.bf16.msra.mxu1 %v5063_v24  ;;  %404 = vmatpush.bf16.msra.mxu2 %v5067_v25  ;;  %v5282_v61 = vld [vmem:[%s11313_s1 + $0xe0] sm:$0xf]  ;;  %v7252_v62 = vld [vmem:[%s11313_s1 + $0xec] sm:$0xf0] }
  0x1e   :  { %432 = vmatpush.bf16.msra.mxu3 %v5071_v28  ;;  %v5283_v63 = vor.u32 %v7252_v62, %v5282_v61 }
  0x20   :  { %349 = vmatpush.bf16.msra.mxu0 %v5043_v35 }
  0x21   :  { %377 = vmatpush.bf16.msra.mxu1 %v5047_v40  ;;  %405 = vmatpush.bf16.msra.mxu2 %v5051_v41 }
  0x22   :  { %433 = vmatpush.bf16.msra.mxu3 %v5055_v42 }
  0x23   :  { %350 = vmatmul.bf16.vlgmr.msra.gmra.mxu0 %v145_v45 }
  0x24   :  { %378 = vmatmul.bf16.vlgmr.msra.gmra.mxu1 %v145_v45  ;;  %406 = vmatmul.bf16.vlgmr.msra.gmra.mxu2 %v145_v45 }
  0x25   :  { %670 = vmatpush.bf16.msrb.mxu2 %v5291_v43  ;;  %642 = vmatpush.bf16.msrb.mxu1 %v5287_v46 }
  0x26   :  { %16 = vsyncpa [#allocation3], 0  ;;  %434 = vmatmul.bf16.vlgmr.msra.gmra.mxu3 %v145_v45  ;;  %v8027_v0 = vld [vmem:[%s11312_s0 + $0x30] sm:$0x7f]  ;;  %v8032_v1 = vld [vmem:[%s11312_s0 + $0x18] sm:$0x7f]  ;;  %v5259_v2 = vor.u32 %v7245_v53, %v5258_v52  ;;  %v5279_v3 = vor.u32 %v7247_v54, %v5276_v57  ;;  %v5255_v7 = vor.u32 %v7242_v58, %v5252_v60  ;;  %614 = vmatpush.bf16.msrb.mxu0 %v5283_v63 }
  0x27   :  { %698 = vmatpush.bf16.msrb.mxu3 %v5295_v56  ;;  %v5242_v4 = vld [vmem:[%s11313_s1 + $0x88] sm:$0xf]  ;;  %v5266_v5 = vld [vmem:[%s11313_s1 + $0xc0] sm:$0xf]  ;;  %v7248_v6 = vld [vmem:[%s11313_s1 + $0xcc] sm:$0xf0] }
  0x28   :  { %v7241_v8 = vld [vmem:[%s11313_s1 + $0x94] sm:$0xf0]  ;;  %v7243_v9 = vld [vmem:[%s11313_s1 + $0xac] sm:$0xf]  ;;  %v5260_v10 = vld [vmem:[%s11313_s1 + $0xb8] sm:$0xf0]  ;;  %v5267_v11 = vor.u32 %v7248_v6, %v5266_v5 }
  0x29   :  { %671 = vmatpush.bf16.msrb.mxu2 %v5275_v55  ;;  %643 = vmatpush.bf16.msrb.mxu1 %v5271_v59  ;;  %v126_v12 = vrot.slane %v8027_v0, 3  ;;  %v128_v13 = vrot.slane %v8032_v1, 4  ;;  %v7238_v14 = vld [vmem:[%s11313_s1 + $0x84] sm:$0xf]  ;;  %v5236_v16 = vld [vmem:[%s11313_s1 + $0x90] sm:$0xf0]  ;;  %v5243_v20 = vor.u32 %v7241_v8, %v5242_v4  ;;  %v5263_v21 = vor.u32 %v7243_v9, %v5260_v10 }
  0x2a   :  { %vm74_vm2 = vcmask 1044480   ;;  %vm76_vm3 = vcmask 1043456   ;;  %v5250_v17 = vld [vmem:[%s11313_s1 + $0xa0] sm:$0xf]  ;;  %v7244_v19 = vld [vmem:[%s11313_s1 + $0xac] sm:$0xf0]  ;;  %v5239_v24 = vor.u32 %v7238_v14, %v5236_v16  ;;  %615 = vmatpush.bf16.msrb.mxu0 %v5267_v11 }
  0x2b   :  { %699 = vmatpush.bf16.msrb.mxu3 %v5279_v3  ;;  %v5226_v22 = vld [vmem:[%s11313_s1 + $0x68] sm:$0xf]  ;;  %v7237_v25 = vld [vmem:[%s11313_s1 + $0x74] sm:$0xf0]  ;;  %v7239_v26 = vld [vmem:[%s11313_s1 + $0x8c] sm:$0xf]  ;;  %v5251_v29 = vor.u32 %v7244_v19, %v5250_v17  ;;  %v140_v30 = vsel %vm74_vm2, %v124_v23, %v126_v12  ;;  %v141_v31 = vsel %vm76_vm3, %v126_v12, %v128_v13 }
  0x2c   :  { %v5244_v28 = vld [vmem:[%s11313_s1 + $0x98] sm:$0xf0]  ;;  %v7234_v32 = vld [vmem:[%s11313_s1 + $0x64] sm:$0xf]  ;;  %v5220_v33 = vld [vmem:[%s11313_s1 + $0x70] sm:$0xf0]  ;;  %v5227_v34 = vor.u32 %v7237_v25, %v5226_v22  ;;  %v146_v38 = vpack.c.bf16 %v141_v31, %v140_v30 }
  0x2d   :  { %672 = vmatpush.bf16.msrb.mxu2 %v5259_v2  ;;  %644 = vmatpush.bf16.msrb.mxu1 %v5255_v7  ;;  %v5247_v35 = vor.u32 %v7239_v26, %v5244_v28  ;;  %v5210_v23 = vld [vmem:[%s11313_s1 + $0x48] sm:$0xf]  ;;  %v5234_v36 = vld [vmem:[%s11313_s1 + $0x80] sm:$0xf]  ;;  %v7240_v37 = vld [vmem:[%s11313_s1 + $0x8c] sm:$0xf0]  ;;  %v5223_v39 = vor.u32 %v7234_v32, %v5220_v33 }
  0x2e   :  { %v7233_v40 = vld [vmem:[%s11313_s1 + $0x54] sm:$0xf0]  ;;  %v7235_v41 = vld [vmem:[%s11313_s1 + $0x6c] sm:$0xf]  ;;  %v5228_v42 = vld [vmem:[%s11313_s1 + $0x78] sm:$0xf0]  ;;  %616 = vmatpush.bf16.msrb.mxu0 %v5251_v29  ;;  %v5235_v47 = vor.u32 %v7240_v37, %v5234_v36 }
  0x2f   :  { %700 = vmatpush.bf16.msrb.mxu3 %v5263_v21  ;;  %v7230_v43 = vld [vmem:[%s11313_s1 + $0x44] sm:$0xf]  ;;  %v5204_v44 = vld [vmem:[%s11313_s1 + $0x50] sm:$0xf0]  ;;  %v8117_v45 = vld [vmem:[%s11312_s0 + $0x38] sm:$0x7f]  ;;  %v5211_v48 = vor.u32 %v7233_v40, %v5210_v23  ;;  %v5231_v49 = vor.u32 %v7235_v41, %v5228_v42 }
  0x30   :  { %v8122_v46 = vld [vmem:[%s11312_s0 + $0x1] sm:$0x7f]  ;;  %v5207_v50 = vor.u32 %v7230_v43, %v5204_v44  ;;  %v7236_v52 = vld [vmem:[%s11313_s1 + $0x6c] sm:$0xf0]  ;;  %v130_v53 = vrot.slane %v8117_v45, 5  ;;  %vm78_vm4 = vcmask 1042432  }
  0x31   :  { %673 = vmatpush.bf16.msrb.mxu2 %v5243_v20  ;;  %645 = vmatpush.bf16.msrb.mxu1 %v5239_v24  ;;  %v5218_v51 = vld [vmem:[%s11313_s1 + $0x60] sm:$0xf]  ;;  %v133_v54 = vrot.slane %v8122_v46, 6  ;;  %v5194_v55 = vld [vmem:[%s11313_s1 + $0x28] sm:$0xf]  ;;  %vm80_vm5 = vcmask 1041408  }
  0x32   :  { %617 = vmatpush.bf16.msrb.mxu0 %v5235_v47  ;;  %v7229_v56 = vld [vmem:[%s11313_s1 + $0x34] sm:$0xf0]  ;;  %v7231_v57 = vld [vmem:[%s11313_s1 + $0x4c] sm:$0xf]  ;;  %v5219_v58 = vor.u32 %v7236_v52, %v5218_v51  ;;  %v5212_v60 = vld [vmem:[%s11313_s1 + $0x58] sm:$0xf0]  ;;  %v142_v22 = vsel %vm78_vm4, %v128_v13, %v130_v53 }
  0x33   :  { %701 = vmatpush.bf16.msrb.mxu3 %v5247_v35  ;;  %355 = vmatmul.bf16.gmra.mxu0 %v146_v38  ;;  %v5195_v59 = vor.u32 %v7229_v56, %v5194_v55  ;;  %v5202_v61 = vld [vmem:[%s11313_s1 + $0x40] sm:$0xf]  ;;  %v7232_v62 = vld [vmem:[%s11313_s1 + $0x4c] sm:$0xf0]  ;;  %v5215_v63 = vor.u32 %v7231_v57, %v5212_v60  ;;  %v7226_v2 = vld [vmem:[%s11313_s1 + $0x24] sm:$0xf]  ;;  %v143_v24 = vsel %vm80_vm5, %v130_v53, %v133_v54 }
  0x34   :  { %383 = vmatmul.bf16.gmra.mxu1 %v146_v38  ;;  %411 = vmatmul.bf16.gmra.mxu2 %v146_v38  ;;  %v5188_v3 = vld [vmem:[%s11313_s1 + $0x30] sm:$0xf0]  ;;  %v5178_v4 = vld [vmem:[%s11313_s1 + $0x8] sm:$0xf]  ;;  %v7225_v6 = vld [vmem:[%s11313_s1 + $0x14] sm:$0xf0]  ;;  %v5203_v9 = vor.u32 %v7232_v62, %v5202_v61  ;;  %v147_v30 = vpack.c.bf16 %v143_v24, %v142_v22 }
  0x35   :  { %674 = vmatpush.bf16.msrb.mxu2 %v5227_v34  ;;  %646 = vmatpush.bf16.msrb.mxu1 %v5223_v39  ;;  %v5191_v5 = vor.u32 %v7226_v2, %v5188_v3  ;;  %v7227_v7 = vld [vmem:[%s11313_s1 + $0x2c] sm:$0xf]  ;;  %v5196_v8 = vld [vmem:[%s11313_s1 + $0x38] sm:$0xf0]  ;;  %v5186_v10 = vld [vmem:[%s11313_s1 + $0x20] sm:$0xf]  ;;  %v5179_v11 = vor.u32 %v7225_v6, %v5178_v4 }
  0x36   :  { %439 = vmatmul.bf16.gmra.mxu3 %v146_v38  ;;  %618 = vmatpush.bf16.msrb.mxu0 %v5219_v58  ;;  %v5199_v12 = vor.u32 %v7227_v7, %v5196_v8  ;;  %v7228_v14 = vld [vmem:[%s11313_s1 + $0x2c] sm:$0xf0]  ;;  %v7222_v16 = vld [vmem:[%s11313_s1 + $0x4] sm:$0xf]  ;;  %v5172_v17 = vld [vmem:[%s11313_s1 + $0x10] sm:$0xf0] }
  0x37   :  { %702 = vmatpush.bf16.msrb.mxu3 %v5231_v49  ;;  %v5175_v19 = vor.u32 %v7222_v16, %v5172_v17  ;;  %v7223_v20 = vld [vmem:[%s11313_s1 + $0xc] sm:$0xf]  ;;  %v5180_v21 = vld [vmem:[%s11313_s1 + $0x18] sm:$0xf0]  ;;  %v5187_v25 = vor.u32 %v7228_v14, %v5186_v10  ;;  %v5170_v26 = vld [vmem:[%s11313_s1] sm:$0xf] }
  0x38   :  { %v7224_v28 = vld [vmem:[%s11313_s1 + $0xc] sm:$0xf0]  ;;  %v5183_v29 = vor.u32 %v7223_v20, %v5180_v21  ;;  %v8201_v31 = vld [vmem:[%s11312_s0 + $0x21] sm:$0x7f]  ;;  %v5451_v32 = vld [vmem:[%s11313_s1 + $0x2e8] sm:$0xf] }
  0x39   :  { %675 = vmatpush.bf16.msrb.mxu2 %v5211_v48  ;;  %647 = vmatpush.bf16.msrb.mxu1 %v5207_v50  ;;  %v5171_v13 = vor.u32 %v7224_v28, %v5170_v26  ;;  %v7317_v33 = vld [vmem:[%s11313_s1 + $0x2f4] sm:$0xf0]  ;;  %v7314_v34 = vld [vmem:[%s11313_s1 + $0x2e4] sm:$0xf]  ;;  %v5445_v23 = vld [vmem:[%s11313_s1 + $0x2f0] sm:$0xf0] }
  0x3a   :  { %619 = vmatpush.bf16.msrb.mxu0 %v5203_v9  ;;  %v5452_v35 = vor.u32 %v7317_v33, %v5451_v32  ;;  %v5435_v36 = vld [vmem:[%s11313_s1 + $0x2c8] sm:$0xf]  ;;  %v7313_v37 = vld [vmem:[%s11313_s1 + $0x2d4] sm:$0xf0]  ;;  %v5448_v38 = vor.u32 %v7314_v34, %v5445_v23  ;;  %v7315_v39 = vld [vmem:[%s11313_s1 + $0x2ec] sm:$0xf] }
  0x3b   :  { %703 = vmatpush.bf16.msrb.mxu3 %v5215_v63  ;;  %v5453_v40 = vld [vmem:[%s11313_s1 + $0x2f8] sm:$0xf0]  ;;  %v7310_v41 = vld [vmem:[%s11313_s1 + $0x2c4] sm:$0xf]  ;;  %v136_v42 = vrot.slane %v8201_v31, 7  ;;  %v5436_v43 = vor.u32 %v7313_v37, %v5435_v36  ;;  %vm82_vm6 = vcmask 1040384  }
  0x3c   :  { %v5456_v44 = vor.u32 %v7315_v39, %v5453_v40  ;;  %v5429_v47 = vld [vmem:[%s11313_s1 + $0x2d0] sm:$0xf0]  ;;  %v5003_v51 = vld [vmem:[%s11312_s0 + $0x20] sm:$0x7f]  ;;  %v53_v52 = vrot.slane %v7951_v27, 2  ;;  %v59_v20 = vrot.slane %v7935_v18, 4 }
  0x3d   :  { %676 = vmatpush.bf16.msrb.mxu2 %v5195_v59  ;;  %648 = vmatpush.bf16.msrb.mxu1 %v5191_v5  ;;  %v5432_v48 = vor.u32 %v7310_v41, %v5429_v47  ;;  %v144_v49 = vsel %vm82_vm6, %v133_v54, %v136_v42  ;;  %v50_v53 = vrot.slane %v5003_v51, 1  ;;  %v5419_v55 = vld [vmem:[%s11313_s1 + $0x2a8] sm:$0xf]  ;;  %v7309_v54 = vld [vmem:[%s11313_s1 + $0x2b4] sm:$0xf0]  ;;  %vm1831_vm7 = vcmask 261120  }
  0x3e   :  { %620 = vmatpush.bf16.msrb.mxu0 %v5187_v25  ;;  %v148_v50 = vpack.c.bf16 %v144_v49, %v144_v49  ;;  %v7311_v56 = vld [vmem:[%s11313_s1 + $0x2cc] sm:$0xf]  ;;  %v5420_v57 = vor.u32 %v7309_v54, %v5419_v55  ;;  %v5437_v58 = vld [vmem:[%s11313_s1 + $0x2d8] sm:$0xf0]  ;;  %v7306_v59 = vld [vmem:[%s11313_s1 + $0x2a4] sm:$0xf] }
  0x3f   :  { %704 = vmatpush.bf16.msrb.mxu3 %v5199_v12  ;;  %v5413_v60 = vld [vmem:[%s11313_s1 + $0x2b0] sm:$0xf0]  ;;  %v5440_v61 = vor.u32 %v7311_v56, %v5437_v58  ;;  %v5403_v63 = vld [vmem:[%s11313_s1 + $0x288] sm:$0xf]  ;;  %v7305_v2 = vld [vmem:[%s11313_s1 + $0x294] sm:$0xf0]  ;;  %v73_v12 = vsel %vm72_vm1, %v50_v53, %v53_v52 }
  0x40   :  { %v5416_v62 = vor.u32 %v7306_v59, %v5413_v60  ;;  %v7307_v3 = vld [vmem:[%s11313_s1 + $0x2ac] sm:$0xf]  ;;  %v5404_v4 = vor.u32 %v7305_v2, %v5403_v63  ;;  %v5421_v5 = vld [vmem:[%s11313_s1 + $0x2b8] sm:$0xf0]  ;;  %v7302_v6 = vld [vmem:[%s11313_s1 + $0x284] sm:$0xf] }
  0x41   :  { %677 = vmatpush.bf16.msrb.mxu2 %v5179_v11  ;;  %649 = vmatpush.bf16.msrb.mxu1 %v5175_v19  ;;  %v5397_v7 = vld [vmem:[%s11313_s1 + $0x290] sm:$0xf0]  ;;  %v40_v8 = vld [vmem:[%s11312_s0] sm:$0x7f]  ;;  %v5424_v9 = vor.u32 %v7307_v3, %v5421_v5  ;;  %v7316_v17 = vld [vmem:[%s11313_s1 + $0x2ec] sm:$0xf0] }
  0x42   :  { %621 = vmatpush.bf16.msrb.mxu0 %v5171_v13  ;;  %v5400_v10 = vor.u32 %v7302_v6, %v5397_v7  ;;  %v71_v11 = vsel %vm70_vm0, %v40_v8, %v50_v53  ;;  %v5443_v16 = vld [vmem:[%s11313_s1 + $0x2e0] sm:$0xf]  ;;  %v56_v19 = vrot.slane %v7924_v15, 3  ;;  %v5387_v22 = vld [vmem:[%s11313_s1 + $0x268] sm:$0xf]  ;;  %v65_v56 = vrot.slane %v8032_v1, 6 }
  0x43   :  { %705 = vmatpush.bf16.msrb.mxu3 %v5183_v29  ;;  %360 = vmatmul.bf16.gmra.mxu0 %v147_v30  ;;  %v84_v14 = vpack.c.bf16 %v73_v12, %v71_v11  ;;  %v5444_v21 = vor.u32 %v7316_v17, %v5443_v16  ;;  %v7301_v24 = vld [vmem:[%s11313_s1 + $0x274] sm:$0xf0]  ;;  %v7303_v25 = vld [vmem:[%s11313_s1 + $0x28c] sm:$0xf]  ;;  %v5405_v15 = vld [vmem:[%s11313_s1 + $0x298] sm:$0xf0] }
  0x44   :  { %388 = vmatmul.bf16.gmra.mxu1 %v147_v30  ;;  %416 = vmatmul.bf16.gmra.mxu2 %v147_v30  ;;  %v5388_v26 = vor.u32 %v7301_v24, %v5387_v22  ;;  %v5427_v28 = vld [vmem:[%s11313_s1 + $0x2c0] sm:$0xf]  ;;  %v7312_v29 = vld [vmem:[%s11313_s1 + $0x2cc] sm:$0xf0]  ;;  %v7298_v32 = vld [vmem:[%s11313_s1 + $0x264] sm:$0xf]  ;;  %v77_v51 = vsel %vm76_vm3, %v56_v19, %v59_v20 }
  0x45   :  { %1004 = vmatpush.bf16.msra.mxu2 %v5452_v35  ;;  %976 = vmatpush.bf16.msra.mxu1 %v5448_v38  ;;  %v5428_v13 = vor.u32 %v7312_v29, %v5427_v28  ;;  %v5381_v33 = vld [vmem:[%s11313_s1 + $0x270] sm:$0xf0]  ;;  %v5371_v34 = vld [vmem:[%s11313_s1 + $0x248] sm:$0xf]  ;;  %v7297_v23 = vld [vmem:[%s11313_s1 + $0x254] sm:$0xf0] }
  0x46   :  { %444 = vmatmul.bf16.gmra.mxu3 %v147_v30  ;;  %948 = vmatpush.bf16.msra.mxu0 %v5444_v21  ;;  %v5408_v30 = vor.u32 %v7303_v25, %v5405_v15  ;;  %v5384_v35 = vor.u32 %v7298_v32, %v5381_v33  ;;  %v7299_v36 = vld [vmem:[%s11313_s1 + $0x26c] sm:$0xf]  ;;  %v5389_v37 = vld [vmem:[%s11313_s1 + $0x278] sm:$0xf0]  ;;  %v5372_v38 = vor.u32 %v7297_v23, %v5371_v34  ;;  %v5411_v40 = vld [vmem:[%s11313_s1 + $0x2a0] sm:$0xf] }
  0x47   :  { %1032 = vmatpush.bf16.msra.mxu3 %v5456_v44  ;;  %v5392_v39 = vor.u32 %v7299_v36, %v5389_v37  ;;  %v7308_v41 = vld [vmem:[%s11313_s1 + $0x2ac] sm:$0xf0]  ;;  %v5365_v44 = vld [vmem:[%s11313_s1 + $0x250] sm:$0xf0]  ;;  %v5395_v47 = vld [vmem:[%s11313_s1 + $0x280] sm:$0xf] }
  0x48   :  { %v5412_v42 = vor.u32 %v7308_v41, %v5411_v40  ;;  %v5379_v54 = vld [vmem:[%s11313_s1 + $0x260] sm:$0xf]  ;;  %v7300_v27 = vld [vmem:[%s11313_s1 + $0x26c] sm:$0xf0]  ;;  %v5355_v58 = vld [vmem:[%s11313_s1 + $0x228] sm:$0xf] }
  0x49   :  { %1005 = vmatpush.bf16.msra.mxu2 %v5436_v43  ;;  %977 = vmatpush.bf16.msra.mxu1 %v5432_v48  ;;  %v7294_v43 = vld [vmem:[%s11313_s1 + $0x244] sm:$0xf]  ;;  %v7304_v48 = vld [vmem:[%s11313_s1 + $0x28c] sm:$0xf0]  ;;  %v7293_v59 = vld [vmem:[%s11313_s1 + $0x234] sm:$0xf0] }
  0x4a   :  { %949 = vmatpush.bf16.msra.mxu0 %v5428_v13  ;;  %v5368_v49 = vor.u32 %v7294_v43, %v5365_v44  ;;  %v5396_v53 = vor.u32 %v7304_v48, %v5395_v47  ;;  %v7295_v60 = vld [vmem:[%s11313_s1 + $0x24c] sm:$0xf]  ;;  %v5363_v63 = vld [vmem:[%s11313_s1 + $0x240] sm:$0xf]  ;;  %v7296_v2 = vld [vmem:[%s11313_s1 + $0x24c] sm:$0xf0] }
  0x4b   :  { %1033 = vmatpush.bf16.msra.mxu3 %v5440_v61  ;;  %v5356_v61 = vor.u32 %v7293_v59, %v5355_v58  ;;  %v7290_v5 = vld [vmem:[%s11313_s1 + $0x224] sm:$0xf]  ;;  %v5349_v6 = vld [vmem:[%s11313_s1 + $0x230] sm:$0xf0]  ;;  %v5339_v7 = vld [vmem:[%s11313_s1 + $0x208] sm:$0xf] }
  0x4c   :  { %v5352_v8 = vor.u32 %v7290_v5, %v5349_v6  ;;  %v5357_v11 = vld [vmem:[%s11313_s1 + $0x238] sm:$0xf0]  ;;  %v5347_v16 = vld [vmem:[%s11313_s1 + $0x220] sm:$0xf]  ;;  %v7292_v17 = vld [vmem:[%s11313_s1 + $0x22c] sm:$0xf0] }
  0x4d   :  { %1006 = vmatpush.bf16.msra.mxu2 %v5420_v57  ;;  %978 = vmatpush.bf16.msra.mxu1 %v5416_v62  ;;  %v5380_v57 = vor.u32 %v7300_v27, %v5379_v54  ;;  %v5373_v62 = vld [vmem:[%s11313_s1 + $0x258] sm:$0xf0]  ;;  %v5331_v25 = vld [vmem:[%s11313_s1 + $0x200] sm:$0xf]  ;;  %v5333_v28 = vld [vmem:[%s11313_s1 + $0x210] sm:$0xf0] }
  0x4e   :  { %950 = vmatpush.bf16.msra.mxu0 %v5412_v42  ;;  %v5376_v3 = vor.u32 %v7295_v60, %v5373_v62  ;;  %v7287_v29 = vld [vmem:[%s11313_s1 + $0x20c] sm:$0xf]  ;;  %v5612_v33 = vld [vmem:[%s11313_s1 + $0x3e8] sm:$0xf]  ;;  %v7349_v34 = vld [vmem:[%s11313_s1 + $0x3f4] sm:$0xf0] }
  0x4f   :  { %1034 = vmatpush.bf16.msra.mxu3 %v5424_v9  ;;  %v7289_v9 = vld [vmem:[%s11313_s1 + $0x214] sm:$0xf0]  ;;  %v68_v23 = vrot.slane %v8117_v45, 7  ;;  %v7346_v36 = vld [vmem:[%s11313_s1 + $0x3e4] sm:$0xf]  ;;  %v730_v58 = vrot.slane %v8032_v1, 2 }
  0x50   :  { %v5340_v12 = vor.u32 %v7289_v9, %v5339_v7  ;;  %v5606_v37 = vld [vmem:[%s11313_s1 + $0x3f0] sm:$0xf0]  ;;  %v7345_v40 = vld [vmem:[%s11313_s1 + $0x3d4] sm:$0xf0]  ;;  %v7347_v41 = vld [vmem:[%s11313_s1 + $0x3ec] sm:$0xf] }
  0x51   :  { %1007 = vmatpush.bf16.msra.mxu2 %v5404_v4  ;;  %979 = vmatpush.bf16.msra.mxu1 %v5400_v10  ;;  %v5364_v4 = vor.u32 %v7296_v2, %v5363_v63  ;;  %v7291_v10 = vld [vmem:[%s11313_s1 + $0x22c] sm:$0xf]  ;;  %v5614_v42 = vld [vmem:[%s11313_s1 + $0x3f8] sm:$0xf0]  ;;  %v83_v47 = vsel %vm82_vm6, %v65_v56, %v68_v23  ;;  %v7338_v59 = vld [vmem:[%s11313_s1 + $0x3a4] sm:$0xf] }
  0x52   :  { %951 = vmatpush.bf16.msra.mxu0 %v5396_v53  ;;  %v5617_v44 = vor.u32 %v7347_v41, %v5614_v42  ;;  %v87_v48 = vpack.c.bf16 %v83_v47, %v83_v47  ;;  %v5580_v53 = vld [vmem:[%s11313_s1 + $0x3a8] sm:$0xf]  ;;  %v7343_v54 = vld [vmem:[%s11313_s1 + $0x3cc] sm:$0xf]  ;;  %v5574_v60 = vld [vmem:[%s11313_s1 + $0x3b0] sm:$0xf0] }
  0x53   :  { %365 = vmatmul.bf16.gmra.mxu0 %v148_v50  ;;  %1035 = vmatpush.bf16.msra.mxu3 %v5408_v30  ;;  %v5341_v30 = vld [vmem:[%s11313_s1 + $0x218] sm:$0xf0]  ;;  %v5577_v62 = vor.u32 %v7338_v59, %v5574_v60  ;;  %v7339_v1 = vld [vmem:[%s11313_s1 + $0x3ac] sm:$0xf]  ;;  %v7334_v9 = vld [vmem:[%s11313_s1 + $0x384] sm:$0xf] }
  0x54   :  { %393 = vmatmul.bf16.gmra.mxu1 %v148_v50  ;;  %421 = vmatmul.bf16.gmra.mxu2 %v148_v50  ;;  %v5344_v32 = vor.u32 %v7287_v29, %v5341_v30  ;;  %v5582_v63 = vld [vmem:[%s11313_s1 + $0x3b8] sm:$0xf0]  ;;  %v732_v29 = vrot.slane %v8117_v45, 3  ;;  %v734_v30 = vrot.slane %v8122_v46, 4  ;;  %v5572_v41 = vld [vmem:[%s11313_s1 + $0x3a0] sm:$0xf] }
  0x55   :  { %1008 = vmatpush.bf16.msra.mxu2 %v5388_v26  ;;  %980 = vmatpush.bf16.msra.mxu1 %v5384_v35  ;;  %v7288_v26 = vld [vmem:[%s11313_s1 + $0x20c] sm:$0xf0]  ;;  %v5613_v35 = vor.u32 %v7349_v34, %v5612_v33  ;;  %v7330_v33 = vld [vmem:[%s11313_s1 + $0x364] sm:$0xf]  ;;  %v5542_v34 = vld [vmem:[%s11313_s1 + $0x370] sm:$0xf0] }
  0x56   :  { %449 = vmatmul.bf16.gmra.mxu3 %v148_v50  ;;  %v75_v50 = vsel %vm74_vm2, %v53_v52, %v56_v19  ;;  %v62_v52 = vrot.slane %v8027_v0, 5  ;;  %952 = vmatpush.bf16.msra.mxu0 %v5380_v57  ;;  %v5348_v19 = vor.u32 %v7292_v17, %v5347_v16  ;;  %v5332_v15 = vor.u32 %v7288_v26, %v5331_v25  ;;  %v5548_v16 = vld [vmem:[%s11313_s1 + $0x368] sm:$0xf]  ;;  %v7333_v17 = vld [vmem:[%s11313_s1 + $0x374] sm:$0xf0]  ;;  %s7695_s14 = smov [#allocation2]  }
  0x57   :  { %1036 = vmatpush.bf16.msra.mxu3 %v5392_v39  ;;  %v85_v55 = vpack.c.bf16 %v77_v51, %v75_v50  ;;  %v5609_v39 = vor.u32 %v7346_v36, %v5606_v37  ;;  %v5590_v50 = vld [vmem:[%s11313_s1 + $0x3d0] sm:$0xf0]  ;;  %v728_v57 = vrot.slane %v8027_v0, 1  ;;  %v7337_v0 = vld [vmem:[%s11313_s1 + $0x394] sm:$0xf0]  ;;  %v5545_v23 = vor.u32 %v7330_v33, %v5542_v34  ;;  %s4992_s15 = sshll.u32 %s7695_s14, 4  ;;  %s4993_s15 = int_to_ptr.vmem [resolvable:$true] %s4992_s15 }
  0x58   :  { %v79_v21 = vsel %vm78_vm4, %v59_v20, %v62_v52  ;;  %v81_v22 = vsel %vm80_vm5, %v62_v52, %v65_v56  ;;  %v7286_v20 = vld [vmem:[%s11313_s1 + $0x204] sm:$0xf]  ;;  %v5598_v52 = vld [vmem:[%s11313_s1 + $0x3d8] sm:$0xf0]  ;;  %v5588_v26 = vld [vmem:[%s11313_s1 + $0x3c0] sm:$0xf] }
  0x59   :  { %1009 = vmatpush.bf16.msra.mxu2 %v5372_v38  ;;  %981 = vmatpush.bf16.msra.mxu1 %v5368_v49  ;;  %v86_v24 = vpack.c.bf16 %v81_v22, %v79_v21  ;;  %v5336_v13 = vor.u32 %v7286_v20, %v5333_v28  ;;  %v5596_v38 = vld [vmem:[%s11313_s1 + $0x3c8] sm:$0xf]  ;;  %v7342_v49 = vld [vmem:[%s11313_s1 + $0x3c4] sm:$0xf]  ;;  %v5601_v56 = vor.u32 %v7343_v54, %v5598_v52  ;;  %v5566_v22 = vld [vmem:[%s11313_s1 + $0x398] sm:$0xf0] }
  0x5a   :  { %953 = vmatpush.bf16.msra.mxu0 %v5364_v4  ;;  %v5597_v43 = vor.u32 %v7345_v40, %v5596_v38  ;;  %v5593_v51 = vor.u32 %v7342_v49, %v5590_v50  ;;  %v744_v4 = vsel %vm70_vm0, %v7935_v18, %v728_v57  ;;  %v745_v5 = vsel %vm72_vm1, %v728_v57, %v730_v58  ;;  %v5604_v18 = vld [vmem:[%s11313_s1 + $0x3e0] sm:$0xf]  ;;  %v7344_v20 = vld [vmem:[%s11313_s1 + $0x3cc] sm:$0xf0]  ;;  %v7329_v36 = vld [vmem:[%s11313_s1 + $0x354] sm:$0xf0] }
  0x5b   :  { %1037 = vmatpush.bf16.msra.mxu3 %v5376_v3  ;;  %v5585_v3 = vor.u32 %v7339_v1, %v5582_v63  ;;  %v751_v6 = vpack.c.bf16 %v745_v5, %v744_v4  ;;  %v5549_v21 = vor.u32 %v7333_v17, %v5548_v16  ;;  %v7331_v37 = vld [vmem:[%s11313_s1 + $0x36c] sm:$0xf]  ;;  %v5550_v38 = vld [vmem:[%s11313_s1 + $0x378] sm:$0xf0]  ;;  %v7340_v42 = vld [vmem:[%s11313_s1 + $0x3ac] sm:$0xf0] }
  0x5c   :  { %v5553_v40 = vor.u32 %v7331_v37, %v5550_v38  ;;  %v5573_v47 = vor.u32 %v7340_v42, %v5572_v41  ;;  %v5556_v50 = vld [vmem:[%s11313_s1 + $0x380] sm:$0xf]  ;;  %v7326_v52 = vld [vmem:[%s11313_s1 + $0x344] sm:$0xf]  ;;  %v7332_v59 = vld [vmem:[%s11313_s1 + $0x36c] sm:$0xf0] }
  0x5d   :  { %1010 = vmatpush.bf16.msra.mxu2 %v5356_v61  ;;  %982 = vmatpush.bf16.msra.mxu1 %v5352_v8  ;;  %v5564_v61 = vld [vmem:[%s11313_s1 + $0x388] sm:$0xf]  ;;  %v7327_v1 = vld [vmem:[%s11313_s1 + $0x34c] sm:$0xf]  ;;  %v5524_v5 = vld [vmem:[%s11313_s1 + $0x340] sm:$0xf] }
  0x5e   :  { %954 = vmatpush.bf16.msra.mxu0 %v5348_v19  ;;  %v5565_v2 = vor.u32 %v7337_v0, %v5564_v61  ;;  %v7335_v19 = vld [vmem:[%s11313_s1 + $0x38c] sm:$0xf]  ;;  %v7325_v0 = vld [vmem:[%s11313_s1 + $0x334] sm:$0xf0]  ;;  %v7322_v16 = vld [vmem:[%s11313_s1 + $0x324] sm:$0xf] }
  0x5f   :  { %v5569_v25 = vor.u32 %v7335_v19, %v5566_v22  ;;  %v8596_v60 = vld [vmem:[%s11312_s0 + $0x9] sm:$0x7f]  ;;  %v5510_v17 = vld [vmem:[%s11313_s1 + $0x330] sm:$0xf0]  ;;  %v7321_v22 = vld [vmem:[%s11313_s1 + $0x314] sm:$0xf0] }
  0x60   :  { %v5500_v19 = vld [vmem:[%s11313_s1 + $0x308] sm:$0xf]  ;;  %v7324_v33 = vld [vmem:[%s11313_s1 + $0x32c] sm:$0xf0]  ;;  %v5492_v38 = vld [vmem:[%s11313_s1 + $0x300] sm:$0xf] }
  0x61   :  { %1011 = vmatpush.bf16.msra.mxu2 %v5340_v12  ;;  %983 = vmatpush.bf16.msra.mxu1 %v5336_v13  ;;  %v7348_v12 = vld [vmem:[%s11313_s1 + $0x3ec] sm:$0xf0]  ;;  %v5589_v13 = vor.u32 %v7344_v20, %v5588_v26  ;;  %v5518_v26 = vld [vmem:[%s11313_s1 + $0x338] sm:$0xf0]  ;;  %v5501_v20 = vor.u32 %v7321_v22, %v5500_v19  ;;  %vm2395_vm8 = vcmask 785408  }
  0x62   :  { %955 = vmatpush.bf16.msra.mxu0 %v5332_v15 }
  0x63   :  { %622 = vmatmul.bf16.vlgmr.msrb.gmra.mxu0 %v84_v14 }
  0x64   :  { %650 = vmatmul.bf16.vlgmr.msrb.gmra.mxu1 %v84_v14  ;;  %678 = vmatmul.bf16.vlgmr.msrb.gmra.mxu2 %v84_v14 }
  0x65   :  { %1366 = vmatpush.bf16.msrb.mxu2 %v5613_v35  ;;  %1338 = vmatpush.bf16.msrb.mxu1 %v5609_v39  ;;  %v5532_v35 = vld [vmem:[%s11313_s1 + $0x348] sm:$0xf] }
  0x66   :  { %706 = vmatmul.bf16.vlgmr.msrb.gmra.mxu3 %v84_v14  ;;  %v5360_v14 = vor.u32 %v7291_v10, %v5357_v11  ;;  %v5558_v10 = vld [vmem:[%s11313_s1 + $0x390] sm:$0xf0]  ;;  %v5533_v39 = vor.u32 %v7329_v36, %v5532_v35 }
  0x67   :  { %v5561_v11 = vor.u32 %v7334_v9, %v5558_v10 }
  0x68   :  { %1038 = vmatpush.bf16.msra.mxu3 %v5360_v14  ;;  %v5605_v14 = vor.u32 %v7348_v12, %v5604_v18  ;;  %v739_v18 = vrot.slane %v8596_v60, 6 }
  0x69   :  { %1367 = vmatpush.bf16.msrb.mxu2 %v5597_v43  ;;  %1339 = vmatpush.bf16.msrb.mxu1 %v5593_v51  ;;  %v746_v43 = vsel %vm74_vm2, %v730_v58, %v732_v29  ;;  %v7336_v51 = vld [vmem:[%s11313_s1 + $0x38c] sm:$0xf0]  ;;  %v5540_v58 = vld [vmem:[%s11313_s1 + $0x360] sm:$0xf] }
  0x6a   :  { %1310 = vmatpush.bf16.msrb.mxu0 %v5605_v14  ;;  %v5557_v54 = vor.u32 %v7336_v51, %v5556_v50  ;;  %v5541_v61 = vor.u32 %v7332_v59, %v5540_v58 }
  0x6c   :  { %1039 = vmatpush.bf16.msra.mxu3 %v5344_v32 }
  0x6d   :  { %1340 = vmatpush.bf16.msrb.mxu1 %v5577_v62  ;;  %v5516_v62 = vld [vmem:[%s11313_s1 + $0x328] sm:$0xf] }
  0x6e   :  { %1311 = vmatpush.bf16.msrb.mxu0 %v5589_v13  ;;  %v5517_v63 = vor.u32 %v7325_v0, %v5516_v62  ;;  %v5508_v13 = vld [vmem:[%s11313_s1 + $0x320] sm:$0xf] }
  0x70   :  { %1394 = vmatpush.bf16.msrb.mxu3 %v5617_v44  ;;  %v747_v44 = vsel %vm76_vm3, %v732_v29, %v734_v30 }
  0x71   :  { %1341 = vmatpush.bf16.msrb.mxu1 %v5561_v11  ;;  %v752_v49 = vpack.c.bf16 %v747_v44, %v746_v43  ;;  %v736_v11 = vrot.slane %v8201_v31, 5  ;;  %v5494_v43 = vld [vmem:[%s11313_s1 + $0x310] sm:$0xf0]  ;;  %v7319_v44 = vld [vmem:[%s11313_s1 + $0x30c] sm:$0xf] }
  0x72   :  { %1312 = vmatpush.bf16.msrb.mxu0 %v5573_v47  ;;  %v5502_v47 = vld [vmem:[%s11313_s1 + $0x318] sm:$0xf0] }
  0x73   :  { %627 = vmatmul.bf16.gmra.mxu0 %v85_v55  ;;  %v748_v34 = vsel %vm78_vm4, %v734_v30, %v736_v11  ;;  %v749_v35 = vsel %vm80_vm5, %v736_v11, %v739_v18  ;;  %v7320_v30 = vld [vmem:[%s11313_s1 + $0x30c] sm:$0xf0]  ;;  %v5505_v51 = vor.u32 %v7319_v44, %v5502_v47  ;;  %v5775_v11 = vld [vmem:[%s11313_s1 + $0x4f8] sm:$0xf0]  ;;  %v7370_v47 = vld [vmem:[%s11313_s1 + $0x4a4] sm:$0xf] }
  0x74   :  { %655 = vmatmul.bf16.gmra.mxu1 %v85_v55  ;;  %683 = vmatmul.bf16.gmra.mxu2 %v85_v55  ;;  %v753_v37 = vpack.c.bf16 %v749_v35, %v748_v34  ;;  %v5493_v42 = vor.u32 %v7320_v30, %v5492_v38  ;;  %v7375_v34 = vld [vmem:[%s11313_s1 + $0x4cc] sm:$0xf] }
  0x75   :  { %1395 = vmatpush.bf16.msrb.mxu3 %v5601_v56  ;;  %1342 = vmatpush.bf16.msrb.mxu1 %v5545_v23  ;;  %v5526_v56 = vld [vmem:[%s11313_s1 + $0x350] sm:$0xf0]  ;;  %v5509_v23 = vor.u32 %v7324_v33, %v5508_v13  ;;  %v5741_v13 = vld [vmem:[%s11313_s1 + $0x4a8] sm:$0xf]  ;;  %v7373_v33 = vld [vmem:[%s11313_s1 + $0x4b4] sm:$0xf0] }
  0x76   :  { %711 = vmatmul.bf16.gmra.mxu3 %v85_v55  ;;  %v7341_v55 = vld [vmem:[%s11313_s1 + $0x3b4] sm:$0xf0]  ;;  %1313 = vmatpush.bf16.msrb.mxu0 %v5557_v54  ;;  %v5529_v57 = vor.u32 %v7326_v52, %v5526_v56  ;;  %v8685_v54 = vld [vmem:[%s11312_s0 + $0x29] sm:$0x7f]  ;;  %v5742_v35 = vor.u32 %v7373_v33, %v5741_v13  ;;  %v5765_v13 = vld [vmem:[%s11313_s1 + $0x4e0] sm:$0xf] }
  0x77   :  { %v5581_v27 = vor.u32 %v7341_v55, %v5580_v53  ;;  %v5773_v52 = vld [vmem:[%s11313_s1 + $0x4e8] sm:$0xf]  ;;  %v7381_v56 = vld [vmem:[%s11313_s1 + $0x4f4] sm:$0xf0]  ;;  %v742_v62 = vrot.slane %v8685_v54, 7 }
  0x78   :  { %v5709_v33 = vld [vmem:[%s11313_s1 + $0x468] sm:$0xf] }
  0x79   :  { %1368 = vmatpush.bf16.msrb.mxu2 %v5581_v27  ;;  %1396 = vmatpush.bf16.msrb.mxu3 %v5585_v3 }
  0x7a   :  { %1343 = vmatpush.bf16.msrb.mxu1 %v5529_v57  ;;  %1314 = vmatpush.bf16.msrb.mxu0 %v5541_v61  ;;  %v5774_v57 = vor.u32 %v7381_v56, %v5773_v52  ;;  %v7371_v56 = vld [vmem:[%s11313_s1 + $0x4ac] sm:$0xf] }
  0x7d   :  { %1369 = vmatpush.bf16.msrb.mxu2 %v5565_v2  ;;  %1397 = vmatpush.bf16.msrb.mxu3 %v5569_v25  ;;  %v5534_v2 = vld [vmem:[%s11313_s1 + $0x358] sm:$0xf0]  ;;  %v7323_v25 = vld [vmem:[%s11313_s1 + $0x32c] sm:$0xf] }
  0x7e   :  { %v5537_v4 = vor.u32 %v7327_v1, %v5534_v2  ;;  %v5521_v29 = vor.u32 %v7323_v25, %v5518_v26  ;;  %v7378_v1 = vld [vmem:[%s11313_s1 + $0x4e4] sm:$0xf]  ;;  %v5757_v2 = vld [vmem:[%s11313_s1 + $0x4c8] sm:$0xf] }
  0x81   :  { %1370 = vmatpush.bf16.msrb.mxu2 %v5549_v21  ;;  %1398 = vmatpush.bf16.msrb.mxu3 %v5553_v40  ;;  %v5513_v21 = vor.u32 %v7322_v16, %v5510_v17 }
  0x83   :  { %632 = vmatmul.bf16.gmra.mxu0 %v86_v24  ;;  %1344 = vmatpush.bf16.msrb.mxu1 %v5513_v21 }
  0x84   :  { %660 = vmatmul.bf16.gmra.mxu1 %v86_v24  ;;  %688 = vmatmul.bf16.gmra.mxu2 %v86_v24 }
  0x85   :  { %1371 = vmatpush.bf16.msrb.mxu2 %v5533_v39  ;;  %1399 = vmatpush.bf16.msrb.mxu3 %v5537_v4  ;;  %v7318_v39 = vld [vmem:[%s11313_s1 + $0x304] sm:$0xf] }
  0x86   :  { %716 = vmatmul.bf16.gmra.mxu3 %v86_v24  ;;  %v5497_v50 = vor.u32 %v7318_v39, %v5494_v43  ;;  %v1092_v43 = vrot.slane %v8122_v46, 2 }
  0x88   :  { %1345 = vmatpush.bf16.msrb.mxu1 %v5497_v50  ;;  %v5735_v50 = vld [vmem:[%s11313_s1 + $0x4b0] sm:$0xf0] }
  0x89   :  { %1372 = vmatpush.bf16.msrb.mxu2 %v5517_v63  ;;  %1400 = vmatpush.bf16.msrb.mxu3 %v5521_v29  ;;  %v5767_v63 = vld [vmem:[%s11313_s1 + $0x4f0] sm:$0xf0]  ;;  %v5738_v52 = vor.u32 %v7370_v47, %v5735_v50  ;;  %v7376_v47 = vld [vmem:[%s11313_s1 + $0x4cc] sm:$0xf0] }
  0x8a   :  { %v5770_v4 = vor.u32 %v7378_v1, %v5767_v63 }
  0x8d   :  { %1373 = vmatpush.bf16.msrb.mxu2 %v5501_v20  ;;  %1401 = vmatpush.bf16.msrb.mxu3 %v5505_v51  ;;  %v7374_v20 = vld [vmem:[%s11313_s1 + $0x4c4] sm:$0xf]  ;;  %v5725_v51 = vld [vmem:[%s11313_s1 + $0x488] sm:$0xf] }
  0x93   :  { %637 = vmatmul.bf16.gmra.mxu0 %v87_v48 }
  0x94   :  { %665 = vmatmul.bf16.gmra.mxu1 %v87_v48  ;;  %693 = vmatmul.bf16.gmra.mxu2 %v87_v48 }
  0x96   :  { %721 = vmatmul.bf16.gmra.mxu3 %v87_v48 }
  0xa0   :  { %v8495_v7 = vpop.f32.mrf.mxu0 }
  0xa1   :  { %v8497_v8 = vpop.f32.mrf.mxu1 }
  0xa3   :  { %956 = vmatmul.bf16.vlgmr.msra.gmra.mxu0 %v751_v6 }
  0xa4   :  { %984 = vmatmul.bf16.vlgmr.msra.gmra.mxu1 %v751_v6  ;;  %1012 = vmatmul.bf16.vlgmr.msra.gmra.mxu2 %v751_v6 }
  0xa5   :  { %1728 = vmatpush.bf16.msra.mxu2 %v5774_v57  ;;  %1700 = vmatpush.bf16.msra.mxu1 %v5770_v4  ;;  %v5743_v57 = vld [vmem:[%s11313_s1 + $0x4b8] sm:$0xf0] }
  0xa6   :  { %1040 = vmatmul.bf16.vlgmr.msra.gmra.mxu3 %v751_v6  ;;  %v7328_v6 = vld [vmem:[%s11313_s1 + $0x34c] sm:$0xf0]  ;;  %v5746_v4 = vor.u32 %v7371_v56, %v5743_v57  ;;  %v1096_v56 = vrot.slane %v8596_v60, 4 }
  0xa7   :  { %v8523_v24 = vpop.f32.mrf.mxu2  ;;  %v5525_v12 = vor.u32 %v7328_v6, %v5524_v5  ;;  %v7377_v5 = vld [vmem:[%s11313_s1 + $0x4d4] sm:$0xf0]  ;;  %v7379_v6 = vld [vmem:[%s11313_s1 + $0x4ec] sm:$0xf] }
  0xa8   :  { %v8533_v28 = vpop.f32.mrf.mxu0  ;;  %v5758_v16 = vor.u32 %v7377_v5, %v5757_v2  ;;  %v5778_v17 = vor.u32 %v7379_v6, %v5775_v11 }
  0xa9   :  { %v8531_v15 = vpop.f32.mrf.mxu3  ;;  %v8537_v32 = vpop.f32.mrf.mxu1  ;;  %1315 = vmatpush.bf16.msrb.mxu0 %v5525_v12  ;;  %v750_v12 = vsel %vm82_vm6, %v739_v18, %v742_v62  ;;  %v5751_v18 = vld [vmem:[%s11313_s1 + $0x4d0] sm:$0xf0]  ;;  %v7664_v62 = vld [vmem:[%s11312_s0 + $0x18] sm:$0x7f] }
  0xaa   :  { %1729 = vmatpush.bf16.msra.mxu2 %v5758_v16  ;;  %1756 = vmatpush.bf16.msra.mxu3 %v5778_v17  ;;  %v754_v21 = vpack.c.bf16 %v750_v12, %v750_v12  ;;  %v5754_v29 = vor.u32 %v7374_v20, %v5751_v18  ;;  %v7366_v20 = vld [vmem:[%s11313_s1 + $0x484] sm:$0xf]  ;;  %v5719_v18 = vld [vmem:[%s11313_s1 + $0x490] sm:$0xf0] }
  0xac   :  { %1701 = vmatpush.bf16.msra.mxu1 %v5754_v29  ;;  %v5722_v29 = vor.u32 %v7366_v20, %v5719_v18  ;;  %v5733_v20 = vld [vmem:[%s11313_s1 + $0x4a0] sm:$0xf]  ;;  %v7372_v18 = vld [vmem:[%s11313_s1 + $0x4ac] sm:$0xf0] }
  0xad   :  { %1316 = vmatpush.bf16.msrb.mxu0 %v5509_v23  ;;  %v5759_v23 = vld [vmem:[%s11313_s1 + $0x4d8] sm:$0xf0] }
  0xae   :  { %v5762_v38 = vor.u32 %v7375_v34, %v5759_v23  ;;  %1730 = vmatpush.bf16.msra.mxu2 %v5742_v35  ;;  %v7365_v34 = vld [vmem:[%s11313_s1 + $0x474] sm:$0xf0]  ;;  %v7367_v35 = vld [vmem:[%s11313_s1 + $0x48c] sm:$0xf] }
  0xaf   :  { %v8567_v48 = vpop.f32.mrf.mxu2  ;;  %v5710_v23 = vor.u32 %v7365_v34, %v5709_v33 }
  0xb0   :  { %v8577_v55 = vpop.f32.mrf.mxu0  ;;  %1757 = vmatpush.bf16.msra.mxu3 %v5762_v38  ;;  %1702 = vmatpush.bf16.msra.mxu1 %v5738_v52  ;;  %v5727_v38 = vld [vmem:[%s11313_s1 + $0x498] sm:$0xf0] }
  0xb1   :  { %v8575_v53 = vpop.f32.mrf.mxu3  ;;  %v8579_v27 = vpop.f32.mrf.mxu1  ;;  %1317 = vmatpush.bf16.msrb.mxu0 %v5493_v42  ;;  %v1090_v42 = vrot.slane %v8117_v45, 1  ;;  %v7369_v45 = vld [vmem:[%s11313_s1 + $0x494] sm:$0xf0] }
  0xb2   :  { %v5726_v2 = vor.u32 %v7369_v45, %v5725_v51  ;;  %v1094_v45 = vrot.slane %v8201_v31, 3  ;;  %v7362_v31 = vld [vmem:[%s11313_s1 + $0x464] sm:$0xf] }
  0xb3   :  { %961 = vmatmul.bf16.gmra.mxu0 %v752_v49  ;;  %v1106_v1 = vsel %vm70_vm0, %v7664_v62, %v1090_v42  ;;  %v1107_v63 = vsel %vm72_vm1, %v1090_v42, %v1092_v43  ;;  %v5730_v42 = vor.u32 %v7367_v35, %v5727_v38 }
  0xb4   :  { %989 = vmatmul.bf16.gmra.mxu1 %v752_v49  ;;  %1017 = vmatmul.bf16.gmra.mxu2 %v752_v49  ;;  %v1113_v6 = vpack.c.bf16 %v1107_v63, %v1106_v1 }
  0xb5   :  { %1731 = vmatpush.bf16.msra.mxu2 %v5726_v2  ;;  %1758 = vmatpush.bf16.msra.mxu3 %v5746_v4  ;;  %v7361_v4 = vld [vmem:[%s11313_s1 + $0x454] sm:$0xf0] }
  0xb6   :  { %1045 = vmatmul.bf16.gmra.mxu3 %v752_v49  ;;  %1703 = vmatpush.bf16.msra.mxu1 %v5722_v29  ;;  %v5734_v29 = vor.u32 %v7372_v18, %v5733_v20 }
  0xb7   :  { %v8610_v3 = vpop.f32.mrf.mxu2 }
  0xb8   :  { %v8620_v10 = vpop.f32.mrf.mxu0 }
  0xb9   :  { %v8618_v9 = vpop.f32.mrf.mxu3  ;;  %v8624_v14 = vpop.f32.mrf.mxu1  ;;  %1732 = vmatpush.bf16.msra.mxu2 %v5710_v23  ;;  %1759 = vmatpush.bf16.msra.mxu3 %v5730_v42 }
  0xbf   :  { %v8656_v36 = vpop.f32.mrf.mxu2 }
  0xc0   :  { %v8669_v41 = vpop.f32.mrf.mxu0 }
  0xc1   :  { %v8667_v40 = vpop.f32.mrf.mxu3  ;;  %v8680_v49 = vpop.f32.mrf.mxu1 }
  0xc3   :  { %966 = vmatmul.bf16.gmra.mxu0 %v753_v37 }
  0xc4   :  { %994 = vmatmul.bf16.gmra.mxu1 %v753_v37  ;;  %1022 = vmatmul.bf16.gmra.mxu2 %v753_v37 }
  0xc6   :  { %1050 = vmatmul.bf16.gmra.mxu3 %v753_v37 }
  0xc7   :  { %v8693_v58 = vpop.f32.mrf.mxu2 }
  0xc8   :  { %v8697_v61 = vpop.f32.mrf.mxu0 }
  0xc9   :  { %v8695_v59 = vpop.f32.mrf.mxu3  ;;  %v8700_v0 = vpop.f32.mrf.mxu1 }
  0xcf   :  { %v8723_v19 = vpop.f32.mrf.mxu2 }
  0xd0   :  { %v8727_v25 = vpop.f32.mrf.mxu0 }
  0xd1   :  { %v8725_v22 = vpop.f32.mrf.mxu3  ;;  %v8729_v26 = vpop.f32.mrf.mxu1 }
  0xd3   :  { %971 = vmatmul.bf16.gmra.mxu0 %v754_v21 }
  0xd4   :  { %999 = vmatmul.bf16.gmra.mxu1 %v754_v21  ;;  %1027 = vmatmul.bf16.gmra.mxu2 %v754_v21 }
  0xd6   :  { %1055 = vmatmul.bf16.gmra.mxu3 %v754_v21 }
  0xd7   :  { %v8749_v37 = vpop.f32.mrf.mxu2 }
  0xd8   :  { %v368_v39 = vpop.f32.mrf.mxu0 }
  0xd9   :  { %v8751_v30 = vpop.f32.mrf.mxu3  ;;  %v396_v44 = vpop.f32.mrf.mxu1 }
  0xda   :  { %v5749_v44 = vld [vmem:[%s11313_s1 + $0x4c0] sm:$0xf] }
  0xdb   :  { %v5750_v57 = vor.u32 %v7376_v47, %v5749_v44  ;;  %v7358_v44 = vld [vmem:[%s11313_s1 + $0x444] sm:$0xf] }
  0xdf   :  { %v424_v5 = vpop.f32.mrf.mxu2 }
  0xe0   :  { %v623_v12 = vpop.f32.mrf.mxu0  ;;  %v5711_v5 = vld [vmem:[%s11313_s1 + $0x478] sm:$0xf0] }
  0xe1   :  { %v452_v11 = vpop.f32.mrf.mxu3  ;;  %v8781_v16 = vadd.f32 %v623_v12, %v8495_v7  ;;  %v651_v17 = vpop.f32.mrf.mxu1  ;;  %v7380_v7 = vld [vmem:[%s11313_s1 + $0x4ec] sm:$0xf0] }
  0xe2   :  { %v8784_v21 = vadd.f32 %v651_v17, %v8497_v8  ;;  %v5766_v8 = vor.u32 %v7380_v7, %v5765_v13  ;;  %v1109_v11 = vsel %vm76_vm3, %v1094_v45, %v1096_v56  ;;  %v5717_v13 = vld [vmem:[%s11313_s1 + $0x480] sm:$0xf]  ;;  %v7368_v7 = vld [vmem:[%s11313_s1 + $0x48c] sm:$0xf0] }
  0xe3   :  { %1318 = vmatmul.bf16.vlgmr.msrb.gmra.mxu0 %v1113_v6 }
  0xe4   :  { %1346 = vmatmul.bf16.vlgmr.msrb.gmra.mxu1 %v1113_v6  ;;  %1374 = vmatmul.bf16.vlgmr.msrb.gmra.mxu2 %v1113_v6 }
  0xe5   :  { %1672 = vmatpush.bf16.msra.mxu0 %v5766_v8 }
  0xe6   :  { %1402 = vmatmul.bf16.vlgmr.msrb.gmra.mxu3 %v1113_v6  ;;  %v1108_v6 = vsel %vm74_vm2, %v1092_v43, %v1094_v45  ;;  %v7359_v45 = vld [vmem:[%s11313_s1 + $0x44c] sm:$0xf] }
  0xe7   :  { %v679_v39 = vpop.f32.mrf.mxu2  ;;  %v1114_v43 = vpack.c.bf16 %v1109_v11, %v1108_v6  ;;  %v1098_v11 = vrot.slane %v8685_v54, 5 }
  0xe8   :  { %v8817_v50 = vadd.f32 %v679_v39, %v8523_v24  ;;  %v625_v52 = vpop.f32.mrf.mxu0  ;;  %v5703_v24 = vld [vmem:[%s11313_s1 + $0x470] sm:$0xf0]  ;;  %v5718_v39 = vor.u32 %v7368_v7, %v5717_v13  ;;  %v7353_v13 = vld [vmem:[%s11313_s1 + $0x414] sm:$0xf0]  ;;  %v7355_v7 = vld [vmem:[%s11313_s1 + $0x42c] sm:$0xf] }
  0xe9   :  { %v707_v51 = vpop.f32.mrf.mxu3  ;;  %v8825_v1 = vadd.f32 %v625_v52, %v8533_v28  ;;  %v653_v63 = vpop.f32.mrf.mxu1  ;;  %1673 = vmatpush.bf16.msra.mxu0 %v5750_v57  ;;  %v5706_v28 = vor.u32 %v7362_v31, %v5703_v24  ;;  %v7357_v52 = vld [vmem:[%s11313_s1 + $0x434] sm:$0xf0]  ;;  %v5695_v31 = vld [vmem:[%s11313_s1 + $0x458] sm:$0xf0] }
  0xea   :  { %v8822_v62 = vadd.f32 %v707_v51, %v8531_v15  ;;  %v8828_v2 = vadd.f32 %v653_v63, %v8537_v32  ;;  %v5693_v15 = vld [vmem:[%s11313_s1 + $0x448] sm:$0xf]  ;;  %v7363_v32 = vld [vmem:[%s11313_s1 + $0x46c] sm:$0xf] }
  0xeb   :  { %v5694_v12 = vor.u32 %v7361_v4, %v5693_v15  ;;  %v5714_v17 = vor.u32 %v7363_v32, %v5711_v5  ;;  %1704 = vmatpush.bf16.msra.mxu1 %v5706_v28  ;;  %v5677_v51 = vld [vmem:[%s11313_s1 + $0x428] sm:$0xf]  ;;  %v5698_v15 = vor.u32 %v7359_v45, %v5695_v31  ;;  %v5685_v28 = vld [vmem:[%s11313_s1 + $0x440] sm:$0xf]  ;;  %v7360_v4 = vld [vmem:[%s11313_s1 + $0x44c] sm:$0xf0] }
  0xec   :  { %v5678_v63 = vor.u32 %v7357_v52, %v5677_v51  ;;  %v5653_v51 = vld [vmem:[%s11313_s1 + $0x400] sm:$0xf]  ;;  %v7352_v52 = vld [vmem:[%s11313_s1 + $0x40c] sm:$0xf0]  ;;  %v5655_v31 = vld [vmem:[%s11313_s1 + $0x410] sm:$0xf0] }
  0xed   :  { %1733 = vmatpush.bf16.msra.mxu2 %v5694_v12  ;;  %1760 = vmatpush.bf16.msra.mxu3 %v5714_v17 }
  0xee   :  { %1674 = vmatpush.bf16.msra.mxu0 %v5734_v29  ;;  %v5686_v29 = vor.u32 %v7360_v4, %v5685_v28 }
  0xef   :  { %v681_v46 = vpop.f32.mrf.mxu2 }
  0xf0   :  { %v8867_v8 = vadd.f32 %v681_v46, %v8567_v48  ;;  %v628_v34 = vpop.f32.mrf.mxu0  ;;  %v5687_v48 = vld [vmem:[%s11313_s1 + $0x450] sm:$0xf0] }
  0xf1   :  { %v709_v33 = vpop.f32.mrf.mxu3  ;;  %v8873_v23 = vadd.f32 %v628_v34, %v8577_v55  ;;  %v656_v38 = vpop.f32.mrf.mxu1  ;;  %v5690_v47 = vor.u32 %v7358_v44, %v5687_v48  ;;  %v7364_v55 = vld [vmem:[%s11313_s1 + $0x46c] sm:$0xf0]  ;;  %1734 = vmatpush.bf16.msra.mxu2 %v5678_v63  ;;  %1761 = vmatpush.bf16.msra.mxu3 %v5698_v15  ;;  %v5671_v46 = vld [vmem:[%s11313_s1 + $0x430] sm:$0xf0]  ;;  %v1110_v44 = vsel %vm78_vm4, %v1096_v56, %v1098_v11  ;;  %v7350_v56 = vld [vmem:[%s11313_s1 + $0x404] sm:$0xf] }
  0xf2   :  { %v8870_v35 = vadd.f32 %v709_v33, %v8575_v53  ;;  %v8876_v42 = vadd.f32 %v656_v38, %v8579_v27  ;;  %v5701_v53 = vld [vmem:[%s11313_s1 + $0x460] sm:$0xf]  ;;  %v8893_v27 = vld [vmem:[%s11312_s0 + $0x11] sm:$0x7f]  ;;  %1675 = vmatpush.bf16.msra.mxu0 %v5718_v39  ;;  %v5679_v33 = vld [vmem:[%s11313_s1 + $0x438] sm:$0xf0] }
  0xf3   :  { %1323 = vmatmul.bf16.gmra.mxu0 %v1114_v43  ;;  %v5702_v57 = vor.u32 %v7364_v55, %v5701_v53  ;;  %1705 = vmatpush.bf16.msra.mxu1 %v5690_v47  ;;  %v1101_v12 = vrot.slane %v8893_v27, 6  ;;  %v5682_v38 = vor.u32 %v7355_v7, %v5679_v33  ;;  %v7356_v39 = vld [vmem:[%s11313_s1 + $0x42c] sm:$0xf0]  ;;  %v5663_v15 = vld [vmem:[%s11313_s1 + $0x418] sm:$0xf0] }
  0xf4   :  { %1351 = vmatmul.bf16.gmra.mxu1 %v1114_v43  ;;  %1379 = vmatmul.bf16.gmra.mxu2 %v1114_v43 }
  0xf5   :  { %v1111_v48 = vsel %vm80_vm5, %v1098_v11, %v1101_v12  ;;  %1762 = vmatpush.bf16.msra.mxu3 %v5682_v38 }
  0xf6   :  { %1407 = vmatmul.bf16.gmra.mxu3 %v1114_v43  ;;  %1676 = vmatpush.bf16.msra.mxu0 %v5702_v57  ;;  %v1115_v55 = vpack.c.bf16 %v1111_v48, %v1110_v44 }
  0xf7   :  { %v684_v24 = vpop.f32.mrf.mxu2 }
  0xf8   :  { %v8914_v32 = vadd.f32 %v684_v24, %v8610_v3  ;;  %v630_v6 = vpop.f32.mrf.mxu0  ;;  %v7354_v3 = vld [vmem:[%s11313_s1 + $0x424] sm:$0xf]  ;;  %v7351_v24 = vld [vmem:[%s11313_s1 + $0x40c] sm:$0xf] }
  0xf9   :  { %v712_v5 = vpop.f32.mrf.mxu3  ;;  %v8922_v20 = vadd.f32 %v630_v6, %v8620_v10  ;;  %v658_v18 = vpop.f32.mrf.mxu1  ;;  %v5674_v10 = vor.u32 %v7354_v3, %v5671_v46  ;;  %v5658_v6 = vor.u32 %v7350_v56, %v5655_v31 }
  0xfa   :  { %v8919_v17 = vadd.f32 %v712_v5, %v8618_v9  ;;  %v5661_v9 = vld [vmem:[%s11313_s1 + $0x408] sm:$0xf]  ;;  %v8934_v43 = vadd.f32 %v658_v18, %v8624_v14  ;;  %v5669_v14 = vld [vmem:[%s11313_s1 + $0x420] sm:$0xf]  ;;  %1677 = vmatpush.bf16.msra.mxu0 %v5686_v29  ;;  %v5654_v5 = vor.u32 %v7352_v52, %v5653_v51  ;;  %v5666_v18 = vor.u32 %v7351_v24, %v5663_v15 }
  0xfb   :  { %11324 = vst [vmem:[#allocation5_spill] sm:$0xff] %v8922_v20  ;;  %v5662_v34 = vor.u32 %v7353_v13, %v5661_v9  ;;  %1706 = vmatpush.bf16.msra.mxu1 %v5674_v10  ;;  %v5670_v47 = vor.u32 %v7356_v39, %v5669_v14  ;;  %v7666_v51 = vld [vmem:[%s11312_s0 + $0x1] sm:$0x7f] }
  0xfc   :  { %1763 = vmatpush.bf16.msra.mxu3 %v5666_v18  ;;  %v1456_v18 = vrot.slane %v8685_v54, 3 }
  0xfd   :  { %1735 = vmatpush.bf16.msra.mxu2 %v5662_v34 }
  0xfe   :  { %1678 = vmatpush.bf16.msra.mxu0 %v5670_v47 }
  0xff   :  { %v686_v53 = vpop.f32.mrf.mxu2  ;;  %1707 = vmatpush.bf16.msra.mxu1 %v5658_v6 }
 0x100   :  { %v8967_v45 = vadd.f32 %v686_v53, %v8656_v36  ;;  %v633_v63 = vpop.f32.mrf.mxu0  ;;  %v1454_v53 = vrot.slane %v8596_v60, 2 }
 0x101   :  { %v714_v57 = vpop.f32.mrf.mxu3  ;;  %v8982_v36 = vadd.f32 %v633_v63, %v8669_v41  ;;  %v661_v4 = vpop.f32.mrf.mxu1 }
 0x102   :  { %v8979_v28 = vadd.f32 %v714_v57, %v8667_v40  ;;  %v8985_v11 = vadd.f32 %v661_v4, %v8680_v49  ;;  %v8990_v40 = vld [vmem:[%s11312_s0 + $0x31] sm:$0x7f]  ;;  %1679 = vmatpush.bf16.msra.mxu0 %v5654_v5 }
 0x103   :  { %1328 = vmatmul.bf16.gmra.mxu0 %v1115_v55  ;;  %v1104_v46 = vrot.slane %v8990_v40, 7 }
 0x104   :  { %1356 = vmatmul.bf16.gmra.mxu1 %v1115_v55  ;;  %1384 = vmatmul.bf16.gmra.mxu2 %v1115_v55 }
 0x105   :  { %v1112_v33 = vsel %vm82_vm6, %v1101_v12, %v1104_v46 }
 0x106   :  { %1412 = vmatmul.bf16.gmra.mxu3 %v1115_v55  ;;  %v1116_v34 = vpack.c.bf16 %v1112_v33, %v1112_v33 }
 0x107   :  { %v689_v41 = vpop.f32.mrf.mxu2 }
 0x108   :  { %v8993_v29 = vadd.f32 %v689_v41, %v8693_v58  ;;  %v635_v49 = vpop.f32.mrf.mxu0 }
 0x109   :  { %v717_v3 = vpop.f32.mrf.mxu3  ;;  %v9000_v10 = vadd.f32 %v635_v49, %v8697_v61  ;;  %v663_v13 = vpop.f32.mrf.mxu1 }
 0x10a   :  { %v8997_v9 = vadd.f32 %v717_v3, %v8695_v59  ;;  %v9003_v7 = vadd.f32 %v663_v13, %v8700_v0  ;;  %v1470_v3 = vsel %vm74_vm2, %v1454_v53, %v1456_v18 }
 0x10b   :  { %11325 = vst [vmem:[#allocation6_spill] sm:$0xff] %v9000_v10 }
 0x10f   :  { %v691_v58 = vpop.f32.mrf.mxu2 }
 0x110   :  { %v9009_v38 = vadd.f32 %v691_v58, %v8723_v19  ;;  %v638_v39 = vpop.f32.mrf.mxu0 }
 0x111   :  { %v719_v14 = vpop.f32.mrf.mxu3  ;;  %v9015_v61 = vadd.f32 %v638_v39, %v8727_v25  ;;  %v666_v44 = vpop.f32.mrf.mxu1 }
 0x112   :  { %v9012_v59 = vadd.f32 %v719_v14, %v8725_v22  ;;  %v9018_v0 = vadd.f32 %v666_v44, %v8729_v26  ;;  %v7665_v22 = vld [vmem:[%s11312_s0 + $0x21] sm:$0x7f] }
 0x113   :  { %1333 = vmatmul.bf16.gmra.mxu0 %v1116_v34  ;;  %v1452_v25 = vrot.slane %v7665_v22, 1 }
 0x114   :  { %1361 = vmatmul.bf16.gmra.mxu1 %v1116_v34  ;;  %1389 = vmatmul.bf16.gmra.mxu2 %v1116_v34 }
 0x115   :  { %v1469_v52 = vsel %vm72_vm1, %v1452_v25, %v1454_v53 }
 0x116   :  { %1417 = vmatmul.bf16.gmra.mxu3 %v1116_v34 }
 0x117   :  { %v694_v12 = vpop.f32.mrf.mxu2 }
 0x118   :  { %v9021_v19 = vadd.f32 %v694_v12, %v8749_v37  ;;  %v640_v47 = vpop.f32.mrf.mxu0  ;;  %v1468_v37 = vsel %vm70_vm0, %v7666_v51, %v1452_v25 }
 0x119   :  { %v722_v48 = vpop.f32.mrf.mxu3  ;;  %v668_v55 = vpop.f32.mrf.mxu1  ;;  %v1475_v57 = vpack.c.bf16 %v1469_v52, %v1468_v37 }
 0x11a   :  { %v9028_v26 = vadd.f32 %v722_v48, %v8751_v30 }
 0x11f   :  { %v696_v56 = vpop.f32.mrf.mxu2 }
 0x120   :  { %v957_v31 = vpop.f32.mrf.mxu0 }
 0x121   :  { %v724_v63 = vpop.f32.mrf.mxu3  ;;  %v9036_v24 = vadd.f32 %v957_v31, %v8781_v16  ;;  %v985_v60 = vpop.f32.mrf.mxu1  ;;  %v1458_v16 = vrot.slane %v8893_v27, 4 }
 0x122   :  { %v9039_v30 = vadd.f32 %v985_v60, %v8784_v21 }
 0x123   :  { %1680 = vmatmul.bf16.vlgmr.msra.gmra.mxu0 %v1475_v57  ;;  %v1471_v49 = vsel %vm76_vm3, %v1456_v18, %v1458_v16 }
 0x124   :  { %1708 = vmatmul.bf16.vlgmr.msra.gmra.mxu1 %v1475_v57  ;;  %1736 = vmatmul.bf16.vlgmr.msra.gmra.mxu2 %v1475_v57 }
 0x126   :  { %1764 = vmatmul.bf16.vlgmr.msra.gmra.mxu3 %v1475_v57 }
 0x127   :  { %v1013_v15 = vpop.f32.mrf.mxu2 }
 0x128   :  { %v9042_v4 = vadd.f32 %v1013_v15, %v8817_v50  ;;  %v9044_v6 = vpop.f32.mrf.mxu0  ;;  %v1476_v50 = vpack.c.bf16 %v1471_v49, %v1470_v3 }
 0x129   :  { %v1041_v5 = vpop.f32.mrf.mxu3  ;;  %v9051_v21 = vpop.f32.mrf.mxu1 }
 0x12a   :  { %v9049_v41 = vadd.f32 %v1041_v5, %v8822_v62  ;;  %v1450_v62 = vld [vmem:[%s11312_s0 + $0x19] sm:$0x7f] }
 0x12b   :  { %v1463_v12 = vrot.slane %v1450_v62, 6 }
 0x12f   :  { %v9055_v46 = vpop.f32.mrf.mxu2 }
 0x130   :  { %v962_v33 = vpop.f32.mrf.mxu0 }
 0x131   :  { %v9057_v13 = vpop.f32.mrf.mxu3  ;;  %v9060_v58 = vadd.f32 %v962_v33, %v8873_v23  ;;  %v990_v54 = vpop.f32.mrf.mxu1  ;;  %v1460_v23 = vrot.slane %v8990_v40, 5 }
 0x132   :  { %v9063_v27 = vadd.f32 %v990_v54, %v8876_v42 }
 0x133   :  { %1685 = vmatmul.bf16.gmra.mxu0 %v1476_v50  ;;  %v1472_v47 = vsel %vm78_vm4, %v1458_v16, %v1460_v23  ;;  %v1473_v22 = vsel %vm80_vm5, %v1460_v23, %v1463_v12 }
 0x134   :  { %1713 = vmatmul.bf16.gmra.mxu1 %v1476_v50  ;;  %1741 = vmatmul.bf16.gmra.mxu2 %v1476_v50  ;;  %v1477_v53 = vpack.c.bf16 %v1473_v22, %v1472_v47 }
 0x136   :  { %1769 = vmatmul.bf16.gmra.mxu3 %v1476_v50 }
 0x137   :  { %v1018_v34 = vpop.f32.mrf.mxu2 }
 0x138   :  { %v9069_v14 = vadd.f32 %v1018_v34, %v8914_v32  ;;  %v9071_v44 = vpop.f32.mrf.mxu0 }
 0x139   :  { %v1046_v39 = vpop.f32.mrf.mxu3  ;;  %11326 = vst [vmem:[#allocation7_spill] sm:$0xff] %v9071_v44  ;;  %v9075_v48 = vpop.f32.mrf.mxu1 }
 0x13a   :  { %v1071_v42 = vadd.f32 %v1046_v39, %v8919_v17  ;;  %v5618_v17 = vld [vmem:[%s11312_s0 + $0x39] sm:$0x7f]  ;;  %s7693_s0 = smov 32  }
 0x13b   :  { %v1466_v31 = vrot.slane %v5618_v17, 7 }
 0x13f   :  { %v9079_v25 = vpop.f32.mrf.mxu2 }
 0x140   :  { %v967_v32 = vpop.f32.mrf.mxu0 }
 0x141   :  { %v9081_v55 = vpop.f32.mrf.mxu3  ;;  %v1076_v51 = vadd.f32 %v967_v32, %v8982_v36  ;;  %v995_v37 = vpop.f32.mrf.mxu1 }
 0x142   :  { %v1077_v40 = vadd.f32 %v995_v37, %v8985_v11  ;;  %v1474_v11 = vsel %vm82_vm6, %v1463_v12, %v1466_v31 }
 0x143   :  { %1690 = vmatmul.bf16.gmra.mxu0 %v1477_v53  ;;  %v1478_v5 = vpack.c.bf16 %v1474_v11, %v1474_v11 }
 0x144   :  { %1718 = vmatmul.bf16.gmra.mxu1 %v1477_v53  ;;  %1746 = vmatmul.bf16.gmra.mxu2 %v1477_v53 }
 0x146   :  { %1774 = vmatmul.bf16.gmra.mxu3 %v1477_v53 }
 0x147   :  { %v1023_v52 = vpop.f32.mrf.mxu2 }
 0x148   :  { %v1078_v56 = vadd.f32 %v1023_v52, %v8993_v29  ;;  %v9089_v63 = vpop.f32.mrf.mxu0 }
 0x149   :  { %v1051_v57 = vpop.f32.mrf.mxu3  ;;  %11327 = vst [vmem:[#allocation8_spill] sm:$0xff] %v9089_v63  ;;  %v9092_v60 = vpop.f32.mrf.mxu1 }
 0x14a   :  { %v1079_v36 = vadd.f32 %v1051_v57, %v8997_v9 }
 0x14f   :  { %v9095_v15 = vpop.f32.mrf.mxu2 }
 0x150   :  { %v972_v16 = vpop.f32.mrf.mxu0 }
 0x151   :  { %v9097_v18 = vpop.f32.mrf.mxu3  ;;  %v1084_v3 = vadd.f32 %v972_v16, %v9015_v61  ;;  %v1000_v49 = vpop.f32.mrf.mxu1 }
 0x152   :  { %v9101_v29 = vadd.f32 %v1000_v49, %v9018_v0 }
 0x153   :  { %1695 = vmatmul.bf16.gmra.mxu0 %v1478_v5 }
 0x154   :  { %1723 = vmatmul.bf16.gmra.mxu1 %v1478_v5  ;;  %1751 = vmatmul.bf16.gmra.mxu2 %v1478_v5 }
 0x156   :  { %1779 = vmatmul.bf16.gmra.mxu3 %v1478_v5 }
 0x157   :  { %v1028_v9 = vpop.f32.mrf.mxu2 }
 0x158   :  { %v9104_v50 = vadd.f32 %v1028_v9, %v9021_v19  ;;  %v974_v54 = vpop.f32.mrf.mxu0 }
 0x159   :  { %v1056_v33 = vpop.f32.mrf.mxu3  ;;  %v1002_v34 = vpop.f32.mrf.mxu1 }
 0x15a   :  { %v9107_v62 = vadd.f32 %v1056_v33, %v9028_v26 }
 0x15f   :  { %v1030_v39 = vpop.f32.mrf.mxu2 }
 0x160   :  { %v1319_v23 = vpop.f32.mrf.mxu0 }
 0x161   :  { %v1058_v61 = vpop.f32.mrf.mxu3  ;;  %v1422_v0 = vadd.f32 %v1319_v23, %v9036_v24  ;;  %v1347_v12 = vpop.f32.mrf.mxu1 }
 0x167   :  { %v1375_v47 = vpop.f32.mrf.mxu2 }
 0x168   :  { %v9110_v53 = vpop.f32.mrf.mxu0 }
 0x169   :  { %v1403_v22 = vpop.f32.mrf.mxu3  ;;  %v1349_v32 = vpop.f32.mrf.mxu1 }
 0x16f   :  { %v1377_v37 = vpop.f32.mrf.mxu2 }
 0x170   :  { %v1324_v17 = vpop.f32.mrf.mxu0 }
 0x171   :  { %v1405_v19 = vpop.f32.mrf.mxu3  ;;  %v1430_v52 = vadd.f32 %v1324_v17, %v9060_v58  ;;  %v1352_v57 = vpop.f32.mrf.mxu1 }
 0x172   :  { %v9114_v26 = vadd.f32 %v1352_v57, %v9063_v27 }
 0x177   :  { %v9116_v31 = vpop.f32.mrf.mxu2 }
 0x178   :  { %v9118_v5 = vpop.f32.mrf.mxu0 }
 0x179   :  { %v1408_v11 = vpop.f32.mrf.mxu3  ;;  %11328 = vst [vmem:[#allocation9_spill] sm:$0xff] %v9118_v5  ;;  %v1354_v16 = vpop.f32.mrf.mxu1 }
 0x17a   :  { %v9120_v24 = vadd.f32 %v1408_v11, %v1071_v42 }
 0x17f   :  { %v9122_v49 = vpop.f32.mrf.mxu2 }
 0x180   :  { %v1329_v33 = vpop.f32.mrf.mxu0 }
 0x181   :  { %v9124_v9 = vpop.f32.mrf.mxu3  ;;  %v9126_v54 = vadd.f32 %v1329_v33, %v1076_v51  ;;  %v1357_v58 = vpop.f32.mrf.mxu1 }
 0x182   :  { %v9128_v34 = vadd.f32 %v1357_v58, %v1077_v40 }
 0x187   :  { %v1385_v27 = vpop.f32.mrf.mxu2 }
 0x188   :  { %v9130_v39 = vadd.f32 %v1385_v27, %v1078_v56  ;;  %v9132_v23 = vpop.f32.mrf.mxu0 }
 0x189   :  { %v1413_v61 = vpop.f32.mrf.mxu3  ;;  %11329 = vst [vmem:[#allocation10_spill] sm:$0xff] %v9132_v23  ;;  %v9136_v42 = vpop.f32.mrf.mxu1 }
 0x18a   :  { %v9134_v17 = vadd.f32 %v1413_v61, %v1079_v36  ;;  %v1423_v36 = vadd.f32 %v1347_v12, %v9039_v30 }
 0x18f   :  { %v9138_v57 = vpop.f32.mrf.mxu2 }
 0x190   :  { %v1334_v63 = vpop.f32.mrf.mxu0 }
 0x191   :  { %v9140_v11 = vpop.f32.mrf.mxu3  ;;  %v9142_v51 = vadd.f32 %v1334_v63, %v1084_v3  ;;  %v9144_v33 = vpop.f32.mrf.mxu1  ;;  %v1065_v63 = vadd.f32 %v9051_v21, %v8828_v2  ;;  %v1424_v3 = vadd.f32 %v1375_v47, %v9042_v4  ;;  %v1067_v2 = vadd.f32 %v9057_v13, %v8870_v35 }
 0x192   :  { %v1066_v4 = vadd.f32 %v9055_v46, %v8867_v8  ;;  %v1073_v35 = vadd.f32 %v9075_v48, %v8934_v43  ;;  %v1432_v8 = vadd.f32 %v9116_v31, %v9069_v14  ;;  %v1074_v43 = vadd.f32 %v9079_v25, %v8967_v45 }
 0x193   :  { %v1427_v30 = vadd.f32 %v1349_v32, %v1065_v63  ;;  %v1075_v45 = vadd.f32 %v9081_v55, %v8979_v28  ;;  %v1081_v25 = vadd.f32 %v9092_v60, %v9003_v7  ;;  %v1082_v28 = vadd.f32 %v9095_v15, %v9009_v38 }
 0x194   :  { %v1428_v47 = vadd.f32 %v1377_v37, %v1066_v4  ;;  %v1435_v13 = vadd.f32 %v1354_v16, %v1073_v35  ;;  %v1436_v14 = vadd.f32 %v9122_v49, %v1074_v43  ;;  %v1083_v7 = vadd.f32 %v9097_v18, %v9012_v59 }
 0x195   :  { %v1437_v49 = vadd.f32 %v9124_v9, %v1075_v45  ;;  %v1444_v55 = vadd.f32 %v9138_v57, %v1082_v28  ;;  %v5885_v28 = vld [vmem:[%s11315_s3 + $0x1b0] sm:$0xf] }
 0x196   :  { %v1445_v60 = vadd.f32 %v9140_v11, %v1083_v7  ;;  %v7437_v7 = vld [vmem:[%s11315_s3 + $0x1b8] sm:$0xf0] }
 0x197   :  { %v9146_v40 = vpop.f32.mrf.mxu2 }
 0x198   :  { %v1336_v58 = vpop.f32.mrf.mxu0  ;;  %v1448_v59 = vadd.f32 %v9146_v40, %v9104_v50 }
 0x199   :  { %v9148_v56 = vpop.f32.mrf.mxu3  ;;  %v1364_v27 = vpop.f32.mrf.mxu1 }
 0x19a   :  { %v1449_v18 = vadd.f32 %v9148_v56, %v9107_v62 }
 0x19f   :  { %v1392_v23 = vpop.f32.mrf.mxu2 }
 0x1a0   :  { %v1681_v10 = vpop.f32.mrf.mxu0  ;;  %v1425_v23 = vadd.f32 %v1403_v22, %v9049_v41  ;;  %v1429_v41 = vadd.f32 %v1405_v19, %v1067_v2  ;;  %v1443_v2 = vadd.f32 %v9136_v42, %v1081_v25  ;;  %v1447_v42 = vadd.f32 %v9144_v33, %v9101_v29 }
 0x1a1   :  { %v1420_v61 = vpop.f32.mrf.mxu3  ;;  %v9151_v5 = vadd.f32 %v1681_v10, %v1422_v0  ;;  %v1709_v44 = vpop.f32.mrf.mxu1 }
 0x1a2   :  { %v9153_v20 = vadd.f32 %v1709_v44, %v1423_v36 }
 0x1a4   :  { %1819 = vrot.lane.b32.xlu0 %v9153_v20, %s7693_s0 }
 0x1a7   :  { %v1737_v58 = vpop.f32.mrf.mxu2 }
 0x1a8   :  { %v1786_v12 = vadd.f32 %v1737_v58, %v1424_v3  ;;  %v9161_v10 = vpop.f32.mrf.mxu0 }
 0x1a9   :  { %v1765_v27 = vpop.f32.mrf.mxu3  ;;  %v1711_v44 = vpop.f32.mrf.mxu1 }
 0x1aa   :  { %v1787_v0 = vadd.f32 %v1765_v27, %v1425_v23  ;;  %v9163_v36 = vadd.f32 %v1711_v44, %v1427_v30  ;;  %1821 = vrot.lane.b32.xlu1 %v1786_v12, %s7693_s0 }
 0x1ac   :  { %1823 = vrot.lane.b32.xlu2 %v1787_v0, %s7693_s0  ;;  %1825 = vrot.lane.b32.xlu0 %v9163_v36, %s7693_s0 }
 0x1af   :  { %v1739_v21 = vpop.f32.mrf.mxu2 }
 0x1b0   :  { %v1686_v32 = vpop.f32.mrf.mxu0  ;;  %v1790_v23 = vadd.f32 %v1739_v21, %v1428_v47 }
 0x1b1   :  { %v1767_v22 = vpop.f32.mrf.mxu3  ;;  %v9173_v63 = vadd.f32 %v1686_v32, %v1430_v52  ;;  %v1714_v3 = vpop.f32.mrf.mxu1 }
 0x1b2   :  { %v1791_v61 = vadd.f32 %v1767_v22, %v1429_v41  ;;  %v9184_v52 = vadd.f32 %v1714_v3, %v9114_v26 }
 0x1b4   :  { %1829 = vrot.lane.b32.xlu1 %v1791_v61, %s7693_s0  ;;  %1827 = vrot.lane.b32.xlu0 %v1790_v23, %s7693_s0 }
 0x1b7   :  { %v1742_v46 = vpop.f32.mrf.mxu2 }
 0x1b8   :  { %v1794_v37 = vadd.f32 %v1742_v46, %v1432_v8  ;;  %v9181_v58 = vpop.f32.mrf.mxu0  ;;  %v7446_v46 = vld [vmem:[%s11315_s3 + $0x200] sm:$0xf0] }
 0x1b9   :  { %v1770_v19 = vpop.f32.mrf.mxu3  ;;  %v1716_v30 = vpop.f32.mrf.mxu1 }
 0x1ba   :  { %v9186_v12 = vadd.f32 %v1716_v30, %v1435_v13  ;;  %1852 = vrot.lane.b32.xlu2 %v1794_v37, %s7693_s0  ;;  %v1795_v26 = vadd.f32 %v1770_v19, %v9120_v24  ;;  %v5993_v13 = vld [vmem:[%s11315_s3 + $0x288] sm:$0xf] }
 0x1bc   :  { %1850 = vrot.lane.b32.xlu1 %v9184_v52, %s7693_s0  ;;  %1856 = vrot.lane.b32.xlu0 %v9186_v12, %s7693_s0 }
 0x1bf   :  { %v1744_v48 = vpop.f32.mrf.mxu2 }
 0x1c0   :  { %v1798_v31 = vadd.f32 %v1744_v48, %v1436_v14  ;;  %v1691_v27 = vpop.f32.mrf.mxu0  ;;  %v5909_v14 = vld [vmem:[%s11315_s3 + $0x1e0] sm:$0xf]  ;;  %v7443_v48 = vld [vmem:[%s11315_s3 + $0x1e8] sm:$0xf0] }
 0x1c1   :  { %v1772_v16 = vpop.f32.mrf.mxu3  ;;  %v9198_v0 = vadd.f32 %v1691_v27, %v9126_v54  ;;  %v1719_v44 = vpop.f32.mrf.mxu1 }
 0x1c2   :  { %1854 = vrot.lane.b32.xlu2 %v1795_v26, %s7693_s0  ;;  %v1799_v4 = vadd.f32 %v1772_v16, %v1437_v49  ;;  %v9237_v8 = vadd.f32 %v1719_v44, %v9128_v34  ;;  %v5921_v34 = vld [vmem:[%s11315_s3 + $0x1f8] sm:$0xf]  ;;  %v5981_v26 = vld [vmem:[%s11315_s3 + $0x270] sm:$0xf]  ;;  %v7461_v16 = vld [vmem:[%s11315_s3 + $0x278] sm:$0xf0] }
 0x1c3   :  { %v5982_v27 = vor.u32 %v7461_v16, %v5981_v26  ;;  %v5897_v49 = vld [vmem:[%s11315_s3 + $0x1c8] sm:$0xf] }
 0x1c4   :  { %1858 = vrot.lane.b32.xlu1 %v1798_v31, %s7693_s0  ;;  %v5910_v31 = vor.u32 %v7443_v48, %v5909_v14 }
 0x1c7   :  { %v1747_v24 = vpop.f32.mrf.mxu2 }
 0x1c8   :  { %v9208_v54 = vpop.f32.mrf.mxu0  ;;  %v1802_v40 = vadd.f32 %v1747_v24, %v9130_v39  ;;  %v5922_v39 = vor.u32 %v7446_v46, %v5921_v34  ;;  %v7440_v24 = vld [vmem:[%s11315_s3 + $0x1d0] sm:$0xf0]  ;;  %v1812_v46 = vld [vmem:[%s11314_s2] sm:$0x3] }
 0x1c9   :  { %v1775_v41 = vpop.f32.mrf.mxu3  ;;  %v1721_v21 = vpop.f32.mrf.mxu1  ;;  %v9351_v26 = vperm.slane %v1812_v46, 1 }
 0x1ca   :  { %v9210_v47 = vadd.f32 %v1721_v21, %v1443_v2  ;;  %1860 = vrot.lane.b32.xlu2 %v1799_v4, %s7693_s0  ;;  %v1803_v56 = vadd.f32 %v1775_v41, %v9134_v17  ;;  %v7464_v17 = vld [vmem:[%s11315_s3 + $0x290] sm:$0xf0]  ;;  %2402 = vmatpush.bf16.msrb.mxu0 %v5922_v39  ;;  %v5969_v2 = vld [vmem:[%s11315_s3 + $0x258] sm:$0xf]  ;;  %v5898_v41 = vor.u32 %v7440_v24, %v5897_v49  ;;  %v7458_v21 = vld [vmem:[%s11315_s3 + $0x260] sm:$0xf0] }
 0x1cb   :  { %v5994_v37 = vor.u32 %v7464_v17, %v5993_v13  ;;  %v5899_v13 = vld [vmem:[%s11315_s3 + $0x1d4] sm:$0xf0]  ;;  %v7434_v24 = vld [vmem:[%s11315_s3 + $0x1a0] sm:$0xf0] }
 0x1cc   :  { %1923 = vrot.lane.b32.xlu0 %v9210_v47, %s7693_s0  ;;  %v5873_v49 = vld [vmem:[%s11315_s3 + $0x198] sm:$0xf] }
 0x1cd   :  { %2422 = vmatpush.bf16.msrb.mxu1 %v5994_v37 }
 0x1ce   :  { %2403 = vmatpush.bf16.msrb.mxu0 %v5910_v31 }
 0x1cf   :  { %v1749_v9 = vpop.f32.mrf.mxu2 }
 0x1d0   :  { %v1806_v22 = vadd.f32 %v1749_v9, %v1444_v55  ;;  %v1696_v61 = vpop.f32.mrf.mxu0  ;;  %v7445_v9 = vld [vmem:[%s11315_s3 + $0x1fc] sm:$0xf] }
 0x1d1   :  { %v1777_v32 = vpop.f32.mrf.mxu3  ;;  %v9224_v38 = vadd.f32 %v1696_v61, %v9142_v51  ;;  %v1724_v15 = vpop.f32.mrf.mxu1  ;;  %2423 = vmatpush.bf16.msrb.mxu1 %v5982_v27  ;;  %v7460_v27 = vld [vmem:[%s11315_s3 + $0x274] sm:$0xf] }
 0x1d2   :  { %v1807_v3 = vadd.f32 %v1777_v32, %v1445_v60  ;;  %v9226_v23 = vadd.f32 %v1724_v15, %v1447_v42  ;;  %1925 = vrot.lane.b32.xlu1 %v1806_v22, %s7693_s0  ;;  %v5970_v60 = vor.u32 %v7458_v21, %v5969_v2  ;;  %v5923_v42 = vld [vmem:[%s11315_s3 + $0x204] sm:$0xf0]  ;;  %v7463_v22 = vld [vmem:[%s11315_s3 + $0x28c] sm:$0xf]  ;;  %v1064_v32 = vadd.f32 %v9044_v6, %v8825_v1  ;;  %v5887_v21 = vld [vmem:[%s11315_s3 + $0x1bc] sm:$0xf0] }
 0x1d3   :  { %2404 = vmatpush.bf16.msrb.mxu0 %v5898_v41  ;;  %v5926_v15 = vor.u32 %v7445_v9, %v5923_v42  ;;  %v5874_v41 = vor.u32 %v7434_v24, %v5873_v49  ;;  %v5933_v49 = vld [vmem:[%s11315_s3 + $0x210] sm:$0xf]  ;;  %v7449_v24 = vld [vmem:[%s11315_s3 + $0x218] sm:$0xf0] }
 0x1d4   :  { %1927 = vrot.lane.b32.xlu2 %v1807_v3, %s7693_s0  ;;  %1944 = vrot.lane.b32.xlu0 %v9226_v23, %s7693_s0  ;;  %v5886_v3 = vor.u32 %v7437_v7, %v5885_v28  ;;  %v11332_v28 = vld [vmem:[#allocation9_spill] sm:$0xff] }
 0x1d5   :  { %2424 = vmatpush.bf16.msrb.mxu1 %v5970_v60  ;;  %2438 = vmatpush.bf16.msrb.mxu2 %v5926_v15 }
 0x1d7   :  { %v1752_v29 = vpop.f32.mrf.mxu2  ;;  %2405 = vmatpush.bf16.msrb.mxu0 %v5886_v3  ;;  %v7433_v3 = vld [vmem:[%s11315_s3 + $0x19c] sm:$0xf] }
 0x1d8   :  { %v1810_v57 = vadd.f32 %v1752_v29, %v1448_v59  ;;  %v1698_v51 = vpop.f32.mrf.mxu0  ;;  %v5995_v59 = vld [vmem:[%s11315_s3 + $0x294] sm:$0xf0]  ;;  %v7455_v29 = vld [vmem:[%s11315_s3 + $0x248] sm:$0xf0] }
 0x1d9   :  { %v1780_v11 = vpop.f32.mrf.mxu3  ;;  %v1726_v35 = vpop.f32.mrf.mxu1  ;;  %v5998_v6 = vor.u32 %v7463_v22, %v5995_v59 }
 0x1da   :  { %v1811_v33 = vadd.f32 %v1780_v11, %v1449_v18  ;;  %1946 = vrot.lane.b32.xlu1 %v1810_v57, %s7693_s0  ;;  %v5957_v18 = vld [vmem:[%s11315_s3 + $0x240] sm:$0xf]  ;;  %v5911_v35 = vld [vmem:[%s11315_s3 + $0x1ec] sm:$0xf0] }
 0x1db   :  { %v5958_v11 = vor.u32 %v7455_v29, %v5957_v18  ;;  %2458 = vmatpush.bf16.msrb.mxu3 %v5998_v6  ;;  %2406 = vmatpush.bf16.msrb.mxu0 %v5874_v41 }
 0x1dc   :  { %1948 = vrot.lane.b32.xlu2 %v1811_v33, %s7693_s0  ;;  %1917 = vrot.lane.b32.xlu0 %v9237_v8, %s7693_s0  ;;  %v7442_v33 = vld [vmem:[%s11315_s3 + $0x1e4] sm:$0xf] }
 0x1dd   :  { %2425 = vmatpush.bf16.msrb.mxu1 %v5958_v11 }
 0x1df   :  { %v1754_v50 = vpop.f32.mrf.mxu2 }
 0x1e0   :  { %v1426_v50 = vadd.f32 %v9110_v53, %v1064_v32  ;;  %v7439_v53 = vld [vmem:[%s11315_s3 + $0x1cc] sm:$0xf] }
 0x1e1   :  { %v1782_v62 = vpop.f32.mrf.mxu3  ;;  %v5902_v37 = vor.u32 %v7439_v53, %v5899_v13  ;;  %v5945_v53 = vld [vmem:[%s11315_s3 + $0x228] sm:$0xf]  ;;  %v7452_v13 = vld [vmem:[%s11315_s3 + $0x230] sm:$0xf0] }
 0x1e2   :  { %1919 = vrot.lane.b32.xlu1 %v1802_v40, %s7693_s0 }
 0x1e4   :  { %1921 = vrot.lane.b32.xlu2 %v1803_v56, %s7693_s0 }
 0x206   :  { %v1824_v19 = vpop.permute.xlu2 %1823 }
 0x214   :  { %v9261_v43 = vpop.permute.xlu2 %1852 }
 0x216   :  { %v9259_v30 = vpop.permute.xlu0 %1819 }
 0x21c   :  { %v1822_v44 = vpop.permute.xlu1 %1821  ;;  %v1855_v25 = vpop.permute.xlu2 %1854 }
 0x21d   :  { %v1863_v4 = vsel %vm1831_vm7, %v9261_v43, %v1855_v25  ;;  %v1833_v34 = vsel %vm1831_vm7, %v1822_v44, %v1824_v19  ;;  %v1832_v48 = vsel %vm1831_vm7, %v9259_v30, %v1822_v44  ;;  %v11331_v30 = vld [vmem:[#allocation7_spill] sm:$0xff] }
 0x21e   :  { %v1826_v45 = vpop.permute.xlu0 %1825  ;;  %v1871_v57 = vmax.f32 %v9184_v52, %v1863_v4  ;;  %v5914_v52 = vor.u32 %v7442_v33, %v5911_v35  ;;  %v1841_v19 = vmax.f32 %v9153_v20, %v1833_v34  ;;  %v7436_v20 = vld [vmem:[%s11315_s3 + $0x1b4] sm:$0xf]  ;;  %v1840_v4 = vmax.f32 %v9151_v5, %v1832_v48  ;;  %v7457_v5 = vld [vmem:[%s11315_s3 + $0x25c] sm:$0xf] }
 0x21f   :  { %v5890_v9 = vor.u32 %v7436_v20, %v5887_v21  ;;  %v5946_v48 = vor.u32 %v7452_v13, %v5945_v53  ;;  %v7428_v20 = vld [vmem:[%s11315_s3 + $0x170] sm:$0xf0]  ;;  %v7447_v53 = vld [vmem:[%s11315_s3 + $0x208] sm:$0xf0]  ;;  %v6095_v13 = vld [vmem:[%s11315_s3 + $0xa8] sm:$0xf] }
 0x220   :  { %v9330_v56 = vrot.slane %v1871_v57, 6  ;;  %2439 = vmatpush.bf16.msrb.mxu2 %v5914_v52  ;;  %v5875_v57 = vld [vmem:[%s11315_s3 + $0x1a4] sm:$0xf0]  ;;  %v5861_v52 = vld [vmem:[%s11315_s3 + $0x180] sm:$0xf] }
 0x221   :  { %v5878_v11 = vor.u32 %v7433_v3, %v5875_v57  ;;  %2426 = vmatpush.bf16.msrb.mxu1 %v5946_v48  ;;  %v11335_v57 = vld [vmem:[#allocation10_spill] sm:$0xff] }
 0x224   :  { %2440 = vmatpush.bf16.msrb.mxu2 %v5902_v37  ;;  %v1861_v42 = vpop.permute.xlu2 %1860 }
 0x226   :  { %v1830_v55 = vpop.permute.xlu1 %1829  ;;  %v1828_v61 = vpop.permute.xlu0 %1827 }
 0x227   :  { %v1835_v1 = vsel %vm1831_vm7, %v1828_v61, %v1830_v55  ;;  %v1834_v40 = vsel %vm1831_vm7, %v1826_v45, %v1828_v61  ;;  %v5983_v45 = vld [vmem:[%s11315_s3 + $0x27c] sm:$0xf0]  ;;  %v9377_v55 = vperm.slane %v1812_v46, 0  ;;  %v5971_v61 = vld [vmem:[%s11315_s3 + $0x264] sm:$0xf0] }
 0x228   :  { %v9318_v51 = vmax.f32 %v9163_v36, %v1835_v1  ;;  %v1788_v36 = vadd.f32 %v9161_v10, %v1426_v50  ;;  %v5986_v2 = vor.u32 %v7460_v27, %v5983_v45  ;;  %2441 = vmatpush.bf16.msrb.mxu2 %v5890_v9  ;;  %v5974_v29 = vor.u32 %v7457_v5, %v5971_v61  ;;  %v5863_v46 = vld [vmem:[%s11315_s3 + $0x18c] sm:$0xf0]  ;;  %v5849_v45 = vld [vmem:[%s11315_s3 + $0x168] sm:$0xf]  ;;  %v5839_v9 = vld [vmem:[%s11315_s3 + $0x15c] sm:$0xf0] }
 0x22a   :  { %v1883_v62 = vrot.slane %v9318_v51, 6  ;;  %v9342_v39 = vmax.f32 %v1788_v36, %v1834_v40  ;;  %2459 = vmatpush.bf16.msrb.mxu3 %v5986_v2  ;;  %v7431_v40 = vld [vmem:[%s11315_s3 + $0x188] sm:$0xf0]  ;;  %v5837_v2 = vld [vmem:[%s11315_s3 + $0x150] sm:$0xf] }
 0x22b   :  { %v5862_v34 = vor.u32 %v7431_v40, %v5861_v52 }
 0x22c   :  { %v1885_v10 = vsel %vm80_vm5, %v1883_v62, %v9330_v56  ;;  %v1880_v25 = vrot.slane %v9342_v39, 6  ;;  %2442 = vmatpush.bf16.msrb.mxu2 %v5878_v11 }
 0x22d   :  { %v1895_v16 = vmax.f32 %v1841_v19, %v1885_v10  ;;  %2407 = vmatpush.bf16.msrb.mxu0 %v5862_v34 }
 0x22e   :  { %v1851_v17 = vpop.permute.xlu1 %1850  ;;  %v1857_v59 = vpop.permute.xlu0 %1856  ;;  %2460 = vmatpush.bf16.msrb.mxu3 %v5974_v29 }
 0x22f   :  { %v1862_v14 = vsel %vm1831_vm7, %v1851_v17, %v9261_v43  ;;  %v11330_v43 = vld [vmem:[#allocation5_spill] sm:$0xff]  ;;  %v1904_v22 = vadd.f32 %v9351_v26, %v1895_v16  ;;  %v1928_v21 = vpop.permute.xlu2 %1927 }
 0x230   :  { %v1870_v31 = vmax.f32 %v9173_v63, %v1862_v14  ;;  %v1072_v44 = vadd.f32 %v11331_v30, %v11330_v43  ;;  %v7454_v17 = vld [vmem:[%s11315_s3 + $0x244] sm:$0xf]  ;;  %v5850_v30 = vor.u32 %v7428_v20, %v5849_v45  ;;  %v7465_v45 = vld [vmem:[%s11315_s3 + $0x298] sm:$0xf0] }
 0x232   :  { %v1881_v63 = vrot.slane %v1870_v31, 6  ;;  %v1434_v7 = vadd.f32 %v11332_v28, %v1072_v44  ;;  %v5959_v31 = vld [vmem:[%s11315_s3 + $0x24c] sm:$0xf0]  ;;  %v5947_v44 = vld [vmem:[%s11315_s3 + $0x234] sm:$0xf0]  ;;  %2408 = vmatpush.bf16.msrb.mxu0 %v5850_v30  ;;  %v5934_v28 = vor.u32 %v7449_v24, %v5933_v49 }
 0x233   :  { %v5962_v43 = vor.u32 %v7454_v17, %v5959_v31  ;;  %v6083_v30 = vld [vmem:[%s11315_s3 + $0x90] sm:$0xf] }
 0x234   :  { %v1882_v60 = vsel %vm80_vm5, %v1880_v25, %v1881_v63  ;;  %v1796_v15 = vadd.f32 %v9181_v58, %v1434_v7  ;;  %v9402_v58 = vmax.f32 %v1904_v22, 0.0  ;;  %v7425_v7 = vld [vmem:[%s11315_s3 + $0x158] sm:$0xf0]  ;;  %2427 = vmatpush.bf16.msrb.mxu1 %v5934_v28  ;;  %v5905_v28 = vld [vmem:[%s11315_s3 + $0x1d0] sm:$0xf] }
 0x235   :  { %v1894_v32 = vmax.f32 %v1840_v4, %v1882_v60  ;;  %2461 = vmatpush.bf16.msrb.mxu3 %v5962_v43  ;;  %v7424_v60 = vld [vmem:[%s11315_s3 + $0x154] sm:$0xf]  ;;  %v11334_v22 = vld [vmem:[#allocation8_spill] sm:$0xff]  ;;  %v5917_v43 = vld [vmem:[%s11315_s3 + $0x1e8] sm:$0xf] }
 0x236   :  { %v1859_v18 = vpop.permute.xlu1 %1858  ;;  %v5842_v29 = vor.u32 %v7424_v60, %v5839_v9  ;;  %v1997_v40 = vrot.slane %v9402_v58, 2  ;;  %v6071_v60 = vld [vmem:[%s11315_s3 + $0x78] sm:$0xf] }
 0x237   :  { %v1864_v1 = vsel %vm1831_vm7, %v1857_v59, %v1859_v18  ;;  %v1865_v6 = vsel %vm1831_vm7, %v1859_v18, %v1861_v42  ;;  %v1903_v33 = vadd.f32 %v9377_v55, %v1894_v32  ;;  %v11333_v42 = vld [vmem:[#allocation6_spill] sm:$0xff]  ;;  %v7448_v59 = vld [vmem:[%s11315_s3 + $0x214] sm:$0xf]  ;;  %v5935_v18 = vld [vmem:[%s11315_s3 + $0x21c] sm:$0xf0] }
 0x238   :  { %v9397_v35 = vmax.f32 %v1796_v15, %v1864_v1  ;;  %v9400_v50 = vmax.f32 %v9186_v12, %v1865_v6  ;;  %v7430_v12 = vld [vmem:[%s11315_s3 + $0x184] sm:$0xf]  ;;  %v1080_v32 = vadd.f32 %v11334_v22, %v11333_v42  ;;  %v5838_v15 = vor.u32 %v7425_v7, %v5837_v2  ;;  %v5989_v2 = vld [vmem:[%s11315_s3 + $0x278] sm:$0xf]  ;;  %v7441_v7 = vld [vmem:[%s11315_s3 + $0x1d8] sm:$0xf0] }
 0x239   :  { %v5866_v10 = vor.u32 %v7430_v12, %v5863_v46  ;;  %v9427_v37 = vmax.f32 %v1903_v33, 0.0  ;;  %v5938_v11 = vor.u32 %v7448_v59, %v5935_v18  ;;  %v5929_v46 = vld [vmem:[%s11315_s3 + $0x200] sm:$0xf]  ;;  %v5906_v18 = vor.u32 %v7441_v7, %v5905_v28 }
 0x23a   :  { %v1886_v62 = vrot.slane %v9397_v35, 6  ;;  %v1888_v36 = vrot.slane %v9400_v50, 6  ;;  %v1442_v1 = vadd.f32 %v11335_v57, %v1080_v32  ;;  %2409 = vmatpush.bf16.msrb.mxu0 %v5838_v15  ;;  %v7398_v32 = vld [vmem:[%s11315_s3 + $0x80] sm:$0xf0]  ;;  %v5977_v57 = vld [vmem:[%s11315_s3 + $0x260] sm:$0xf] }
 0x23b   :  { %2443 = vmatpush.bf16.msrb.mxu2 %v5866_v10  ;;  %v1994_v33 = vrot.slane %v9427_v37, 2  ;;  %v7422_v15 = vld [vmem:[%s11315_s3 + $0x140] sm:$0xf0] }
 0x23c   :  { %v1887_v19 = vsel %vm80_vm5, %v1881_v63, %v1886_v62  ;;  %v1889_v14 = vsel %vm80_vm5, %v9330_v56, %v1888_v36  ;;  %v7427_v56 = vld [vmem:[%s11315_s3 + $0x16c] sm:$0xf]  ;;  %v2848_v62 = vrot.slane %v9427_v37, 1  ;;  %v1804_v34 = vadd.f32 %v9208_v54, %v1442_v1 }
 0x23d   :  { %v1896_v16 = vmax.f32 %v9342_v39, %v1887_v19  ;;  %v1897_v27 = vmax.f32 %v9318_v51, %v1889_v14  ;;  %v5851_v51 = vld [vmem:[%s11315_s3 + $0x174] sm:$0xf0]  ;;  %v7451_v39 = vld [vmem:[%s11315_s3 + $0x22c] sm:$0xf]  ;;  %v5930_v19 = vor.u32 %v7447_v53, %v5929_v46  ;;  %v7404_v14 = vld [vmem:[%s11315_s3 + $0xb0] sm:$0xf0] }
 0x23e   :  { %v5854_v4 = vor.u32 %v7427_v56, %v5851_v51  ;;  %v5950_v41 = vor.u32 %v7451_v39, %v5947_v44  ;;  %v1924_v3 = vpop.permute.xlu0 %1923  ;;  %v6096_v20 = vor.u32 %v7404_v14, %v6095_v13  ;;  %v7401_v51 = vld [vmem:[%s11315_s3 + $0x98] sm:$0xf0]  ;;  %v7459_v1 = vld [vmem:[%s11315_s3 + $0x268] sm:$0xf0] }
 0x23f   :  { %v1905_v25 = vadd.f32 %v9377_v55, %v1896_v16  ;;  %v1906_v63 = vadd.f32 %v9351_v26, %v1897_v27  ;;  %v6001_v27 = vld [vmem:[%s11315_s3 + $0x290] sm:$0xf]  ;;  %2474 = vmatpush.bf16.msra.mxu0 %v5930_v19  ;;  %v6084_v24 = vor.u32 %v7401_v51, %v6083_v30  ;;  %v5978_v13 = vor.u32 %v7459_v1, %v5977_v57 }
 0x240   :  { %2444 = vmatpush.bf16.msrb.mxu2 %v5854_v4  ;;  %2462 = vmatpush.bf16.msrb.mxu3 %v5950_v41  ;;  %v6002_v56 = vor.u32 %v7465_v45, %v6001_v27  ;;  %v7462_v4 = vld [vmem:[%s11315_s3 + $0x280] sm:$0xf0]  ;;  %v1949_v41 = vpop.permute.xlu2 %1948  ;;  %v2849_v30 = vrot.slane %v9402_v58, 1 }
 0x241   :  { %v9477_v5 = vmax.f32 %v1905_v25, 0.0  ;;  %v9479_v61 = vmax.f32 %v1906_v63, 0.0 }
 0x242   :  { %2494 = vmatpush.bf16.msra.mxu1 %v6002_v56 }
 0x243   :  { %v9489_v6 = vrot.slane %v9477_v5, 2  ;;  %v3723_v52 = vrot.slane %v9479_v61, 4  ;;  %v2852_v36 = vrot.slane %v9477_v5, 3  ;;  %v3722_v48 = vrot.slane %v9477_v5, 4 }
 0x244   :  { %v1926_v12 = vpop.permute.xlu1 %1925  ;;  %2445 = vmatpush.bf16.msrb.mxu2 %v5842_v29  ;;  %2463 = vmatpush.bf16.msrb.mxu3 %v5938_v11  ;;  %v9625_v51 = vrot.slane %v9479_v61, 2 }
 0x245   :  { %v1996_v10 = vsel %vm72_vm1, %v1994_v33, %v9489_v6  ;;  %v1931_v17 = vsel %vm1831_vm7, %v1924_v3, %v1926_v12  ;;  %v1932_v54 = vsel %vm1831_vm7, %v1926_v12, %v1928_v21  ;;  %v9544_v44 = vsel %vm74_vm2, %v2848_v62, %v2852_v36  ;;  %v6167_v3 = vld [vmem:[%s11315_s3 + $0x138] sm:$0xf]  ;;  %v6059_v12 = vld [vmem:[%s11315_s3 + $0x60] sm:$0xf] }
 0x246   :  { %v9514_v31 = vmax.f32 %v1804_v34, %v1931_v17  ;;  %v9517_v16 = vmax.f32 %v9210_v47, %v1932_v54  ;;  %v7444_v47 = vld [vmem:[%s11315_s3 + $0x1f0] sm:$0xf0]  ;;  %v9539_v39 = vsel %vm74_vm2, %v9427_v37, %v1996_v10  ;;  %v5990_v21 = vor.u32 %v7462_v4, %v5989_v2  ;;  %v1945_v22 = vpop.permute.xlu0 %1944  ;;  %v7438_v34 = vld [vmem:[%s11315_s3 + $0x1c0] sm:$0xf0]  ;;  %v7395_v10 = vld [vmem:[%s11315_s3 + $0x68] sm:$0xf0] }
 0x247   :  { %v5918_v49 = vor.u32 %v7444_v47, %v5917_v43  ;;  %v9566_v9 = vsel %vm74_vm2, %v1994_v33, %v3722_v48  ;;  %v9585_v59 = vsel %vm74_vm2, %v1997_v40, %v3723_v52  ;;  %v6168_v29 = vor.u32 %v7422_v15, %v6167_v3  ;;  %v6155_v17 = vld [vmem:[%s11315_s3 + $0x120] sm:$0xf]  ;;  %v7419_v54 = vld [vmem:[%s11315_s3 + $0x128] sm:$0xf0] }
 0x248   :  { %v1960_v25 = vrot.slane %v9514_v31, 6  ;;  %v1961_v63 = vrot.slane %v9517_v16, 6  ;;  %2740 = vmatpush.bf16.msra.mxu2 %v6096_v20  ;;  %v6072_v62 = vor.u32 %v7398_v32, %v6071_v60  ;;  %2495 = vmatpush.bf16.msra.mxu1 %v5990_v21  ;;  %v6156_v20 = vor.u32 %v7419_v54, %v6155_v17  ;;  %v1922_v4 = vpop.permute.xlu2 %1921  ;;  %v7432_v17 = vld [vmem:[%s11315_s3 + $0x190] sm:$0xf0]  ;;  %v6035_v54 = vld [vmem:[%s11315_s3 + $0x30] sm:$0xf] }
 0x249   :  { %2475 = vmatpush.bf16.msra.mxu0 %v5918_v49  ;;  %2760 = vmatpush.bf16.msra.mxu3 %v6168_v29  ;;  %v6060_v56 = vor.u32 %v7395_v10, %v6059_v12  ;;  %v2097_v47 = vrot.slane %v9402_v58, 7  ;;  %v2096_v49 = vrot.slane %v9427_v37, 7  ;;  %v2853_v2 = vrot.slane %v9479_v61, 3  ;;  %v6047_v29 = vld [vmem:[%s11315_s3 + $0x48] sm:$0xf] }
 0x24a   :  { %v1972_v42 = vmax.f32 %v9397_v35, %v1960_v25  ;;  %v1973_v35 = vmax.f32 %v9400_v50, %v1961_v63  ;;  %v5893_v50 = vld [vmem:[%s11315_s3 + $0x1b8] sm:$0xf]  ;;  %v9635_v21 = vrot.slane %v9477_v5, 1  ;;  %v6157_v5 = vld [vmem:[%s11315_s3 + $0x12c] sm:$0xf0] }
 0x24b   :  { %v5894_v45 = vor.u32 %v7438_v34, %v5893_v50 }
 0x24c   :  { %v1978_v11 = vadd.f32 %v1972_v42, %v9377_v55  ;;  %v1947_v33 = vpop.permute.xlu1 %1946  ;;  %2741 = vmatpush.bf16.msra.mxu2 %v6084_v24  ;;  %v1979_v27 = vadd.f32 %v1973_v35, %v9351_v26  ;;  %2496 = vmatpush.bf16.msra.mxu1 %v5978_v13  ;;  %v9629_v24 = vrot.slane %v9479_v61, 1  ;;  %v5881_v35 = vld [vmem:[%s11315_s3 + $0x1a0] sm:$0xf] }
 0x24d   :  { %v1950_v46 = vsel %vm1831_vm7, %v1945_v22, %v1947_v33  ;;  %v1951_v53 = vsel %vm1831_vm7, %v1947_v33, %v1949_v41  ;;  %2476 = vmatpush.bf16.msra.mxu0 %v5906_v18  ;;  %2761 = vmatpush.bf16.msra.mxu3 %v6156_v20  ;;  %v7435_v18 = vld [vmem:[%s11315_s3 + $0x1a8] sm:$0xf0]  ;;  %v7456_v33 = vld [vmem:[%s11315_s3 + $0x250] sm:$0xf0]  ;;  %v7413_v20 = vld [vmem:[%s11315_s3 + $0xf8] sm:$0xf0] }
 0x24e   :  { %v1954_v19 = vmax.f32 %v9224_v38, %v1950_v46  ;;  %v1955_v14 = vmax.f32 %v9226_v23, %v1951_v53  ;;  %v9620_v43 = vmax.f32 %v1978_v11, 0.0  ;;  %v9632_v41 = vmax.f32 %v1979_v27, 0.0  ;;  %v1918_v42 = vpop.permute.xlu0 %1917  ;;  %v5965_v11 = vld [vmem:[%s11315_s3 + $0x248] sm:$0xf]  ;;  %v7416_v46 = vld [vmem:[%s11315_s3 + $0x110] sm:$0xf0] }
 0x24f   :  { %v5882_v34 = vor.u32 %v7435_v18, %v5881_v35  ;;  %v5869_v53 = vld [vmem:[%s11315_s3 + $0x188] sm:$0xf]  ;;  %v7389_v27 = vld [vmem:[%s11315_s3 + $0x38] sm:$0xf0]  ;;  %v7386_v18 = vld [vmem:[%s11315_s3 + $0x20] sm:$0xf0] }
 0x250   :  { %2742 = vmatpush.bf16.msra.mxu2 %v6072_v62  ;;  %v1962_v38 = vrot.slane %v1954_v19, 6  ;;  %v1964_v23 = vrot.slane %v1955_v14, 6  ;;  %v2008_v28 = vrot.slane %v9620_v43, 2  ;;  %v7392_v62 = vld [vmem:[%s11315_s3 + $0x50] sm:$0xf0]  ;;  %v2086_v13 = vrot.slane %v9620_v43, 4 }
 0x251   :  { %2477 = vmatpush.bf16.msra.mxu0 %v5894_v45  ;;  %v6048_v12 = vor.u32 %v7392_v62, %v6047_v29  ;;  %v5870_v14 = vor.u32 %v7432_v17, %v5869_v53  ;;  %v6131_v45 = vld [vmem:[%s11315_s3 + $0xf0] sm:$0xf]  ;;  %v6119_v29 = vld [vmem:[%s11315_s3 + $0xd8] sm:$0xf]  ;;  %v3290_v62 = vrot.slane %v9620_v43, 5 }
 0x252   :  { %v1976_v7 = vmax.f32 %v9514_v31, %v1962_v38  ;;  %v1977_v60 = vmax.f32 %v9517_v16, %v1964_v23  ;;  %v1963_v32 = vsel %vm80_vm5, %v1960_v25, %v1962_v38  ;;  %v1965_v50 = vsel %vm80_vm5, %v1961_v63, %v1964_v23 }
 0x253   :  { %v2088_v16 = vrot.slane %v9632_v41, 4  ;;  %v2859_v38 = vrot.slane %v9632_v41, 3 }
 0x254   :  { %v1920_v22 = vpop.permute.xlu1 %1919  ;;  %2743 = vmatpush.bf16.msra.mxu2 %v6060_v56  ;;  %v9655_v31 = vadd.f32 %v1976_v7, %v9377_v55  ;;  %v9658_v25 = vadd.f32 %v1977_v60, %v9351_v26  ;;  %v2856_v56 = vrot.slane %v9620_v43, 3  ;;  %v5953_v7 = vld [vmem:[%s11315_s3 + $0x230] sm:$0xf]  ;;  %v7453_v60 = vld [vmem:[%s11315_s3 + $0x238] sm:$0xf0] }
 0x255   :  { %v1929_v3 = vsel %vm1831_vm7, %v1918_v42, %v1920_v22  ;;  %v1930_v15 = vsel %vm1831_vm7, %v1920_v22, %v1922_v4  ;;  %2478 = vmatpush.bf16.msra.mxu0 %v5882_v34  ;;  %v6036_v42 = vor.u32 %v7389_v27, %v6035_v54  ;;  %v6132_v22 = vor.u32 %v7413_v20, %v6131_v45  ;;  %v7426_v54 = vld [vmem:[%s11315_s3 + $0x160] sm:$0xf0]  ;;  %v6107_v20 = vld [vmem:[%s11315_s3 + $0xc0] sm:$0xf] }
 0x256   :  { %v1937_v57 = vmax.f32 %v9198_v0, %v1929_v3  ;;  %v1938_v1 = vmax.f32 %v9237_v8, %v1930_v15  ;;  %v5966_v0 = vor.u32 %v7456_v33, %v5965_v11  ;;  %v6143_v8 = vld [vmem:[%s11315_s3 + $0x108] sm:$0xf]  ;;  %v6023_v3 = vld [vmem:[%s11315_s3 + $0x18] sm:$0xf]  ;;  %v7450_v33 = vld [vmem:[%s11315_s3 + $0x220] sm:$0xf0] }
 0x257   :  { %v6144_v19 = vor.u32 %v7416_v46, %v6143_v8  ;;  %v5941_v11 = vld [vmem:[%s11315_s3 + $0x218] sm:$0xf]  ;;  %v6079_v43 = vld [vmem:[%s11315_s3 + $0x80] sm:$0xf] }
 0x258   :  { %v1974_v63 = vmax.f32 %v1937_v57, %v1963_v32  ;;  %v1975_v10 = vmax.f32 %v1938_v1, %v1965_v50  ;;  %2497 = vmatpush.bf16.msra.mxu1 %v5966_v0  ;;  %2744 = vmatpush.bf16.msra.mxu2 %v6048_v12  ;;  %v5954_v32 = vor.u32 %v7453_v60, %v5953_v7  ;;  %v7410_v1 = vld [vmem:[%s11315_s3 + $0xe0] sm:$0xf0] }
 0x259   :  { %2762 = vmatpush.bf16.msra.mxu3 %v6144_v19  ;;  %2479 = vmatpush.bf16.msra.mxu0 %v5870_v14  ;;  %v6024_v0 = vor.u32 %v7386_v18, %v6023_v3  ;;  %v6120_v46 = vor.u32 %v7410_v1, %v6119_v29  ;;  %v5942_v53 = vor.u32 %v7450_v33, %v5941_v11  ;;  %v6011_v19 = vld [vmem:[%s11315_s3] sm:$0xf]  ;;  %v7383_v14 = vld [vmem:[%s11315_s3 + $0x8] sm:$0xf0]  ;;  %v9806_v29 = vmax.f32 %v9658_v25, 0.0 }
 0x25a   :  { %v1980_v23 = vadd.f32 %v1974_v63, %v9377_v55  ;;  %v1981_v4 = vadd.f32 %v1975_v10, %v9351_v26  ;;  %v5857_v55 = vld [vmem:[%s11315_s3 + $0x170] sm:$0xf]  ;;  %v7429_v26 = vld [vmem:[%s11315_s3 + $0x178] sm:$0xf0]  ;;  %v5845_v63 = vld [vmem:[%s11315_s3 + $0x158] sm:$0xf] }
 0x25b   :  { %v5858_v57 = vor.u32 %v7429_v26, %v5857_v55  ;;  %v3292_v55 = vrot.slane %v9632_v41, 5  ;;  %v9800_v26 = vmax.f32 %v9655_v31, 0.0  ;;  %v7403_v25 = vld [vmem:[%s11315_s3 + $0xac] sm:$0xf]  ;;  %v6097_v11 = vld [vmem:[%s11315_s3 + $0xb4] sm:$0xf0] }
 0x25c   :  { %v9719_v15 = vmax.f32 %v1980_v23, 0.0  ;;  %v9721_v35 = vmax.f32 %v1981_v4, 0.0  ;;  %2498 = vmatpush.bf16.msra.mxu1 %v5954_v32  ;;  %2745 = vmatpush.bf16.msra.mxu2 %v6036_v42  ;;  %v7407_v23 = vld [vmem:[%s11315_s3 + $0xc8] sm:$0xf0]  ;;  %v6012_v32 = vor.u32 %v7383_v14, %v6011_v19  ;;  %v7421_v33 = vld [vmem:[%s11315_s3 + $0x13c] sm:$0xf] }
 0x25d   :  { %2763 = vmatpush.bf16.msra.mxu3 %v6132_v22  ;;  %2480 = vmatpush.bf16.msra.mxu0 %v5858_v57  ;;  %v5846_v22 = vor.u32 %v7426_v54, %v5845_v63  ;;  %v6108_v3 = vor.u32 %v7407_v23, %v6107_v20  ;;  %v6100_v63 = vor.u32 %v7403_v25, %v6097_v11  ;;  %v6103_v54 = vld [vmem:[%s11315_s3 + $0xb0] sm:$0xf]  ;;  %v7400_v19 = vld [vmem:[%s11315_s3 + $0x94] sm:$0xf]  ;;  %v6085_v14 = vld [vmem:[%s11315_s3 + $0x9c] sm:$0xf0] }
 0x25e   :  { %v9740_v50 = vrot.slane %v9721_v35, 6  ;;  %v9743_v34 = vrot.slane %v9719_v15, 4  ;;  %v9746_v12 = vrot.slane %v9719_v15, 6  ;;  %v9749_v8 = vrot.slane %v9721_v35, 4  ;;  %v7402_v20 = vld [vmem:[%s11315_s3 + $0xa0] sm:$0xf0] }
 0x25f   :  { %v2860_v4 = vrot.slane %v9721_v35, 3  ;;  %v2009_v7 = vrot.slane %v9719_v15, 2  ;;  %v2857_v1 = vrot.slane %v9719_v15, 3  ;;  %v9815_v31 = vrot.slane %v9719_v15, 5  ;;  %v7418_v23 = vld [vmem:[%s11315_s3 + $0x124] sm:$0xf] }
 0x260   :  { %v2087_v10 = vsel %vm76_vm3, %v2086_v13, %v9743_v34  ;;  %v2107_v17 = vsel %vm80_vm5, %v9740_v50, %v2097_v47  ;;  %v2106_v47 = vsel %vm80_vm5, %v9746_v12, %v2096_v49  ;;  %v9777_v27 = vsel %vm76_vm3, %v2088_v16, %v9749_v8  ;;  %2746 = vmatpush.bf16.msra.mxu2 %v6024_v0 }
 0x261   :  { %v2104_v13 = vsel %vm74_vm2, %v2087_v10, %v9746_v12  ;;  %v2109_v45 = vsel %vm70_vm0, %v2107_v17, %v9629_v24  ;;  %v2108_v49 = vsel %vm70_vm0, %v2106_v47, %v9635_v21  ;;  %v2105_v16 = vsel %vm74_vm2, %v9777_v27, %v9740_v50  ;;  %2499 = vmatpush.bf16.msra.mxu1 %v5942_v53  ;;  %v6169_v17 = vld [vmem:[%s11315_s3 + $0x144] sm:$0xf0] }
 0x262   :  { %v9794_v60 = vpack.c.bf16 %v2108_v49, %v2104_v13  ;;  %v9796_v42 = vpack.c.bf16 %v2109_v45, %v2105_v16  ;;  %2764 = vmatpush.bf16.msra.mxu3 %v6120_v46  ;;  %v2010_v18 = vsel %vm72_vm1, %v2008_v28, %v2009_v7  ;;  %v2861_v0 = vsel %vm74_vm2, %v2859_v38, %v2860_v4  ;;  %v7405_v38 = vld [vmem:[%s11315_s3 + $0xb8] sm:$0xf0]  ;;  %v6091_v13 = vld [vmem:[%s11315_s3 + $0x98] sm:$0xf] }
 0x263   :  { %v2022_v57 = vsel %vm80_vm5, %v9489_v6, %v2010_v18  ;;  %v3734_v46 = vsel %vm80_vm5, %v3722_v48, %v2087_v10  ;;  %2481 = vmatpush.bf16.msra.mxu0 %v5846_v22  ;;  %v2858_v48 = vsel %vm74_vm2, %v2856_v56, %v2857_v1  ;;  %v6104_v10 = vor.u32 %v7405_v38, %v6103_v54  ;;  %v7397_v22 = vld [vmem:[%s11315_s3 + $0x7c] sm:$0xf]  ;;  %v7399_v18 = vld [vmem:[%s11315_s3 + $0x88] sm:$0xf0] }
 0x264   :  { %2410 = vmatmul.bf16.vlgmr.msrb.gmra.mxu0 %v9794_v60  ;;  %6003 = vmatmul.msk.bf16.vlgmr.msrb.gmra.mxu1 %vm2395_vm8, %v9796_v42  ;;  %v2024_v28 = vsel %vm70_vm0, %v2022_v57, %v9743_v34  ;;  %v2878_v47 = vsel %vm80_vm5, %v2852_v36, %v2858_v48  ;;  %v2879_v56 = vsel %vm80_vm5, %v2853_v2, %v2861_v0  ;;  %v6175_v57 = vld [vmem:[%s11315_s3 + $0x140] sm:$0xf]  ;;  %v7423_v1 = vld [vmem:[%s11315_s3 + $0x148] sm:$0xf0]  ;;  %v3300_v25 = vrot.slane %v9806_v29, 7 }
 0x265   :  { %2446 = vmatmul.bf16.vlgmr.msrb.gmra.mxu2 %v9794_v60  ;;  %6005 = vmatmul.msk.bf16.vlgmr.msrb.gmra.mxu3 %vm2395_vm8, %v9796_v42  ;;  %v9838_v53 = vpack.c.bf16 %v2024_v28, %v9539_v39  ;;  %v6172_v39 = vor.u32 %v7421_v33, %v6169_v17  ;;  %v6088_v45 = vor.u32 %v7400_v19, %v6085_v14  ;;  %v7415_v33 = vld [vmem:[%s11315_s3 + $0x10c] sm:$0xf]  ;;  %v6145_v0 = vld [vmem:[%s11315_s3 + $0x114] sm:$0xf0]  ;;  %v6067_v17 = vld [vmem:[%s11315_s3 + $0x68] sm:$0xf] }
 0x266   :  { %2747 = vmatpush.bf16.msra.mxu2 %v6012_v32  ;;  %2765 = vmatpush.bf16.msra.mxu3 %v6108_v3  ;;  %v2880_v36 = vsel %vm70_vm0, %v2878_v47, %v9815_v31  ;;  %v3291_v4 = vsel %vm78_vm4, %v3290_v62, %v9815_v31  ;;  %v3736_v49 = vsel %vm70_vm0, %v3734_v46, %v9746_v12  ;;  %v6073_v32 = vld [vmem:[%s11315_s3 + $0x84] sm:$0xf0]  ;;  %v2867_v61 = vrot.slane %v9721_v35, 5 }
 0x267   :  { %2776 = vmatpush.bf16.msrb.mxu0 %v6100_v63  ;;  %2796 = vmatpush.bf16.msrb.mxu1 %v6172_v39  ;;  %v6092_v16 = vor.u32 %v7402_v20, %v6091_v13  ;;  %v6160_v7 = vor.u32 %v7418_v23, %v6157_v5  ;;  %v9894_v62 = vpack.c.bf16 %v2880_v36, %v9544_v44  ;;  %v6061_v63 = vld [vmem:[%s11315_s3 + $0x6c] sm:$0xf0]  ;;  %v6163_v39 = vld [vmem:[%s11315_s3 + $0x128] sm:$0xf]  ;;  %v2868_v19 = vrot.slane %v9800_v26, 5 }
 0x268   :  { %v9898_v3 = vpack.c.bf16 %v9629_v24, %v9629_v24  ;;  %v9910_v28 = vpack.c.bf16 %v3736_v49, %v9566_v9  ;;  %v3735_v44 = vsel %vm80_vm5, %v3723_v52, %v9777_v27  ;;  %v3298_v24 = vrot.slane %v9800_v26, 7  ;;  %v7394_v27 = vld [vmem:[%s11315_s3 + $0x64] sm:$0xf] }
 0x269   :  { %v6176_v11 = vor.u32 %v7423_v1, %v6175_v57  ;;  %v3737_v9 = vsel %vm70_vm0, %v3735_v44, %v9740_v50  ;;  %v9928_v46 = vpack.c.bf16 %v9635_v21, %v9635_v21  ;;  %v6076_v52 = vor.u32 %v7397_v22, %v6073_v32  ;;  %v6133_v44 = vld [vmem:[%s11315_s3 + $0xfc] sm:$0xf0] }
 0x26a   :  { %2812 = vmatpush.bf16.msrb.mxu2 %v6104_v10  ;;  %v2877_v21 = vsel %vm74_vm2, %v2849_v30, %v2853_v2  ;;  %v9945_v54 = vpack.c.bf16 %v3737_v9, %v9585_v59  ;;  %v6080_v38 = vor.u32 %v7399_v18, %v6079_v43  ;;  %v6148_v48 = vor.u32 %v7415_v33, %v6145_v0  ;;  %v7420_v10 = vld [vmem:[%s11315_s3 + $0x130] sm:$0xf0]  ;;  %v6151_v0 = vld [vmem:[%s11315_s3 + $0x110] sm:$0xf]  ;;  %v7417_v9 = vld [vmem:[%s11315_s3 + $0x118] sm:$0xf0] }
 0x26b   :  { %2777 = vmatpush.bf16.msrb.mxu0 %v6088_v45  ;;  %2797 = vmatpush.bf16.msrb.mxu1 %v6160_v7  ;;  %v7396_v59 = vld [vmem:[%s11315_s3 + $0x70] sm:$0xf0]  ;;  %v6164_v30 = vor.u32 %v7420_v10, %v6163_v39  ;;  %v2870_v2 = vrot.slane %v9806_v29, 5  ;;  %v3296_v14 = vrot.slane %v9719_v15, 7  ;;  %v3297_v13 = vrot.slane %v9721_v35, 7 }
 0x26c   :  { %2832 = vmatpush.bf16.msrb.mxu3 %v6176_v11  ;;  %v6064_v47 = vor.u32 %v7394_v27, %v6061_v63  ;;  %v2881_v45 = vsel %vm70_vm0, %v2879_v56, %v2867_v61  ;;  %v9964_v20 = vsel %vm78_vm4, %v9815_v31, %v2868_v19  ;;  %v3293_v23 = vsel %vm78_vm4, %v3292_v55, %v2867_v61  ;;  %v6037_v63 = vld [vmem:[%s11315_s3 + $0x3c] sm:$0xf0]  ;;  %v7409_v39 = vld [vmem:[%s11315_s3 + $0xdc] sm:$0xf] }
 0x26d   :  { %v9969_v5 = vpack.c.bf16 %v2881_v45, %v2877_v21  ;;  %v9972_v36 = vsel %vm78_vm4, %v2867_v61, %v2870_v2  ;;  %v3299_v15 = vsel %vm82_vm6, %v3296_v14, %v3298_v24  ;;  %v3726_v49 = vrot.slane %v9800_v26, 6  ;;  %v6055_v24 = vld [vmem:[%s11315_s3 + $0x50] sm:$0xf]  ;;  %v7390_v21 = vld [vmem:[%s11315_s3 + $0x40] sm:$0xf0] }
 0x26e   :  { %2813 = vmatpush.bf16.msrb.mxu2 %v6092_v16  ;;  %v6068_v56 = vor.u32 %v7396_v59, %v6067_v17  ;;  %v3306_v31 = vsel %vm74_vm2, %v3291_v4, %v3296_v14  ;;  %v3308_v16 = vsel %vm80_vm5, %v3299_v15, %v9427_v37  ;;  %v3728_v55 = vrot.slane %v9806_v29, 6  ;;  %v6043_v17 = vld [vmem:[%s11315_s3 + $0x38] sm:$0xf]  ;;  %v6121_v59 = vld [vmem:[%s11315_s3 + $0xe4] sm:$0xf0] }
 0x26f   :  { %2778 = vmatpush.bf16.msrb.mxu0 %v6076_v52  ;;  %2798 = vmatpush.bf16.msrb.mxu1 %v6148_v48  ;;  %v3310_v7 = vsel %vm70_vm0, %v3308_v16, %v9489_v6  ;;  %v3301_v22 = vsel %vm82_vm6, %v3297_v13, %v3300_v25  ;;  %v3307_v32 = vsel %vm74_vm2, %v3293_v23, %v3297_v13  ;;  %v2011_v29 = vrot.slane %v9632_v41, 2  ;;  %v6049_v41 = vld [vmem:[%s11315_s3 + $0x54] sm:$0xf0]  ;;  %v7393_v25 = vld [vmem:[%s11315_s3 + $0x58] sm:$0xf0] }
 0x270   :  { %2833 = vmatpush.bf16.msrb.mxu3 %v6164_v30  ;;  %v9986_v26 = vsel %vm80_vm5, %v9746_v12, %v3726_v49  ;;  %v9988_v43 = vpack.c.bf16 %v3310_v7, %v3306_v31  ;;  %v3309_v4 = vsel %vm80_vm5, %v3301_v22, %v9402_v58  ;;  %v9994_v37 = vsel %vm80_vm5, %v9740_v50, %v3728_v55  ;;  %v7391_v50 = vld [vmem:[%s11315_s3 + $0x4c] sm:$0xf]  ;;  %v7388_v52 = vld [vmem:[%s11315_s3 + $0x34] sm:$0xf]  ;;  %v7414_v48 = vld [vmem:[%s11315_s3 + $0x100] sm:$0xf0] }
 0x271   :  { %v2012_v18 = vrot.slane %v9721_v35, 2  ;;  %v3311_v12 = vsel %vm70_vm0, %v3309_v4, %v9625_v51  ;;  %v7412_v35 = vld [vmem:[%s11315_s3 + $0xf4] sm:$0xf]  ;;  %v6052_v1 = vor.u32 %v7391_v50, %v6049_v41  ;;  %v6056_v33 = vor.u32 %v7393_v25, %v6055_v24  ;;  %v7385_v30 = vld [vmem:[%s11315_s3 + $0x1c] sm:$0xf] }
 0x272   :  { %2814 = vmatpush.bf16.msrb.mxu2 %v6080_v38  ;;  %v10015_v57 = vpack.c.bf16 %v3311_v12, %v3307_v32  ;;  %v6136_v11 = vor.u32 %v7412_v35, %v6133_v44  ;;  %v6152_v27 = vor.u32 %v7417_v9, %v6151_v0  ;;  %v6139_v38 = vld [vmem:[%s11315_s3 + $0xf8] sm:$0xf]  ;;  %v6040_v61 = vor.u32 %v7388_v52, %v6037_v63  ;;  %v6025_v2 = vld [vmem:[%s11315_s3 + $0x24] sm:$0xf0]  ;;  %v7387_v45 = vld [vmem:[%s11315_s3 + $0x28] sm:$0xf0] }
 0x273   :  { %2779 = vmatpush.bf16.msrb.mxu0 %v6064_v47  ;;  %v2013_v10 = vsel %vm72_vm1, %v2011_v29, %v2012_v18  ;;  %v6044_v19 = vor.u32 %v7390_v21, %v6043_v17  ;;  %v6140_v14 = vor.u32 %v7414_v48, %v6139_v38  ;;  %v6124_v13 = vor.u32 %v7409_v39, %v6121_v59  ;;  %v6031_v47 = vld [vmem:[%s11315_s3 + $0x20] sm:$0xf]  ;;  %v7411_v15 = vld [vmem:[%s11315_s3 + $0xe8] sm:$0xf0]  ;;  %v7406_v49 = vld [vmem:[%s11315_s3 + $0xc4] sm:$0xf] }
 0x274   :  { %2415 = vmatmul.bf16.gmra.mxu0 %v9928_v46  ;;  %6004 = vmatmul.msk.bf16.gmra.mxu1 %vm2395_vm8, %v9898_v3  ;;  %v6127_v23 = vld [vmem:[%s11315_s3 + $0xe0] sm:$0xf]  ;;  %v2023_v31 = vsel %vm80_vm5, %v9625_v51, %v2013_v10  ;;  %v6028_v55 = vor.u32 %v7385_v30, %v6025_v2  ;;  %v6032_v7 = vor.u32 %v7387_v45, %v6031_v47  ;;  %v7382_v22 = vld [vmem:[%s11315_s3 + $0x4] sm:$0xf]  ;;  %v6013_v29 = vld [vmem:[%s11315_s3 + $0xc] sm:$0xf0] }
 0x275   :  { %2451 = vmatmul.bf16.gmra.mxu2 %v9928_v46  ;;  %6006 = vmatmul.msk.bf16.gmra.mxu3 %vm2395_vm8, %v9898_v3  ;;  %v1999_v32 = vsel %vm72_vm1, %v1997_v40, %v9625_v51  ;;  %v6128_v4 = vor.u32 %v7411_v15, %v6127_v23  ;;  %v6019_v18 = vld [vmem:[%s11315_s3 + $0x8] sm:$0xf]  ;;  %v7384_v12 = vld [vmem:[%s11315_s3 + $0x10] sm:$0xf0]  ;;  %v2025_v50 = vsel %vm70_vm0, %v2023_v31, %v9749_v8  ;;  %v7487_v0 = vld [vmem:[%s11315_s3 + $0x34c] sm:$0xf] }
 0x276   :  { %2815 = vmatpush.bf16.msrb.mxu2 %v6068_v56  ;;  %2799 = vmatpush.bf16.msrb.mxu1 %v6136_v11  ;;  %v6109_v56 = vld [vmem:[%s11315_s3 + $0xcc] sm:$0xf0]  ;;  %v6115_v40 = vld [vmem:[%s11315_s3 + $0xc8] sm:$0xf]  ;;  %v7408_v41 = vld [vmem:[%s11315_s3 + $0xd0] sm:$0xf0]  ;;  %v2021_v35 = vsel %vm74_vm2, %v9402_v58, %v1999_v32  ;;  %v6020_v44 = vor.u32 %v7384_v12, %v6019_v18 }
 0x277   :  { %2780 = vmatpush.bf16.msrb.mxu0 %v6052_v1  ;;  %2834 = vmatpush.bf16.msrb.mxu3 %v6152_v27  ;;  %v6112_v16 = vor.u32 %v7406_v49, %v6109_v56  ;;  %v6016_v1 = vor.u32 %v7382_v22, %v6013_v29  ;;  %v10109_v24 = vpack.c.bf16 %v2025_v50, %v2021_v35  ;;  %v6325_v58 = vld [vmem:[%s11315_s3 + $0x348] sm:$0xf]  ;;  %v7488_v11 = vld [vmem:[%s11315_s3 + $0x350] sm:$0xf0]  ;;  %v6327_v9 = vld [vmem:[%s11315_s3 + $0x354] sm:$0xf0] }
 0x278   :  { %v6116_v25 = vor.u32 %v7408_v41, %v6115_v40  ;;  %v6330_v27 = vor.u32 %v7487_v0, %v6327_v9  ;;  %v6313_v63 = vld [vmem:[%s11315_s3 + $0x330] sm:$0xf]  ;;  %v7485_v17 = vld [vmem:[%s11315_s3 + $0x338] sm:$0xf0]  ;;  %v7484_v21 = vld [vmem:[%s11315_s3 + $0x334] sm:$0xf]  ;;  %v10197_v50 = vpack.c.bf16 %v9743_v34, %v9743_v34  ;;  %v10201_v40 = vpack.c.bf16 %v9749_v8, %v9749_v8 }
 0x279   :  { %v6314_v38 = vor.u32 %v7485_v17, %v6313_v63  ;;  %v6315_v48 = vld [vmem:[%s11315_s3 + $0x33c] sm:$0xf0]  ;;  %v7503_v10 = vld [vmem:[%s11315_s3 + $0x3c8] sm:$0xf0]  ;;  %v6301_v59 = vld [vmem:[%s11315_s3 + $0x318] sm:$0xf] }
 0x27a   :  { %2816 = vmatpush.bf16.msrb.mxu2 %v6056_v33  ;;  %2800 = vmatpush.bf16.msrb.mxu1 %v6124_v13  ;;  %v7506_v33 = vld [vmem:[%s11315_s3 + $0x3e0] sm:$0xf0]  ;;  %v6385_v39 = vld [vmem:[%s11315_s3 + $0x3c0] sm:$0xf]  ;;  %v7481_v2 = vld [vmem:[%s11315_s3 + $0x31c] sm:$0xf] }
 0x27b   :  { %2781 = vmatpush.bf16.msrb.mxu0 %v6040_v61  ;;  %2835 = vmatpush.bf16.msrb.mxu3 %v6140_v14  ;;  %v6318_v61 = vor.u32 %v7484_v21, %v6315_v48  ;;  %v7482_v30 = vld [vmem:[%s11315_s3 + $0x320] sm:$0xf0]  ;;  %v6303_v14 = vld [vmem:[%s11315_s3 + $0x324] sm:$0xf0]  ;;  %v7505_v13 = vld [vmem:[%s11315_s3 + $0x3dc] sm:$0xf] }
 0x27c   :  { %v6399_v47 = vld [vmem:[%s11315_s3 + $0x3e4] sm:$0xf0]  ;;  %v7500_v15 = vld [vmem:[%s11315_s3 + $0x3b0] sm:$0xf0]  ;;  %v6302_v49 = vor.u32 %v7482_v30, %v6301_v59  ;;  %v6306_v56 = vor.u32 %v7481_v2, %v6303_v14  ;;  %v7479_v32 = vld [vmem:[%s11315_s3 + $0x308] sm:$0xf0] }
 0x27d   :  { %v6402_v45 = vor.u32 %v7505_v13, %v6399_v47  ;;  %v6373_v23 = vld [vmem:[%s11315_s3 + $0x3a8] sm:$0xf]  ;;  %v6291_v29 = vld [vmem:[%s11315_s3 + $0x30c] sm:$0xf0]  ;;  %v7476_v34 = vld [vmem:[%s11315_s3 + $0x2f0] sm:$0xf0] }
 0x27e   :  { %2817 = vmatpush.bf16.msrb.mxu2 %v6044_v19  ;;  %2801 = vmatpush.bf16.msrb.mxu1 %v6112_v16  ;;  %v6386_v19 = vor.u32 %v7503_v10, %v6385_v39  ;;  %v6374_v31 = vor.u32 %v7500_v15, %v6373_v23  ;;  %v7502_v16 = vld [vmem:[%s11315_s3 + $0x3c4] sm:$0xf]  ;;  %v6277_v41 = vld [vmem:[%s11315_s3 + $0x2e8] sm:$0xf]  ;;  %v6361_v8 = vld [vmem:[%s11315_s3 + $0x390] sm:$0xf] }
 0x27f   :  { %2782 = vmatpush.bf16.msrb.mxu0 %v6028_v55  ;;  %2836 = vmatpush.bf16.msrb.mxu3 %v6128_v4  ;;  %v6387_v55 = vld [vmem:[%s11315_s3 + $0x3cc] sm:$0xf0]  ;;  %v7478_v4 = vld [vmem:[%s11315_s3 + $0x304] sm:$0xf]  ;;  %v7475_v35 = vld [vmem:[%s11315_s3 + $0x2ec] sm:$0xf] }
 0x280   :  { %v6390_v22 = vor.u32 %v7502_v16, %v6387_v55  ;;  %v6294_v12 = vor.u32 %v7478_v4, %v6291_v29  ;;  %v7472_v0 = vld [vmem:[%s11315_s3 + $0x2d4] sm:$0xf]  ;;  %v6267_v9 = vld [vmem:[%s11315_s3 + $0x2dc] sm:$0xf0]  ;;  %v6349_v63 = vld [vmem:[%s11315_s3 + $0x378] sm:$0xf] }
 0x281   :  { %v6270_v21 = vor.u32 %v7472_v0, %v6267_v9  ;;  %v6253_v48 = vld [vmem:[%s11315_s3 + $0x2b8] sm:$0xf]  ;;  %v7470_v39 = vld [vmem:[%s11315_s3 + $0x2c0] sm:$0xf0]  ;;  %v6255_v59 = vld [vmem:[%s11315_s3 + $0x2c4] sm:$0xf0] }
 0x282   :  { %2818 = vmatpush.bf16.msrb.mxu2 %v6032_v7  ;;  %v6289_v7 = vld [vmem:[%s11315_s3 + $0x300] sm:$0xf]  ;;  %v7493_v30 = vld [vmem:[%s11315_s3 + $0x37c] sm:$0xf]  ;;  %v6351_v2 = vld [vmem:[%s11315_s3 + $0x384] sm:$0xf0] }
 0x283   :  { %2783 = vmatpush.bf16.msrb.mxu0 %v6016_v1  ;;  %2837 = vmatpush.bf16.msrb.mxu3 %v6116_v25  ;;  %v6290_v18 = vor.u32 %v7479_v32, %v6289_v7  ;;  %v6279_v1 = vld [vmem:[%s11315_s3 + $0x2f4] sm:$0xf0]  ;;  %v6337_v14 = vld [vmem:[%s11315_s3 + $0x360] sm:$0xf]  ;;  %v7491_v13 = vld [vmem:[%s11315_s3 + $0x368] sm:$0xf0] }
 0x284   :  { %2482 = vmatmul.bf16.vlgmr.msra.gmra.mxu0 %v9794_v60  ;;  %6007 = vmatmul.msk.bf16.vlgmr.msra.gmra.mxu1 %vm2395_vm8, %v9796_v42  ;;  %v6397_v60 = vld [vmem:[%s11315_s3 + $0x3d8] sm:$0xf]  ;;  %v6326_v42 = vor.u32 %v7488_v11, %v6325_v58  ;;  %v6282_v25 = vor.u32 %v7475_v35, %v6279_v1  ;;  %v7499_v58 = vld [vmem:[%s11315_s3 + $0x3ac] sm:$0xf]  ;;  %v6338_v47 = vor.u32 %v7491_v13, %v6337_v14  ;;  %v6241_v15 = vld [vmem:[%s11315_s3 + $0x2a0] sm:$0xf] }
 0x285   :  { %2748 = vmatmul.bf16.vlgmr.msra.gmra.mxu2 %v9838_v53  ;;  %6177 = vmatmul.msk.bf16.vlgmr.msra.gmra.mxu3 %vm2395_vm8, %v10109_v24  ;;  %v6398_v52 = vor.u32 %v7506_v33, %v6397_v60  ;;  %v6375_v11 = vld [vmem:[%s11315_s3 + $0x3b4] sm:$0xf0]  ;;  %v6265_v60 = vld [vmem:[%s11315_s3 + $0x2d0] sm:$0xf]  ;;  %v7473_v33 = vld [vmem:[%s11315_s3 + $0x2d8] sm:$0xf0] }
 0x286   :  { %2819 = vmatpush.bf16.msrb.mxu2 %v6020_v44  ;;  %v6266_v17 = vor.u32 %v7473_v33, %v6265_v60  ;;  %v6243_v16 = vld [vmem:[%s11315_s3 + $0x2ac] sm:$0xf0]  ;;  %v7490_v55 = vld [vmem:[%s11315_s3 + $0x364] sm:$0xf]  ;;  %v6543_v1 = vld [vmem:[%s11315_s3 + $0x480] sm:$0xf] }
 0x287   :  { %3173 = vmatpush.bf16.msra.mxu0 %v6326_v42  ;;  %3193 = vmatpush.bf16.msra.mxu1 %v6398_v52  ;;  %v6378_v42 = vor.u32 %v7499_v58, %v6375_v11  ;;  %v7496_v52 = vld [vmem:[%s11315_s3 + $0x394] sm:$0xf]  ;;  %v6339_v7 = vld [vmem:[%s11315_s3 + $0x36c] sm:$0xf0]  ;;  %v7486_v35 = vld [vmem:[%s11315_s3 + $0x340] sm:$0xf0] }
 0x288   :  { %3229 = vmatpush.bf16.msra.mxu3 %v6402_v45  ;;  %v6254_v45 = vor.u32 %v7470_v39, %v6253_v48  ;;  %v6342_v4 = vor.u32 %v7490_v55, %v6339_v7  ;;  %v6333_v29 = vld [vmem:[%s11315_s3 + $0x350] sm:$0xf]  ;;  %v6393_v58 = vld [vmem:[%s11315_s3 + $0x3c8] sm:$0xf]  ;;  %v7504_v11 = vld [vmem:[%s11315_s3 + $0x3d0] sm:$0xf0] }
 0x289   :  { %v6309_v33 = vld [vmem:[%s11315_s3 + $0x320] sm:$0xf]  ;;  %v7483_v0 = vld [vmem:[%s11315_s3 + $0x328] sm:$0xf0]  ;;  %v6531_v9 = vld [vmem:[%s11315_s3 + $0x468] sm:$0xf] }
 0x28a   :  { %3209 = vmatpush.bf16.msra.mxu2 %v6330_v27  ;;  %v6363_v27 = vld [vmem:[%s11315_s3 + $0x39c] sm:$0xf0]  ;;  %v6310_v48 = vor.u32 %v7483_v0, %v6309_v33  ;;  %v6519_v14 = vld [vmem:[%s11315_s3 + $0x450] sm:$0xf]  ;;  %v7521_v13 = vld [vmem:[%s11315_s3 + $0x458] sm:$0xf0] }
 0x28b   :  { %3174 = vmatpush.bf16.msra.mxu0 %v6314_v38  ;;  %3194 = vmatpush.bf16.msra.mxu1 %v6386_v19  ;;  %v7494_v38 = vld [vmem:[%s11315_s3 + $0x380] sm:$0xf0]  ;;  %v6366_v10 = vor.u32 %v7496_v52, %v6363_v27  ;;  %v7469_v19 = vld [vmem:[%s11315_s3 + $0x2bc] sm:$0xf]  ;;  %v7524_v52 = vld [vmem:[%s11315_s3 + $0x470] sm:$0xf0] }
 0x28c   :  { %3230 = vmatpush.bf16.msra.mxu3 %v6390_v22  ;;  %v6258_v23 = vor.u32 %v7469_v19, %v6255_v59  ;;  %v6627_v27 = vld [vmem:[%s11315_s3 + $0x528] sm:$0xf]  ;;  %v6532_v39 = vor.u32 %v7524_v52, %v6531_v9  ;;  %v7545_v19 = vld [vmem:[%s11315_s3 + $0x518] sm:$0xf0]  ;;  %v6603_v7 = vld [vmem:[%s11315_s3 + $0x4f8] sm:$0xf] }
 0x28d   :  { %v6297_v59 = vld [vmem:[%s11315_s3 + $0x308] sm:$0xf]  ;;  %v7492_v33 = vld [vmem:[%s11315_s3 + $0x370] sm:$0xf0] }
 0x28e   :  { %3210 = vmatpush.bf16.msra.mxu2 %v6318_v61  ;;  %v6350_v61 = vor.u32 %v7494_v38, %v6349_v63  ;;  %v7548_v63 = vld [vmem:[%s11315_s3 + $0x530] sm:$0xf0]  ;;  %v7501_v38 = vld [vmem:[%s11315_s3 + $0x3b8] sm:$0xf0] }
 0x28f   :  { %3175 = vmatpush.bf16.msra.mxu0 %v6302_v49  ;;  %3195 = vmatpush.bf16.msra.mxu1 %v6374_v31  ;;  %v6354_v49 = vor.u32 %v7493_v30, %v6351_v2  ;;  %v7466_v31 = vld [vmem:[%s11315_s3 + $0x2a4] sm:$0xf]  ;;  %v7480_v2 = vld [vmem:[%s11315_s3 + $0x310] sm:$0xf0] }
 0x290   :  { %3231 = vmatpush.bf16.msra.mxu3 %v6378_v42  ;;  %v6246_v32 = vor.u32 %v7466_v31, %v6243_v16  ;;  %v6394_v42 = vor.u32 %v7504_v11, %v6393_v58  ;;  %v7518_v31 = vld [vmem:[%s11315_s3 + $0x440] sm:$0xf0]  ;;  %v7512_v58 = vld [vmem:[%s11315_s3 + $0x410] sm:$0xf0]  ;;  %v6579_v11 = vld [vmem:[%s11315_s3 + $0x4c8] sm:$0xf] }
 0x292   :  { %3211 = vmatpush.bf16.msra.mxu2 %v6306_v56  ;;  %v7467_v56 = vld [vmem:[%s11315_s3 + $0x2a8] sm:$0xf0] }
 0x293   :  { %3176 = vmatpush.bf16.msra.mxu0 %v6290_v18  ;;  %v6242_v22 = vor.u32 %v7467_v56, %v6241_v15  ;;  %v7489_v18 = vld [vmem:[%s11315_s3 + $0x358] sm:$0xf0] }
 0x294   :  { %2487 = vmatmul.bf16.gmra.mxu0 %v9928_v46  ;;  %6008 = vmatmul.msk.bf16.gmra.mxu1 %vm2395_vm8, %v9898_v3  ;;  %v6278_v3 = vor.u32 %v7476_v34, %v6277_v41  ;;  %v7497_v46 = vld [vmem:[%s11315_s3 + $0x398] sm:$0xf0]  ;;  %v6334_v41 = vor.u32 %v7489_v18, %v6333_v29  ;;  %v7530_v34 = vld [vmem:[%s11315_s3 + $0x4a0] sm:$0xf0]  ;;  %v6495_v18 = vld [vmem:[%s11315_s3 + $0x420] sm:$0xf] }
 0x295   :  { %2753 = vmatmul.bf16.gmra.mxu2 %v10197_v50  ;;  %6178 = vmatmul.msk.bf16.gmra.mxu3 %vm2395_vm8, %v10201_v40  ;;  %v6362_v44 = vor.u32 %v7497_v46, %v6361_v8  ;;  %v6321_v46 = vld [vmem:[%s11315_s3 + $0x338] sm:$0xf]  ;;  %v7477_v15 = vld [vmem:[%s11315_s3 + $0x2f8] sm:$0xf0]  ;;  %v7474_v29 = vld [vmem:[%s11315_s3 + $0x2e0] sm:$0xf0] }
 0x296   :  { %3212 = vmatpush.bf16.msra.mxu2 %v6294_v12  ;;  %3232 = vmatpush.bf16.msra.mxu3 %v6366_v10  ;;  %v6405_v12 = vld [vmem:[%s11315_s3 + $0x3e0] sm:$0xf] }
 0x297   :  { %3196 = vmatpush.bf16.msra.mxu1 %v6362_v44  ;;  %3177 = vmatpush.bf16.msra.mxu0 %v6278_v3  ;;  %v6322_v44 = vor.u32 %v7486_v35, %v6321_v46  ;;  %v6261_v46 = vld [vmem:[%s11315_s3 + $0x2c0] sm:$0xf]  ;;  %v7471_v35 = vld [vmem:[%s11315_s3 + $0x2c8] sm:$0xf0] }
 0x298   :  { %v6262_v9 = vor.u32 %v7471_v35, %v6261_v46  ;;  %v7520_v46 = vld [vmem:[%s11315_s3 + $0x454] sm:$0xf]  ;;  %v10550_v35 = vpack.c.bf16 %v9964_v20, %v9964_v20 }
 0x29a   :  { %3213 = vmatpush.bf16.msra.mxu2 %v6282_v25  ;;  %3233 = vmatpush.bf16.msra.mxu3 %v6354_v49  ;;  %v7527_v25 = vld [vmem:[%s11315_s3 + $0x488] sm:$0xf0]  ;;  %v6369_v49 = vld [vmem:[%s11315_s3 + $0x398] sm:$0xf] }
 0x29b   :  { %3197 = vmatpush.bf16.msra.mxu1 %v6350_v61  ;;  %3178 = vmatpush.bf16.msra.mxu0 %v6266_v17  ;;  %v6544_v60 = vor.u32 %v7527_v25, %v6543_v1  ;;  %v6628_v17 = vor.u32 %v7548_v63, %v6627_v27  ;;  %v6615_v61 = vld [vmem:[%s11315_s3 + $0x510] sm:$0xf]  ;;  %v6483_v25 = vld [vmem:[%s11315_s3 + $0x408] sm:$0xf] }
 0x29c   :  { %v6616_v30 = vor.u32 %v7545_v19, %v6615_v61  ;;  %v6484_v52 = vor.u32 %v7512_v58, %v6483_v25  ;;  %v6249_v63 = vld [vmem:[%s11315_s3 + $0x2a8] sm:$0xf]  ;;  %v7533_v61 = vld [vmem:[%s11315_s3 + $0x4b8] sm:$0xf0]  ;;  %v6521_v25 = vld [vmem:[%s11315_s3 + $0x45c] sm:$0xf0] }
 0x29d   :  { %v6527_v58 = vld [vmem:[%s11315_s3 + $0x458] sm:$0xf] }
 0x29e   :  { %3214 = vmatpush.bf16.msra.mxu2 %v6270_v21  ;;  %3234 = vmatpush.bf16.msra.mxu3 %v6342_v4  ;;  %v6381_v21 = vld [vmem:[%s11315_s3 + $0x3b0] sm:$0xf] }
 0x29f   :  { %3198 = vmatpush.bf16.msra.mxu1 %v6338_v47  ;;  %3179 = vmatpush.bf16.msra.mxu0 %v6254_v45  ;;  %v6382_v10 = vor.u32 %v7501_v38, %v6381_v21  ;;  %v6298_v47 = vor.u32 %v7480_v2, %v6297_v59  ;;  %v6520_v45 = vor.u32 %v7521_v13, %v6519_v14  ;;  %v6471_v38 = vld [vmem:[%s11315_s3 + $0x3f0] sm:$0xf]  ;;  %v7529_v59 = vld [vmem:[%s11315_s3 + $0x49c] sm:$0xf]  ;;  %v7547_v2 = vld [vmem:[%s11315_s3 + $0x52c] sm:$0xf] }
 0x2a0   :  { %v6629_v13 = vld [vmem:[%s11315_s3 + $0x534] sm:$0xf0] }
 0x2a2   :  { %3215 = vmatpush.bf16.msra.mxu2 %v6258_v23  ;;  %v6285_v23 = vld [vmem:[%s11315_s3 + $0x2f0] sm:$0xf] }
 0x2a3   :  { %3180 = vmatpush.bf16.msra.mxu0 %v6242_v22  ;;  %v6286_v56 = vor.u32 %v7477_v15, %v6285_v23  ;;  %v7542_v22 = vld [vmem:[%s11315_s3 + $0x500] sm:$0xf0]  ;;  %v6632_v23 = vor.u32 %v7547_v2, %v6629_v13  ;;  %v6599_v13 = vld [vmem:[%s11315_s3 + $0x4e8] sm:$0xf] }
 0x2a4   :  { %2784 = vmatmul.bf16.vlgmr.msrb.gmra.mxu0 %v9838_v53  ;;  %6179 = vmatmul.msk.bf16.vlgmr.msrb.gmra.mxu1 %vm2395_vm8, %v10109_v24  ;;  %v6604_v4 = vor.u32 %v7542_v22, %v6603_v7  ;;  %v6617_v7 = vld [vmem:[%s11315_s3 + $0x51c] sm:$0xf0]  ;;  %v7523_v22 = vld [vmem:[%s11315_s3 + $0x46c] sm:$0xf] }
 0x2a5   :  { %2820 = vmatmul.bf16.vlgmr.msrb.gmra.mxu2 %v9838_v53  ;;  %6181 = vmatmul.msk.bf16.vlgmr.msrb.gmra.mxu3 %vm2395_vm8, %v10109_v24  ;;  %v7507_v53 = vld [vmem:[%s11315_s3 + $0x3e8] sm:$0xf0]  ;;  %v6555_v24 = vld [vmem:[%s11315_s3 + $0x498] sm:$0xf] }
 0x2a6   :  { %3216 = vmatpush.bf16.msra.mxu2 %v6246_v32  ;;  %v6406_v8 = vor.u32 %v7507_v53, %v6405_v12  ;;  %v6556_v3 = vor.u32 %v7530_v34, %v6555_v24  ;;  %3623 = vmatpush.bf16.msrb.mxu3 %v6628_v17  ;;  %v6273_v32 = vld [vmem:[%s11315_s3 + $0x2d8] sm:$0xf]  ;;  %v7515_v12 = vld [vmem:[%s11315_s3 + $0x428] sm:$0xf0]  ;;  %v6357_v24 = vld [vmem:[%s11315_s3 + $0x380] sm:$0xf] }
 0x2a7   :  { %3245 = vmatpush.bf16.msrb.mxu0 %v6334_v41  ;;  %v6591_v41 = vld [vmem:[%s11315_s3 + $0x4e0] sm:$0xf]  ;;  %v7539_v53 = vld [vmem:[%s11315_s3 + $0x4e8] sm:$0xf0]  ;;  %v6274_v34 = vor.u32 %v7474_v29, %v6273_v32  ;;  %v7468_v17 = vld [vmem:[%s11315_s3 + $0x2b0] sm:$0xf0] }
 0x2a8   :  { %3265 = vmatpush.bf16.msrb.mxu1 %v6406_v8  ;;  %v6496_v8 = vor.u32 %v7515_v12, %v6495_v18  ;;  %v6592_v1 = vor.u32 %v7539_v53, %v6591_v41  ;;  %v6250_v21 = vor.u32 %v7468_v17, %v6249_v63  ;;  %v6533_v32 = vld [vmem:[%s11315_s3 + $0x474] sm:$0xf0]  ;;  %v6539_v18 = vld [vmem:[%s11315_s3 + $0x470] sm:$0xf]  ;;  %v7525_v12 = vld [vmem:[%s11315_s3 + $0x478] sm:$0xf0] }
 0x2a9   :  { %v6536_v29 = vor.u32 %v7523_v22, %v6533_v32  ;;  %v6635_v41 = vld [vmem:[%s11315_s3 + $0x530] sm:$0xf]  ;;  %v6540_v53 = vor.u32 %v7525_v12, %v6539_v18  ;;  %v6515_v17 = vld [vmem:[%s11315_s3 + $0x440] sm:$0xf]  ;;  %v7508_v12 = vld [vmem:[%s11315_s3 + $0x3f4] sm:$0xf] }
 0x2aa   :  { %3603 = vmatpush.bf16.msrb.mxu2 %v6556_v3  ;;  %3624 = vmatpush.bf16.msrb.mxu3 %v6616_v30  ;;  %v7495_v3 = vld [vmem:[%s11315_s3 + $0x388] sm:$0xf0]  ;;  %v6557_v30 = vld [vmem:[%s11315_s3 + $0x4a4] sm:$0xf0]  ;;  %v6593_v63 = vld [vmem:[%s11315_s3 + $0x4ec] sm:$0xf0] }
 0x2ab   :  { %3246 = vmatpush.bf16.msrb.mxu0 %v6322_v44  ;;  %v6358_v44 = vor.u32 %v7495_v3, %v6357_v24  ;;  %v6560_v14 = vor.u32 %v7529_v59, %v6557_v30  ;;  %v7549_v24 = vld [vmem:[%s11315_s3 + $0x538] sm:$0xf0]  ;;  %v6605_v3 = vld [vmem:[%s11315_s3 + $0x504] sm:$0xf0]  ;;  %v6497_v59 = vld [vmem:[%s11315_s3 + $0x42c] sm:$0xf0] }
 0x2ac   :  { %3266 = vmatpush.bf16.msrb.mxu1 %v6394_v42  ;;  %v6345_v42 = vld [vmem:[%s11315_s3 + $0x368] sm:$0xf]  ;;  %v6569_v18 = vld [vmem:[%s11315_s3 + $0x4bc] sm:$0xf0] }
 0x2ad   :  { %v6346_v0 = vor.u32 %v7492_v33, %v6345_v42  ;;  %v7546_v42 = vld [vmem:[%s11315_s3 + $0x520] sm:$0xf0]  ;;  %v6503_v30 = vld [vmem:[%s11315_s3 + $0x428] sm:$0xf] }
 0x2ae   :  { %3604 = vmatpush.bf16.msrb.mxu2 %v6544_v60  ;;  %3625 = vmatpush.bf16.msrb.mxu3 %v6604_v4  ;;  %v7536_v60 = vld [vmem:[%s11315_s3 + $0x4d0] sm:$0xf0] }
 0x2af   :  { %3247 = vmatpush.bf16.msrb.mxu0 %v6310_v48  ;;  %v6580_v27 = vor.u32 %v7536_v60, %v6579_v11  ;;  %v7509_v48 = vld [vmem:[%s11315_s3 + $0x3f8] sm:$0xf0]  ;;  %v7522_v11 = vld [vmem:[%s11315_s3 + $0x460] sm:$0xf0]  ;;  %v6524_v60 = vor.u32 %v7520_v46, %v6521_v25  ;;  %v6479_v46 = vld [vmem:[%s11315_s3 + $0x3f8] sm:$0xf] }
 0x2b0   :  { %3267 = vmatpush.bf16.msrb.mxu1 %v6382_v10  ;;  %v6472_v10 = vor.u32 %v7509_v48, %v6471_v38  ;;  %v6528_v20 = vor.u32 %v7522_v11, %v6527_v58  ;;  %v6575_v25 = vld [vmem:[%s11315_s3 + $0x4b8] sm:$0xf]  ;;  %v7534_v11 = vld [vmem:[%s11315_s3 + $0x4c0] sm:$0xf0] }
 0x2b2   :  { %3605 = vmatpush.bf16.msrb.mxu2 %v6532_v39  ;;  %3626 = vmatpush.bf16.msrb.mxu3 %v6592_v1  ;;  %v6567_v39 = vld [vmem:[%s11315_s3 + $0x4b0] sm:$0xf]  ;;  %v10554_v1 = vpack.c.bf16 %v9972_v36, %v9972_v36  ;;  %v6623_v36 = vld [vmem:[%s11315_s3 + $0x518] sm:$0xf] }
 0x2b3   :  { %3248 = vmatpush.bf16.msrb.mxu0 %v6298_v47  ;;  %v6568_v19 = vor.u32 %v7533_v61, %v6567_v39  ;;  %v6563_v47 = vld [vmem:[%s11315_s3 + $0x4a0] sm:$0xf]  ;;  %v6624_v33 = vor.u32 %v7546_v42, %v6623_v36  ;;  %v7572_v36 = vld [vmem:[%s11315_s3 + $0x5f0] sm:$0xf0]  ;;  %v7590_v42 = vld [vmem:[%s11315_s3 + $0x680] sm:$0xf0] }
 0x2b4   :  { %2789 = vmatmul.bf16.gmra.mxu0 %v10197_v50  ;;  %6180 = vmatmul.msk.bf16.gmra.mxu1 %vm2395_vm8, %v10201_v40  ;;  %v6611_v39 = vld [vmem:[%s11315_s3 + $0x500] sm:$0xf] }
 0x2b5   :  { %2825 = vmatmul.bf16.gmra.mxu2 %v10197_v50  ;;  %6182 = vmatmul.msk.bf16.gmra.mxu3 %vm2395_vm8, %v10201_v40  ;;  %v7498_v50 = vld [vmem:[%s11315_s3 + $0x3a0] sm:$0xf0]  ;;  %v6507_v40 = vld [vmem:[%s11315_s3 + $0x438] sm:$0xf] }
 0x2b6   :  { %3606 = vmatpush.bf16.msrb.mxu2 %v6520_v45  ;;  %v6370_v16 = vor.u32 %v7498_v50, %v6369_v49  ;;  %v6508_v55 = vor.u32 %v7518_v31, %v6507_v40  ;;  %3627 = vmatpush.bf16.msrb.mxu3 %v6580_v27  ;;  %v7531_v45 = vld [vmem:[%s11315_s3 + $0x4a8] sm:$0xf0]  ;;  %v7526_v49 = vld [vmem:[%s11315_s3 + $0x484] sm:$0xf]  ;;  %v6551_v40 = vld [vmem:[%s11315_s3 + $0x488] sm:$0xf] }
 0x2b7   :  { %3249 = vmatpush.bf16.msrb.mxu0 %v6286_v56  ;;  %v6564_v15 = vor.u32 %v7531_v45, %v6563_v47  ;;  %v6545_v56 = vld [vmem:[%s11315_s3 + $0x48c] sm:$0xf0]  ;;  %v7528_v31 = vld [vmem:[%s11315_s3 + $0x490] sm:$0xf0] }
 0x2b8   :  { %3268 = vmatpush.bf16.msrb.mxu1 %v6370_v16  ;;  %v6548_v50 = vor.u32 %v7526_v49, %v6545_v56  ;;  %v7544_v16 = vld [vmem:[%s11315_s3 + $0x514] sm:$0xf]  ;;  %v6581_v49 = vld [vmem:[%s11315_s3 + $0x4d4] sm:$0xf0]  ;;  %v7511_v56 = vld [vmem:[%s11315_s3 + $0x40c] sm:$0xf] }
 0x2b9   :  { %v6620_v4 = vor.u32 %v7544_v16, %v6617_v7  ;;  %v7540_v47 = vld [vmem:[%s11315_s3 + $0x4f0] sm:$0xf0]  ;;  %v7513_v16 = vld [vmem:[%s11315_s3 + $0x418] sm:$0xf0] }
 0x2ba   :  { %3607 = vmatpush.bf16.msrb.mxu2 %v6508_v55  ;;  %3628 = vmatpush.bf16.msrb.mxu3 %v6568_v19  ;;  %v6552_v55 = vor.u32 %v7528_v31, %v6551_v40  ;;  %v7514_v19 = vld [vmem:[%s11315_s3 + $0x424] sm:$0xf]  ;;  %v6485_v40 = vld [vmem:[%s11315_s3 + $0x414] sm:$0xf0]  ;;  %v6491_v31 = vld [vmem:[%s11315_s3 + $0x410] sm:$0xf] }
 0x2bb   :  { %3250 = vmatpush.bf16.msrb.mxu0 %v6274_v34  ;;  %v6636_v34 = vor.u32 %v7549_v24, %v6635_v41  ;;  %v6500_v2 = vor.u32 %v7514_v19, %v6497_v59  ;;  %v7537_v7 = vld [vmem:[%s11315_s3 + $0x4d8] sm:$0xf0]  ;;  %v6488_v22 = vor.u32 %v7511_v56, %v6485_v40  ;;  %v6492_v32 = vor.u32 %v7513_v16, %v6491_v31  ;;  %v6473_v24 = vld [vmem:[%s11315_s3 + $0x3fc] sm:$0xf0] }
 0x2bc   :  { %3269 = vmatpush.bf16.msrb.mxu1 %v6358_v44  ;;  %v6775_v59 = vld [vmem:[%s11315_s3 + $0x5dc] sm:$0xf0]  ;;  %v7589_v56 = vld [vmem:[%s11315_s3 + $0x67c] sm:$0xf] }
 0x2be   :  { %3608 = vmatpush.bf16.msrb.mxu2 %v6496_v8  ;;  %v7541_v8 = vld [vmem:[%s11315_s3 + $0x4fc] sm:$0xf] }
 0x2bf   :  { %3251 = vmatpush.bf16.msrb.mxu0 %v6262_v9  ;;  %v6608_v44 = vor.u32 %v7541_v8, %v6605_v3  ;;  %v6509_v9 = vld [vmem:[%s11315_s3 + $0x444] sm:$0xf0]  ;;  %v6476_v3 = vor.u32 %v7508_v12, %v6473_v24  ;;  %v7562_v24 = vld [vmem:[%s11315_s3 + $0x5a4] sm:$0xf] }
 0x2c0   :  { %3270 = vmatpush.bf16.msrb.mxu1 %v6346_v0  ;;  %v7517_v0 = vld [vmem:[%s11315_s3 + $0x43c] sm:$0xf]  ;;  %v6833_v12 = vld [vmem:[%s11315_s3 + $0x648] sm:$0xf] }
 0x2c1   :  { %v6512_v27 = vor.u32 %v7517_v0, %v6509_v9  ;;  %v6787_v0 = vld [vmem:[%s11315_s3 + $0x5f4] sm:$0xf0] }
 0x2c2   :  { %3609 = vmatpush.bf16.msrb.mxu2 %v6484_v52  ;;  %v7538_v52 = vld [vmem:[%s11315_s3 + $0x4e4] sm:$0xf] }
 0x2c3   :  { %3252 = vmatpush.bf16.msrb.mxu0 %v6250_v21  ;;  %v7519_v21 = vld [vmem:[%s11315_s3 + $0x448] sm:$0xf0]  ;;  %v6596_v38 = vor.u32 %v7538_v52, %v6593_v63 }
 0x2c4   :  { %3181 = vmatmul.bf16.vlgmr.msra.gmra.mxu0 %v9894_v62  ;;  %6407 = vmatmul.msk.bf16.vlgmr.msra.gmra.mxu1 %vm2395_vm8, %v9969_v5  ;;  %v6516_v48 = vor.u32 %v7519_v21, %v6515_v17 }
 0x2c5   :  { %3217 = vmatmul.bf16.vlgmr.msra.gmra.mxu2 %v9894_v62  ;;  %6409 = vmatmul.msk.bf16.vlgmr.msra.gmra.mxu3 %vm2395_vm8, %v9969_v5 }
 0x2c6   :  { %3610 = vmatpush.bf16.msrb.mxu2 %v6472_v10  ;;  %3659 = vmatpush.bf16.msra.mxu1 %v6632_v23  ;;  %v7543_v10 = vld [vmem:[%s11315_s3 + $0x508] sm:$0xf0]  ;;  %v6600_v23 = vor.u32 %v7540_v47, %v6599_v13  ;;  %v6761_v47 = vld [vmem:[%s11315_s3 + $0x5b8] sm:$0xf] }
 0x2c7   :  { %3639 = vmatpush.bf16.msra.mxu0 %v6560_v14  ;;  %3695 = vmatpush.bf16.msra.mxu3 %v6636_v34  ;;  %v6612_v61 = vor.u32 %v7543_v10, %v6611_v39  ;;  %v7516_v14 = vld [vmem:[%s11315_s3 + $0x430] sm:$0xf0]  ;;  %v6773_v39 = vld [vmem:[%s11315_s3 + $0x5d0] sm:$0xf]  ;;  %v7569_v10 = vld [vmem:[%s11315_s3 + $0x5d8] sm:$0xf0] }
 0x2c8   :  { %v6504_v45 = vor.u32 %v7516_v14, %v6503_v30  ;;  %v6774_v19 = vor.u32 %v7569_v10, %v6773_v39  ;;  %v6845_v30 = vld [vmem:[%s11315_s3 + $0x660] sm:$0xf]  ;;  %v6725_v39 = vld [vmem:[%s11315_s3 + $0x570] sm:$0xf]  ;;  %v7557_v10 = vld [vmem:[%s11315_s3 + $0x578] sm:$0xf0] }
 0x2ca   :  { %3675 = vmatpush.bf16.msra.mxu2 %v6564_v15  ;;  %3660 = vmatpush.bf16.msra.mxu1 %v6620_v4  ;;  %v7535_v15 = vld [vmem:[%s11315_s3 + $0x4cc] sm:$0xf] }
 0x2cb   :  { %3640 = vmatpush.bf16.msra.mxu0 %v6548_v50  ;;  %3696 = vmatpush.bf16.msra.mxu3 %v6624_v33  ;;  %v6584_v50 = vor.u32 %v7535_v15, %v6581_v49  ;;  %v7571_v33 = vld [vmem:[%s11315_s3 + $0x5ec] sm:$0xf]  ;;  %v6763_v49 = vld [vmem:[%s11315_s3 + $0x5c4] sm:$0xf0] }
 0x2cc   :  { %v6790_v52 = vor.u32 %v7571_v33, %v6787_v0 }
 0x2ce   :  { %3676 = vmatpush.bf16.msra.mxu2 %v6552_v55  ;;  %3661 = vmatpush.bf16.msra.mxu1 %v6608_v44  ;;  %v6587_v55 = vld [vmem:[%s11315_s3 + $0x4d0] sm:$0xf]  ;;  %v7510_v44 = vld [vmem:[%s11315_s3 + $0x400] sm:$0xf0] }
 0x2cf   :  { %3641 = vmatpush.bf16.msra.mxu0 %v6536_v29  ;;  %3697 = vmatpush.bf16.msra.mxu3 %v6612_v61  ;;  %v6588_v4 = vor.u32 %v7537_v7, %v6587_v55  ;;  %v7532_v29 = vld [vmem:[%s11315_s3 + $0x4b4] sm:$0xf]  ;;  %v6480_v58 = vor.u32 %v7510_v44, %v6479_v46  ;;  %v6847_v46 = vld [vmem:[%s11315_s3 + $0x66c] sm:$0xf0]  ;;  %v6737_v44 = vld [vmem:[%s11315_s3 + $0x588] sm:$0xf] }
 0x2d0   :  { %v6572_v8 = vor.u32 %v7532_v29, %v6569_v18  ;;  %v7568_v61 = vld [vmem:[%s11315_s3 + $0x5d4] sm:$0xf]  ;;  %v10739_v29 = vpack.c.bf16 %v9489_v6, %v9489_v6  ;;  %v10743_v18 = vpack.c.bf16 %v9625_v51, %v9625_v51  ;;  %v7563_v51 = vld [vmem:[%s11315_s3 + $0x5a8] sm:$0xf0] }
 0x2d1   :  { %v6778_v14 = vor.u32 %v7568_v61, %v6775_v59  ;;  %v7556_v61 = vld [vmem:[%s11315_s3 + $0x574] sm:$0xf]  ;;  %v6727_v59 = vld [vmem:[%s11315_s3 + $0x57c] sm:$0xf0] }
 0x2d2   :  { %3677 = vmatpush.bf16.msra.mxu2 %v6540_v53  ;;  %3662 = vmatpush.bf16.msra.mxu1 %v6596_v38 }
 0x2d3   :  { %3642 = vmatpush.bf16.msra.mxu0 %v6524_v60  ;;  %3698 = vmatpush.bf16.msra.mxu3 %v6600_v23  ;;  %v6576_v60 = vor.u32 %v7534_v11, %v6575_v25  ;;  %v7565_v23 = vld [vmem:[%s11315_s3 + $0x5bc] sm:$0xf]  ;;  %v6821_v11 = vld [vmem:[%s11315_s3 + $0x630] sm:$0xf] }
 0x2d4   :  { %3186 = vmatmul.bf16.gmra.mxu0 %v10550_v35  ;;  %6408 = vmatmul.msk.bf16.gmra.mxu1 %vm2395_vm8, %v10554_v1  ;;  %v6766_v40 = vor.u32 %v7565_v23, %v6763_v49  ;;  %v6713_v23 = vld [vmem:[%s11315_s3 + $0x558] sm:$0xf]  ;;  %v7554_v49 = vld [vmem:[%s11315_s3 + $0x560] sm:$0xf0] }
 0x2d5   :  { %3222 = vmatmul.bf16.gmra.mxu2 %v10550_v35  ;;  %6410 = vmatmul.msk.bf16.gmra.mxu3 %vm2395_vm8, %v10554_v1 }
 0x2d6   :  { %3678 = vmatpush.bf16.msra.mxu2 %v6528_v20  ;;  %3663 = vmatpush.bf16.msra.mxu1 %v6584_v50  ;;  %v6785_v20 = vld [vmem:[%s11315_s3 + $0x5e8] sm:$0xf] }
 0x2d7   :  { %3643 = vmatpush.bf16.msra.mxu0 %v6512_v27  ;;  %3699 = vmatpush.bf16.msra.mxu3 %v6588_v4  ;;  %v6859_v50 = vld [vmem:[%s11315_s3 + $0x684] sm:$0xf0] }
 0x2d8   :  { %v6862_v31 = vor.u32 %v7589_v56, %v6859_v50  ;;  %v7553_v56 = vld [vmem:[%s11315_s3 + $0x55c] sm:$0xf]  ;;  %v6715_v50 = vld [vmem:[%s11315_s3 + $0x564] sm:$0xf0] }
 0x2da   :  { %3679 = vmatpush.bf16.msra.mxu2 %v6516_v48  ;;  %3664 = vmatpush.bf16.msra.mxu1 %v6572_v8  ;;  %v6751_v8 = vld [vmem:[%s11315_s3 + $0x5ac] sm:$0xf0] }
 0x2db   :  { %3644 = vmatpush.bf16.msra.mxu0 %v6500_v2  ;;  %3700 = vmatpush.bf16.msra.mxu3 %v6576_v60  ;;  %v7587_v2 = vld [vmem:[%s11315_s3 + $0x668] sm:$0xf0]  ;;  %v7581_v60 = vld [vmem:[%s11315_s3 + $0x638] sm:$0xf0] }
 0x2dc   :  { %v6846_v13 = vor.u32 %v7587_v2, %v6845_v30  ;;  %v7580_v30 = vld [vmem:[%s11315_s3 + $0x634] sm:$0xf]  ;;  %v6823_v2 = vld [vmem:[%s11315_s3 + $0x63c] sm:$0xf0] }
 0x2de   :  { %3680 = vmatpush.bf16.msra.mxu2 %v6504_v45  ;;  %v7566_v45 = vld [vmem:[%s11315_s3 + $0x5c0] sm:$0xf0] }
 0x2df   :  { %3645 = vmatpush.bf16.msra.mxu0 %v6488_v22  ;;  %v6762_v15 = vor.u32 %v7566_v45, %v6761_v47  ;;  %v6809_v47 = vld [vmem:[%s11315_s3 + $0x618] sm:$0xf]  ;;  %v7578_v45 = vld [vmem:[%s11315_s3 + $0x620] sm:$0xf0] }
 0x2e1   :  { %v2411_v41 = vpop.f32.mrf.mxu0  ;;  %v2429_v53 = vpop.f32.mrf.mxu1 }
 0x2e2   :  { %v10655_v34 = vadd.f32 %v2429_v53, %v2411_v41  ;;  %3681 = vmatpush.bf16.msra.mxu2 %v6492_v32  ;;  %v7584_v41 = vld [vmem:[%s11315_s3 + $0x650] sm:$0xf0]  ;;  %v6749_v53 = vld [vmem:[%s11315_s3 + $0x5a0] sm:$0xf] }
 0x2e3   :  { %3646 = vmatpush.bf16.msra.mxu0 %v6476_v3  ;;  %v6834_v6 = vor.u32 %v7584_v41, %v6833_v12  ;;  %v7586_v3 = vld [vmem:[%s11315_s3 + $0x664] sm:$0xf]  ;;  %v6797_v12 = vld [vmem:[%s11315_s3 + $0x600] sm:$0xf]  ;;  %v7575_v41 = vld [vmem:[%s11315_s3 + $0x608] sm:$0xf0] }
 0x2e4   :  { %3253 = vmatmul.bf16.vlgmr.msrb.gmra.mxu0 %v9894_v62  ;;  %6411 = vmatmul.msk.bf16.vlgmr.msrb.gmra.mxu1 %vm2395_vm8, %v9969_v5  ;;  %v6857_v62 = vld [vmem:[%s11315_s3 + $0x678] sm:$0xf]  ;;  %v6786_v5 = vor.u32 %v7572_v36, %v6785_v20  ;;  %v6850_v25 = vor.u32 %v7586_v3, %v6847_v46  ;;  %v6822_v36 = vor.u32 %v7581_v60, %v6821_v11  ;;  %v7550_v46 = vld [vmem:[%s11315_s3 + $0x544] sm:$0xf]  ;;  %v6799_v11 = vld [vmem:[%s11315_s3 + $0x60c] sm:$0xf0] }
 0x2e5   :  { %3611 = vmatmul.bf16.vlgmr.msrb.gmra.mxu2 %v9988_v43  ;;  %6637 = vmatmul.msk.bf16.vlgmr.msrb.gmra.mxu3 %vm2395_vm8, %v10015_v57  ;;  %v6858_v9 = vor.u32 %v7590_v42, %v6857_v62  ;;  %v7559_v62 = vld [vmem:[%s11315_s3 + $0x58c] sm:$0xf]  ;;  %v6793_v60 = vld [vmem:[%s11315_s3 + $0x5f0] sm:$0xf] }
 0x2e6   :  { %3682 = vmatpush.bf16.msra.mxu2 %v6480_v58  ;;  %4085 = vmatpush.bf16.msrb.mxu3 %v6862_v31  ;;  %v7560_v58 = vld [vmem:[%s11315_s3 + $0x590] sm:$0xf0]  ;;  %v7583_v42 = vld [vmem:[%s11315_s3 + $0x64c] sm:$0xf]  ;;  %v6718_v31 = vor.u32 %v7553_v56, %v6715_v50  ;;  %v6757_v56 = vld [vmem:[%s11315_s3 + $0x5a8] sm:$0xf] }
 0x2e7   :  { %4029 = vmatpush.bf16.msrb.mxu0 %v6786_v5  ;;  %4049 = vmatpush.bf16.msrb.mxu1 %v6858_v9  ;;  %v6738_v20 = vor.u32 %v7560_v58, %v6737_v44  ;;  %v6739_v5 = vld [vmem:[%s11315_s3 + $0x594] sm:$0xf0]  ;;  %v6703_v44 = vld [vmem:[%s11315_s3 + $0x54c] sm:$0xf0] }
 0x2e8   :  { %v2447_v27 = vpop.f32.mrf.mxu2  ;;  %v2465_v63 = vpop.f32.mrf.mxu3  ;;  %v6742_v9 = vor.u32 %v7559_v62, %v6739_v5  ;;  %v6706_v58 = vor.u32 %v7550_v46, %v6703_v44  ;;  %v7591_v62 = vld [vmem:[%s11315_s3 + $0x688] sm:$0xf0]  ;;  %v6721_v44 = vld [vmem:[%s11315_s3 + $0x560] sm:$0xf] }
 0x2e9   :  { %v10693_v17 = vadd.f32 %v2465_v63, %v2447_v27  ;;  %v2413_v21 = vpop.f32.mrf.mxu0  ;;  %v2431_v38 = vpop.f32.mrf.mxu1 }
 0x2ea   :  { %4065 = vmatpush.bf16.msrb.mxu2 %v6790_v52  ;;  %v10695_v48 = vadd.f32 %v2431_v38, %v2413_v21  ;;  %4086 = vmatpush.bf16.msrb.mxu3 %v6850_v25  ;;  %v6835_v52 = vld [vmem:[%s11315_s3 + $0x654] sm:$0xf0]  ;;  %v7574_v25 = vld [vmem:[%s11315_s3 + $0x604] sm:$0xf] }
 0x2eb   :  { %4030 = vmatpush.bf16.msrb.mxu0 %v6774_v19  ;;  %4050 = vmatpush.bf16.msrb.mxu1 %v6846_v13  ;;  %v6838_v38 = vor.u32 %v7583_v42, %v6835_v52  ;;  %v6726_v19 = vor.u32 %v7557_v10, %v6725_v39  ;;  %v6826_v13 = vor.u32 %v7580_v30, %v6823_v2  ;;  %v7570_v39 = vld [vmem:[%s11315_s3 + $0x5e0] sm:$0xf0]  ;;  %v7567_v30 = vld [vmem:[%s11315_s3 + $0x5c8] sm:$0xf0] }
 0x2ee   :  { %4066 = vmatpush.bf16.msrb.mxu2 %v6778_v14  ;;  %4087 = vmatpush.bf16.msrb.mxu3 %v6838_v38  ;;  %v6730_v14 = vor.u32 %v7556_v61, %v6727_v59  ;;  %v6781_v38 = vld [vmem:[%s11315_s3 + $0x5d8] sm:$0xf]  ;;  %v7588_v61 = vld [vmem:[%s11315_s3 + $0x670] sm:$0xf0] }
 0x2ef   :  { %4031 = vmatpush.bf16.msrb.mxu0 %v6762_v15  ;;  %4051 = vmatpush.bf16.msrb.mxu1 %v6834_v6  ;;  %v6810_v15 = vor.u32 %v7578_v45, %v6809_v47  ;;  %v6782_v10 = vor.u32 %v7570_v39, %v6781_v38 }
 0x2f0   :  { %v2449_v16 = vpop.f32.mrf.mxu2  ;;  %v2467_v55 = vpop.f32.mrf.mxu3 }
 0x2f1   :  { %v10733_v7 = vadd.f32 %v2467_v55, %v2449_v16  ;;  %v2416_v22 = vpop.f32.mrf.mxu0  ;;  %v2434_v32 = vpop.f32.mrf.mxu1  ;;  %v7577_v16 = vld [vmem:[%s11315_s3 + $0x61c] sm:$0xf]  ;;  %v6811_v55 = vld [vmem:[%s11315_s3 + $0x624] sm:$0xf0] }
 0x2f2   :  { %v10735_v4 = vadd.f32 %v2434_v32, %v2416_v22  ;;  %4067 = vmatpush.bf16.msrb.mxu2 %v6766_v40  ;;  %v6714_v40 = vor.u32 %v7554_v49, %v6713_v23  ;;  %4088 = vmatpush.bf16.msrb.mxu3 %v6826_v13  ;;  %v7585_v49 = vld [vmem:[%s11315_s3 + $0x658] sm:$0xf0] }
 0x2f3   :  { %4052 = vmatpush.bf16.msrb.mxu1 %v6822_v36  ;;  %v6802_v36 = vor.u32 %v7574_v25, %v6799_v11  ;;  %v7555_v25 = vld [vmem:[%s11315_s3 + $0x568] sm:$0xf0] }
 0x2f4   :  { %3258 = vmatmul.bf16.gmra.mxu0 %v10550_v35  ;;  %6412 = vmatmul.msk.bf16.gmra.mxu1 %vm2395_vm8, %v10554_v1  ;;  %v6750_v35 = vor.u32 %v7563_v51, %v6749_v53  ;;  %v6754_v1 = vor.u32 %v7562_v24, %v6751_v8  ;;  %v6701_v53 = vld [vmem:[%s11315_s3 + $0x540] sm:$0xf]  ;;  %v7551_v24 = vld [vmem:[%s11315_s3 + $0x548] sm:$0xf0]  ;;  %v6722_v11 = vor.u32 %v7555_v25, %v6721_v44 }
 0x2f5   :  { %3616 = vmatmul.bf16.gmra.mxu2 %v10739_v29  ;;  %6638 = vmatmul.msk.bf16.gmra.mxu3 %vm2395_vm8, %v10743_v18  ;;  %v6702_v3 = vor.u32 %v7551_v24, %v6701_v53 }
 0x2f6   :  { %4032 = vmatpush.bf16.msrb.mxu0 %v6750_v35  ;;  %4068 = vmatpush.bf16.msrb.mxu2 %v6754_v1  ;;  %v6814_v35 = vor.u32 %v7577_v16, %v6811_v55  ;;  %v6798_v1 = vor.u32 %v7575_v41, %v6797_v12  ;;  %v6745_v16 = vld [vmem:[%s11315_s3 + $0x590] sm:$0xf]  ;;  %v7561_v55 = vld [vmem:[%s11315_s3 + $0x598] sm:$0xf0] }
 0x2f7   :  { %4053 = vmatpush.bf16.msrb.mxu1 %v6810_v15  ;;  %v6841_v15 = vld [vmem:[%s11315_s3 + $0x650] sm:$0xf] }
 0x2f8   :  { %v2452_v33 = vpop.f32.mrf.mxu2  ;;  %v2470_v0 = vpop.f32.mrf.mxu3  ;;  %4089 = vmatpush.bf16.msrb.mxu3 %v6814_v35  ;;  %v6842_v50 = vor.u32 %v7585_v49, %v6841_v15  ;;  %v6733_v35 = vld [vmem:[%s11315_s3 + $0x578] sm:$0xf]  ;;  %v3741_v15 = vpack.c.bf16 %v9994_v37, %v9994_v37 }
 0x2f9   :  { %v10799_v27 = vadd.f32 %v2470_v0, %v2452_v33  ;;  %v2418_v63 = vpop.f32.mrf.mxu0  ;;  %v2436_v21 = vpop.f32.mrf.mxu1 }
 0x2fa   :  { %4033 = vmatpush.bf16.msrb.mxu0 %v6738_v20  ;;  %4069 = vmatpush.bf16.msrb.mxu2 %v6742_v9  ;;  %v7573_v20 = vld [vmem:[%s11315_s3 + $0x5f8] sm:$0xf0] }
 0x2fb   :  { %4054 = vmatpush.bf16.msrb.mxu1 %v6798_v1  ;;  %v7558_v1 = vld [vmem:[%s11315_s3 + $0x580] sm:$0xf0] }
 0x2fc   :  { %4090 = vmatpush.bf16.msrb.mxu3 %v6802_v36  ;;  %v6734_v46 = vor.u32 %v7558_v1, %v6733_v35  ;;  %v6805_v36 = vld [vmem:[%s11315_s3 + $0x608] sm:$0xf] }
 0x2fe   :  { %4034 = vmatpush.bf16.msrb.mxu0 %v6726_v19  ;;  %4070 = vmatpush.bf16.msrb.mxu2 %v6730_v14  ;;  %v6769_v19 = vld [vmem:[%s11315_s3 + $0x5c0] sm:$0xf] }
 0x2ff   :  { %v6770_v2 = vor.u32 %v7567_v30, %v6769_v19 }
 0x300   :  { %v2454_v22 = vpop.f32.mrf.mxu2  ;;  %v2472_v32 = vpop.f32.mrf.mxu3 }
 0x301   :  { %v2483_v6 = vpop.f32.mrf.mxu0  ;;  %v2501_v51 = vpop.f32.mrf.mxu1  ;;  %v6829_v22 = vld [vmem:[%s11315_s3 + $0x638] sm:$0xf] }
 0x302   :  { %v10855_v8 = vadd.f32 %v2501_v51, %v2483_v6  ;;  %4035 = vmatpush.bf16.msrb.mxu0 %v6714_v40  ;;  %4071 = vmatpush.bf16.msrb.mxu2 %v6718_v31  ;;  %v7564_v40 = vld [vmem:[%s11315_s3 + $0x5b0] sm:$0xf0] }
 0x303   :  { %v6758_v31 = vor.u32 %v7564_v40, %v6757_v56 }
 0x304   :  { %3647 = vmatmul.bf16.vlgmr.msra.gmra.mxu0 %v9988_v43  ;;  %6639 = vmatmul.msk.bf16.vlgmr.msra.gmra.mxu1 %vm2395_vm8, %v10015_v57 }
 0x305   :  { %3683 = vmatmul.bf16.vlgmr.msra.gmra.mxu2 %v9988_v43  ;;  %6641 = vmatmul.msk.bf16.vlgmr.msra.gmra.mxu3 %vm2395_vm8, %v10015_v57  ;;  %v6794_v43 = vor.u32 %v7573_v20, %v6793_v60  ;;  %v6865_v57 = vld [vmem:[%s11315_s3 + $0x680] sm:$0xf] }
 0x306   :  { %4036 = vmatpush.bf16.msrb.mxu0 %v6702_v3  ;;  %4072 = vmatpush.bf16.msrb.mxu2 %v6706_v58  ;;  %v6866_v5 = vor.u32 %v7591_v62, %v6865_v57  ;;  %v6817_v3 = vld [vmem:[%s11315_s3 + $0x620] sm:$0xf]  ;;  %v6709_v57 = vld [vmem:[%s11315_s3 + $0x548] sm:$0xf] }
 0x308   :  { %v2749_v42 = vpop.f32.mrf.mxu2  ;;  %v2767_v33 = vpop.f32.mrf.mxu3  ;;  %4121 = vmatpush.bf16.msra.mxu1 %v6866_v5 }
 0x309   :  { %v2750_v0 = vadd.f32 %v2749_v42, %v10655_v34  ;;  %v2485_v9 = vpop.f32.mrf.mxu0  ;;  %v2503_v52 = vpop.f32.mrf.mxu1  ;;  %v6853_v34 = vld [vmem:[%s11315_s3 + $0x668] sm:$0xf] }
 0x30a   :  { %4101 = vmatpush.bf16.msra.mxu0 %v6794_v43  ;;  %v10888_v63 = vadd.f32 %v2503_v52, %v2485_v9  ;;  %v6854_v59 = vor.u32 %v7588_v61, %v6853_v34  ;;  %v7576_v43 = vld [vmem:[%s11315_s3 + $0x610] sm:$0xf0] }
 0x30b   :  { %v10890_v21 = vadd.f32 %v2767_v33, %v2750_v0  ;;  %v6806_v42 = vor.u32 %v7576_v43, %v6805_v36  ;;  %v7552_v33 = vld [vmem:[%s11315_s3 + $0x550] sm:$0xf0] }
 0x30c   :  { %4122 = vmatpush.bf16.msra.mxu1 %v6854_v59  ;;  %v6710_v9 = vor.u32 %v7552_v33, %v6709_v57 }
 0x30e   :  { %4102 = vmatpush.bf16.msra.mxu0 %v6782_v10 }
 0x310   :  { %v10910_v14 = vpop.f32.mrf.mxu2  ;;  %v10912_v13 = vpop.f32.mrf.mxu3  ;;  %4123 = vmatpush.bf16.msra.mxu1 %v6842_v50 }
 0x311   :  { %v2488_v47 = vpop.f32.mrf.mxu0  ;;  %v2506_v45 = vpop.f32.mrf.mxu1 }
 0x312   :  { %v10914_v23 = vadd.f32 %v2506_v45, %v2488_v47  ;;  %4103 = vmatpush.bf16.msra.mxu0 %v6770_v2  ;;  %v3740_v45 = vpack.c.bf16 %v9986_v26, %v9986_v26 }
 0x314   :  { %3652 = vmatmul.bf16.gmra.mxu0 %v10739_v29  ;;  %6640 = vmatmul.msk.bf16.gmra.mxu1 %vm2395_vm8, %v10743_v18 }
 0x315   :  { %3688 = vmatmul.bf16.gmra.mxu2 %v10739_v29  ;;  %6642 = vmatmul.msk.bf16.gmra.mxu3 %vm2395_vm8, %v10743_v18  ;;  %v7582_v29 = vld [vmem:[%s11315_s3 + $0x640] sm:$0xf0]  ;;  %v6746_v18 = vor.u32 %v7561_v55, %v6745_v16 }
 0x316   :  { %4104 = vmatpush.bf16.msra.mxu0 %v6758_v31  ;;  %v6830_v32 = vor.u32 %v7582_v29, %v6829_v22 }
 0x318   :  { %v2754_v12 = vpop.f32.mrf.mxu2  ;;  %v2772_v41 = vpop.f32.mrf.mxu3  ;;  %4124 = vmatpush.bf16.msra.mxu1 %v6830_v32 }
 0x319   :  { %v2755_v53 = vadd.f32 %v2754_v12, %v10735_v4  ;;  %v2490_v6 = vpop.f32.mrf.mxu0  ;;  %v2508_v51 = vpop.f32.mrf.mxu1  ;;  %v7579_v4 = vld [vmem:[%s11315_s3 + $0x628] sm:$0xf0]  ;;  %s7694_s3 = smov 96  }
 0x31a   :  { %4105 = vmatpush.bf16.msra.mxu0 %v6746_v18  ;;  %v6818_v58 = vor.u32 %v7579_v4, %v6817_v3  ;;  %v2752_v18 = vadd.f32 %v10910_v14, %v10695_v48 }
 0x31b   :  { %v10947_v24 = vadd.f32 %v2772_v41, %v2755_v53 }
 0x31c   :  { %4125 = vmatpush.bf16.msra.mxu1 %v6818_v58  ;;  %v2770_v6 = vadd.f32 %v10912_v13, %v2752_v18 }
 0x31e   :  { %4106 = vmatpush.bf16.msra.mxu0 %v6734_v46 }
 0x320   :  { %v2756_v60 = vpop.f32.mrf.mxu2  ;;  %v2774_v20 = vpop.f32.mrf.mxu3  ;;  %4126 = vmatpush.bf16.msra.mxu1 %v6806_v42 }
 0x321   :  { %v2785_v62 = vpop.f32.mrf.mxu0  ;;  %v2803_v5 = vpop.f32.mrf.mxu1 }
 0x322   :  { %v2786_v0 = vadd.f32 %v2785_v62, %v10693_v17  ;;  %4107 = vmatpush.bf16.msra.mxu0 %v6722_v11 }
 0x324   :  { %v2804_v52 = vadd.f32 %v2803_v5, %v2786_v0  ;;  %4037 = vmatmul.bf16.vlgmr.msrb.gmra.mxu0 %v9910_v28  ;;  %6867 = vmatmul.msk.bf16.vlgmr.msrb.gmra.mxu1 %vm2395_vm8, %v9945_v54 }
 0x325   :  { %4073 = vmatmul.bf16.vlgmr.msrb.gmra.mxu2 %v9910_v28  ;;  %6869 = vmatmul.msk.bf16.vlgmr.msrb.gmra.mxu3 %vm2395_vm8, %v9945_v54 }
 0x326   :  { %4108 = vmatpush.bf16.msra.mxu0 %v6710_v9 }
 0x328   :  { %v2821_v38 = vpop.f32.mrf.mxu2  ;;  %v2839_v39 = vpop.f32.mrf.mxu3 }
 0x329   :  { %v2822_v10 = vadd.f32 %v2821_v38, %v10855_v8  ;;  %v2787_v17 = vpop.f32.mrf.mxu0  ;;  %v2805_v34 = vpop.f32.mrf.mxu1 }
 0x32b   :  { %v2840_v61 = vadd.f32 %v2839_v39, %v2822_v10 }
 0x330   :  { %v2823_v19 = vpop.f32.mrf.mxu2  ;;  %v10987_v59 = vpop.f32.mrf.mxu3 }
 0x331   :  { %v2790_v30 = vpop.f32.mrf.mxu0  ;;  %v2808_v2 = vpop.f32.mrf.mxu1  ;;  %v2824_v33 = vadd.f32 %v2823_v19, %v10888_v63 }
 0x332   :  { %v2791_v47 = vadd.f32 %v2790_v30, %v10799_v27 }
 0x333   :  { %v2842_v39 = vadd.f32 %v10987_v59, %v2824_v33 }
 0x334   :  { %v2809_v49 = vadd.f32 %v2808_v2, %v2791_v47  ;;  %4042 = vmatmul.bf16.gmra.mxu0 %v3740_v45  ;;  %6868 = vmatmul.msk.bf16.gmra.mxu1 %vm2395_vm8, %v3741_v15 }
 0x335   :  { %4078 = vmatmul.bf16.gmra.mxu2 %v3740_v45  ;;  %6870 = vmatmul.msk.bf16.gmra.mxu3 %vm2395_vm8, %v3741_v15 }
 0x338   :  { %v2826_v8 = vpop.f32.mrf.mxu2  ;;  %v2844_v56 = vpop.f32.mrf.mxu3 }
 0x339   :  { %v2827_v50 = vadd.f32 %v2826_v8, %v10914_v23  ;;  %v2792_v40 = vpop.f32.mrf.mxu0  ;;  %v2810_v31 = vpop.f32.mrf.mxu1 }
 0x33b   :  { %v2845_v27 = vadd.f32 %v2844_v56, %v2827_v50 }
 0x340   :  { %v2828_v16 = vpop.f32.mrf.mxu2  ;;  %v2846_v55 = vpop.f32.mrf.mxu3 }
 0x341   :  { %v3182_v26 = vpop.f32.mrf.mxu0  ;;  %v3200_v22 = vpop.f32.mrf.mxu1 }
 0x342   :  { %v3201_v29 = vadd.f32 %v3200_v22, %v3182_v26 }
 0x344   :  { %v3281_v37 = vadd.f32 %v3201_v29, %v10890_v21  ;;  %4109 = vmatmul.bf16.vlgmr.msra.gmra.mxu0 %v9910_v28  ;;  %6871 = vmatmul.msk.bf16.vlgmr.msra.gmra.mxu1 %vm2395_vm8, %v9945_v54  ;;  %v2788_v21 = vadd.f32 %v2787_v17, %v10733_v7 }
 0x346   :  { %v2806_v46 = vadd.f32 %v2805_v34, %v2788_v21 }
 0x348   :  { %v3218_v32 = vpop.f32.mrf.mxu2  ;;  %v3236_v23 = vpop.f32.mrf.mxu3 }
 0x349   :  { %v3237_v12 = vadd.f32 %v3236_v23, %v3218_v32  ;;  %v3184_v41 = vpop.f32.mrf.mxu0  ;;  %v3202_v53 = vpop.f32.mrf.mxu1 }
 0x34a   :  { %v3203_v51 = vadd.f32 %v3202_v53, %v3184_v41 }
 0x34b   :  { %v3282_v35 = vadd.f32 %v3237_v12, %v2804_v52 }
 0x34c   :  { %v3284_v1 = vadd.f32 %v3203_v51, %v2770_v6 }
 0x350   :  { %v3220_v3 = vpop.f32.mrf.mxu2  ;;  %v3238_v28 = vpop.f32.mrf.mxu3 }
 0x351   :  { %v3239_v4 = vadd.f32 %v3238_v28, %v3220_v3  ;;  %v3187_v54 = vpop.f32.mrf.mxu0  ;;  %v3205_v44 = vpop.f32.mrf.mxu1 }
 0x352   :  { %v3206_v25 = vadd.f32 %v3205_v44, %v3187_v54 }
 0x353   :  { %v11005_v48 = vadd.f32 %v3239_v4, %v2806_v46 }
 0x354   :  { %v3287_v14 = vadd.f32 %v3206_v25, %v10947_v24  ;;  %4114 = vmatmul.bf16.gmra.mxu0 %v3740_v45  ;;  %6872 = vmatmul.msk.bf16.gmra.mxu1 %vm2395_vm8, %v3741_v15 }
 0x358   :  { %v3223_v13 = vpop.f32.mrf.mxu2  ;;  %v3241_v58 = vpop.f32.mrf.mxu3 }
 0x359   :  { %v3242_v11 = vadd.f32 %v3241_v58, %v3223_v13  ;;  %v3189_v60 = vpop.f32.mrf.mxu0  ;;  %v3207_v20 = vpop.f32.mrf.mxu1 }
 0x35b   :  { %v11009_v7 = vadd.f32 %v3242_v11, %v2809_v49 }
 0x360   :  { %v3225_v36 = vpop.f32.mrf.mxu2  ;;  %v3243_v43 = vpop.f32.mrf.mxu3 }
 0x361   :  { %v3254_v57 = vpop.f32.mrf.mxu0  ;;  %v3272_v62 = vpop.f32.mrf.mxu1 }
 0x362   :  { %v3273_v5 = vadd.f32 %v3272_v62, %v3254_v57 }
 0x364   :  { %v11011_v42 = vadd.f32 %v3273_v5, %v2840_v61 }
 0x368   :  { %v3612_v24 = vpop.f32.mrf.mxu2  ;;  %v3630_v0 = vpop.f32.mrf.mxu3 }
 0x369   :  { %v3631_v9 = vadd.f32 %v3630_v0, %v3612_v24  ;;  %v3256_v52 = vpop.f32.mrf.mxu0  ;;  %v3274_v38 = vpop.f32.mrf.mxu1 }
 0x36a   :  { %v3275_v10 = vadd.f32 %v3274_v38, %v3256_v52 }
 0x36b   :  { %v3711_v17 = vadd.f32 %v3631_v9, %v3281_v37 }
 0x36c   :  { %v11015_v34 = vadd.f32 %v3275_v10, %v2842_v39 }
 0x370   :  { %v3614_v30 = vpop.f32.mrf.mxu2  ;;  %v3632_v2 = vpop.f32.mrf.mxu3 }
 0x371   :  { %v3633_v47 = vadd.f32 %v3632_v2, %v3614_v30  ;;  %v3259_v45 = vpop.f32.mrf.mxu0  ;;  %v3277_v15 = vpop.f32.mrf.mxu1 }
 0x372   :  { %v3278_v61 = vadd.f32 %v3277_v15, %v3259_v45 }
 0x373   :  { %v3714_v49 = vadd.f32 %v3633_v47, %v3284_v1 }
 0x374   :  { %v11017_v8 = vadd.f32 %v3278_v61, %v2845_v27 }
 0x378   :  { %v3617_v63 = vpop.f32.mrf.mxu2  ;;  %v3635_v19 = vpop.f32.mrf.mxu3 }
 0x379   :  { %v3636_v56 = vadd.f32 %v3635_v19, %v3617_v63  ;;  %v3261_v50 = vpop.f32.mrf.mxu0  ;;  %v3279_v40 = vpop.f32.mrf.mxu1 }
 0x37b   :  { %v3717_v31 = vadd.f32 %v3636_v56, %v3287_v14 }
 0x380   :  { %v3619_v59 = vpop.f32.mrf.mxu2  ;;  %v3637_v16 = vpop.f32.mrf.mxu3 }
 0x381   :  { %v3648_v55 = vpop.f32.mrf.mxu0  ;;  %v3666_v26 = vpop.f32.mrf.mxu1 }
 0x382   :  { %v3667_v22 = vadd.f32 %v3666_v26, %v3648_v55 }
 0x384   :  { %v11019_v29 = vadd.f32 %v3667_v22, %v3282_v35 }
 0x388   :  { %v3684_v37 = vpop.f32.mrf.mxu2  ;;  %v3702_v18 = vpop.f32.mrf.mxu3 }
 0x389   :  { %v3650_v32 = vpop.f32.mrf.mxu0  ;;  %v3668_v23 = vpop.f32.mrf.mxu1  ;;  %v3703_v2 = vadd.f32 %v3702_v18, %v3684_v37 }
 0x38a   :  { %v3669_v60 = vadd.f32 %v3668_v23, %v3650_v32 }
 0x38c   :  { %v3715_v43 = vadd.f32 %v3669_v60, %v11005_v48  ;;  %v7604_v60 = vld [vmem:[%s11317_s5 + $0x60] sm:$0xff] }
 0x390   :  { %v3686_v12 = vpop.f32.mrf.mxu2  ;;  %v3704_v27 = vpop.f32.mrf.mxu3 }
 0x391   :  { %v3653_v41 = vpop.f32.mrf.mxu0  ;;  %v3671_v53 = vpop.f32.mrf.mxu1  ;;  %v3705_v56 = vadd.f32 %v3704_v27, %v3686_v12  ;;  %v7599_v12 = vld [vmem:[%s11317_s5 + $0x38] sm:$0xff]  ;;  %v7598_v27 = vld [vmem:[%s11317_s5 + $0x30] sm:$0xff] }
 0x392   :  { %v3672_v9 = vadd.f32 %v3671_v53, %v3653_v41  ;;  %4426 = vmatpush.bf16.msrb.mxu0 %v7599_v12  ;;  %v7608_v41 = vld [vmem:[%s11317_s5 + $0x80] sm:$0xff]  ;;  %v7618_v53 = vld [vmem:[%s11317_s5 + $0xd0] sm:$0xff]  ;;  %v7633_v12 = vld [vmem:[%s11317_s5 + $0x148] sm:$0xff] }
 0x393   :  { %v3716_v40 = vadd.f32 %v3705_v56, %v11015_v34 }
 0x394   :  { %v3718_v39 = vadd.f32 %v3672_v9, %v11009_v7 }
 0x396   :  { %4427 = vmatpush.bf16.msrb.mxu0 %v7598_v27 }
 0x398   :  { %v3689_v6 = vpop.f32.mrf.mxu2  ;;  %v3707_v51 = vpop.f32.mrf.mxu3 }
 0x399   :  { %v3655_v1 = vpop.f32.mrf.mxu0  ;;  %v3673_v21 = vpop.f32.mrf.mxu1  ;;  %v3708_v16 = vadd.f32 %v3707_v51, %v3689_v6  ;;  %v7597_v6 = vld [vmem:[%s11317_s5 + $0x28] sm:$0xff]  ;;  %v7596_v51 = vld [vmem:[%s11317_s5 + $0x20] sm:$0xff] }
 0x39a   :  { %4428 = vmatpush.bf16.msrb.mxu0 %v7597_v6  ;;  %v7595_v1 = vld [vmem:[%s11317_s5 + $0x18] sm:$0xff] }
 0x39b   :  { %v3719_v37 = vadd.f32 %v3708_v16, %v11017_v8  ;;  %v7609_v8 = vld [vmem:[%s11317_s5 + $0x88] sm:$0xff]  ;;  %v7607_v21 = vld [vmem:[%s11317_s5 + $0x78] sm:$0xff] }
 0x39c   :  { %4337 = vmatpush.bf16.msra.mxu2 %v7609_v8 }
 0x39e   :  { %4429 = vmatpush.bf16.msrb.mxu0 %v7596_v51 }
 0x3a0   :  { %v3691_v3 = vpop.f32.mrf.mxu2  ;;  %v3709_v28 = vpop.f32.mrf.mxu3  ;;  %4338 = vmatpush.bf16.msra.mxu2 %v7608_v41 }
 0x3a1   :  { %v4038_v46 = vpop.f32.mrf.mxu0  ;;  %v4056_v4 = vpop.f32.mrf.mxu1  ;;  %v7594_v3 = vld [vmem:[%s11317_s5 + $0x10] sm:$0xff]  ;;  %v7617_v28 = vld [vmem:[%s11317_s5 + $0xc8] sm:$0xff] }
 0x3a2   :  { %v4057_v54 = vadd.f32 %v4056_v4, %v4038_v46  ;;  %4430 = vmatpush.bf16.msrb.mxu0 %v7595_v1  ;;  %v7606_v46 = vld [vmem:[%s11317_s5 + $0x70] sm:$0xff]  ;;  %v7593_v4 = vld [vmem:[%s11317_s5 + $0x8] sm:$0xff] }
 0x3a4   :  { %v11021_v44 = vadd.f32 %v4057_v54, %v3711_v17  ;;  %4339 = vmatpush.bf16.msra.mxu2 %v7607_v21  ;;  %v7611_v54 = vld [vmem:[%s11317_s5 + $0x98] sm:$0xff] }
 0x3a5   :  { %4356 = vmatpush.bf16.msra.mxu3 %v7611_v54 }
 0x3a6   :  { %4431 = vmatpush.bf16.msrb.mxu0 %v7594_v3 }
 0x3a8   :  { %v4074_v35 = vpop.f32.mrf.mxu2  ;;  %v4092_v25 = vpop.f32.mrf.mxu3  ;;  %4340 = vmatpush.bf16.msra.mxu2 %v7606_v46 }
 0x3a9   :  { %v4040_v14 = vpop.f32.mrf.mxu0  ;;  %v4058_v13 = vpop.f32.mrf.mxu1  ;;  %v4093_v55 = vadd.f32 %v4092_v25, %v4074_v35  ;;  %v7616_v35 = vld [vmem:[%s11317_s5 + $0xc0] sm:$0xff]  ;;  %v7605_v25 = vld [vmem:[%s11317_s5 + $0x68] sm:$0xff] }
 0x3aa   :  { %v4059_v58 = vadd.f32 %v4058_v13, %v4040_v14  ;;  %4432 = vmatpush.bf16.msrb.mxu0 %v7593_v4  ;;  %v7592_v14 = vld [vmem:[%s11317_s5] sm:$0xff]  ;;  %v7615_v13 = vld [vmem:[%s11317_s5 + $0xb8] sm:$0xff] }
 0x3ab   :  { %v11043_v18 = vadd.f32 %v4093_v55, %v11019_v29  ;;  %v7619_v29 = vld [vmem:[%s11317_s5 + $0xd8] sm:$0xff]  ;;  %v7634_v55 = vld [vmem:[%s11317_s5 + $0x150] sm:$0xff] }
 0x3ac   :  { %v11023_v11 = vadd.f32 %v4059_v58, %v3714_v49  ;;  %v3713_v49 = vadd.f32 %v3703_v2, %v11011_v42  ;;  %4548 = vmatpush.bf16.msrb.mxu1 %v7619_v29  ;;  %v7639_v58 = vld [vmem:[%s11317_s5 + $0x178] sm:$0xff]  ;;  %4341 = vmatpush.bf16.msra.mxu2 %v7605_v25  ;;  %v7620_v2 = vld [vmem:[%s11317_s5 + $0xe0] sm:$0xff] }
 0x3ae   :  { %4433 = vmatpush.bf16.msrb.mxu0 %v7592_v14 }
 0x3b0   :  { %v4076_v20 = vpop.f32.mrf.mxu2  ;;  %v4094_v36 = vpop.f32.mrf.mxu3  ;;  %4549 = vmatpush.bf16.msrb.mxu1 %v7618_v53  ;;  %4342 = vmatpush.bf16.msra.mxu2 %v7604_v60 }
 0x3b1   :  { %v4095_v57 = vadd.f32 %v4094_v36, %v4076_v20  ;;  %v4043_v62 = vpop.f32.mrf.mxu0  ;;  %v4061_v5 = vpop.f32.mrf.mxu1  ;;  %v7614_v20 = vld [vmem:[%s11317_s5 + $0xb0] sm:$0xff] }
 0x3b2   :  { %v4062_v33 = vadd.f32 %v4061_v5, %v4043_v62  ;;  %4788 = vmatpush.bf16.msra.mxu0 %v7639_v58  ;;  %v7638_v36 = vld [vmem:[%s11317_s5 + $0x170] sm:$0xff]  ;;  %v7613_v62 = vld [vmem:[%s11317_s5 + $0xa8] sm:$0xff] }
 0x3b3   :  { %v11026_v24 = vadd.f32 %v4095_v57, %v3715_v43  ;;  %v7610_v43 = vld [vmem:[%s11317_s5 + $0x90] sm:$0xff]  ;;  %v7603_v57 = vld [vmem:[%s11317_s5 + $0x58] sm:$0xff]  ;;  %v7637_v5 = vld [vmem:[%s11317_s5 + $0x168] sm:$0xff] }
 0x3b4   :  { %v11028_v0 = vadd.f32 %v4062_v33, %v3717_v31  ;;  %4550 = vmatpush.bf16.msrb.mxu1 %v7617_v28  ;;  %4357 = vmatpush.bf16.msra.mxu3 %v7610_v43 }
 0x3b5   :  { %4155 = vrot.lane.b32.xlu0 %v11026_v24, %s7694_s3  ;;  %4343 = vmatpush.bf16.msra.mxu2 %v7603_v57 }
 0x3b6   :  { %4789 = vmatpush.bf16.msra.mxu0 %v7638_v36  ;;  %v7631_v36 = vld [vmem:[%s11317_s5 + $0x138] sm:$0xff] }
 0x3b8   :  { %v4079_v52 = vpop.f32.mrf.mxu2  ;;  %v4097_v38 = vpop.f32.mrf.mxu3  ;;  %4551 = vmatpush.bf16.msrb.mxu1 %v7616_v35 }
 0x3b9   :  { %v4098_v10 = vadd.f32 %v4097_v38, %v4079_v52  ;;  %v4045_v17 = vpop.f32.mrf.mxu0  ;;  %v4063_v48 = vpop.f32.mrf.mxu1  ;;  %v7621_v38 = vld [vmem:[%s11317_s5 + $0xe8] sm:$0xff] }
 0x3ba   :  { %4790 = vmatpush.bf16.msra.mxu0 %v7637_v5  ;;  %v7612_v17 = vld [vmem:[%s11317_s5 + $0xa0] sm:$0xff]  ;;  %4567 = vmatpush.bf16.msrb.mxu3 %v7621_v38  ;;  %v7627_v38 = vld [vmem:[%s11317_s5 + $0x118] sm:$0xff] }
 0x3bb   :  { %v11033_v30 = vadd.f32 %v4098_v10, %v3718_v39  ;;  %v7602_v39 = vld [vmem:[%s11317_s5 + $0x50] sm:$0xff]  ;;  %v7601_v10 = vld [vmem:[%s11317_s5 + $0x48] sm:$0xff]  ;;  %v7636_v48 = vld [vmem:[%s11317_s5 + $0x160] sm:$0xff] }
 0x3bc   :  { %4552 = vmatpush.bf16.msrb.mxu1 %v7615_v13  ;;  %4344 = vmatpush.bf16.msra.mxu2 %v7602_v39 }
 0x3bd   :  { %4171 = vrot.lane.b32.xlu2 %v11033_v30, %s7694_s3 }
 0x3be   :  { %4791 = vmatpush.bf16.msra.mxu0 %v7636_v48  ;;  %4568 = vmatpush.bf16.msrb.mxu3 %v7620_v2  ;;  %v7626_v48 = vld [vmem:[%s11317_s5 + $0x110] sm:$0xff] }
 0x3c0   :  { %v4081_v47 = vpop.f32.mrf.mxu2  ;;  %v4099_v45 = vpop.f32.mrf.mxu3  ;;  %4553 = vmatpush.bf16.msrb.mxu1 %v7614_v20  ;;  %4445 = vmatpush.bf16.msrb.mxu2 %v7601_v10  ;;  %v7629_v20 = vld [vmem:[%s11317_s5 + $0x128] sm:$0xff] }
 0x3c1   :  { %v4110_v15 = vpop.f32.mrf.mxu0  ;;  %v4128_v61 = vpop.f32.mrf.mxu1  ;;  %v7600_v45 = vld [vmem:[%s11317_s5 + $0x40] sm:$0xff] }
 0x3c2   :  { %v4129_v63 = vadd.f32 %v4128_v61, %v4110_v15 }
 0x3c4   :  { %v4139_v19 = vadd.f32 %v4129_v63, %v3713_v49  ;;  %4554 = vmatpush.bf16.msrb.mxu1 %v7613_v62  ;;  %v7635_v49 = vld [vmem:[%s11317_s5 + $0x158] sm:$0xff]  ;;  %4446 = vmatpush.bf16.msrb.mxu2 %v7600_v45 }
 0x3c5   :  { %4792 = vmatpush.bf16.msra.mxu0 %v7635_v49 }
 0x3c6   :  { %4153 = vrot.lane.b32.xlu2 %v4139_v19, %s7694_s3 }
 0x3c8   :  { %4555 = vmatpush.bf16.msrb.mxu1 %v7612_v17 }
 0x3c9   :  { %v4112_v7 = vpop.f32.mrf.mxu0  ;;  %v4130_v50 = vpop.f32.mrf.mxu1  ;;  %4793 = vmatpush.bf16.msra.mxu0 %v7634_v55 }
 0x3ca   :  { %v4131_v31 = vadd.f32 %v4130_v50, %v4112_v7  ;;  %v11161_v7 = vld [vmem:[%s11316_s4] sm:$0x3] }
 0x3cc   :  { %v4142_v59 = vadd.f32 %v4131_v31, %v3716_v40 }
 0x3cd   :  { %4794 = vmatpush.bf16.msra.mxu0 %v7633_v12  ;;  %v7648_v12 = vld [vmem:[%s11319_s7 + $0x30] sm:$0xff] }
 0x3ce   :  { %4157 = vrot.lane.b32.xlu1 %v4142_v59, %s7694_s3 }
 0x3d1   :  { %v4115_v26 = vpop.f32.mrf.mxu0  ;;  %v4133_v22 = vpop.f32.mrf.mxu1 }
 0x3d2   :  { %v4134_v42 = vadd.f32 %v4133_v22, %v4115_v26  ;;  %v4199_v22 = vperm.slane %v11161_v7, 0 }
 0x3d4   :  { %v4145_v32 = vadd.f32 %v4134_v42, %v3719_v37 }
 0x3d6   :  { %4173 = vrot.lane.b32.xlu0 %v4145_v32, %s7694_s3  ;;  %4151 = vrot.lane.b32.xlu1 %v11043_v18, %s7694_s3 }
 0x3d9   :  { %v4117_v34 = vpop.f32.mrf.mxu0  ;;  %v4135_v23 = vpop.f32.mrf.mxu1 }
 0x417   :  { %v4172_v33 = vpop.permute.xlu2 %4171 }
 0x420   :  { %v4154_v15 = vpop.permute.xlu2 %4153 }
 0x421   :  { %v4166_v59 = vmax.f32 %v11043_v18, %v4154_v15 }
 0x427   :  { %v4156_v9 = vpop.permute.xlu0 %4155 }
 0x440   :  { %v4158_v52 = vpop.permute.xlu1 %4157 }
 0x441   :  { %v4160_v47 = vsel %vm2395_vm8, %v4156_v9, %v4158_v52  ;;  %v11152_v61 = vmax.f32 %v11026_v24, %v4158_v52  ;;  %v7630_v9 = vld [vmem:[%s11317_s5 + $0x130] sm:$0xff] }
 0x442   :  { %v4167_v63 = vmax.f32 %v11023_v11, %v4160_v47 }
 0x443   :  { %v4187_v11 = vrot.slane %v11152_v61, 2 }
 0x444   :  { %v4184_v26 = vrot.slane %v4167_v63, 2 }
 0x448   :  { %v4174_v19 = vpop.permute.xlu0 %4173  ;;  %v4152_v56 = vpop.permute.xlu1 %4151 }
 0x449   :  { %v4175_v50 = vsel %vm2395_vm8, %v4172_v33, %v4174_v19  ;;  %v4179_v24 = vmax.f32 %v11033_v30, %v4174_v19  ;;  %v4159_v31 = vsel %vm2395_vm8, %v4152_v56, %v4154_v15  ;;  %v4200_v30 = vperm.slane %v11161_v7, 1  ;;  %v7628_v33 = vld [vmem:[%s11317_s5 + $0x120] sm:$0xff] }
 0x44a   :  { %v4178_v40 = vmax.f32 %v11028_v0, %v4175_v50  ;;  %v4165_v42 = vmax.f32 %v11021_v44, %v4159_v31  ;;  %v7632_v44 = vld [vmem:[%s11317_s5 + $0x140] sm:$0xff]  ;;  %v7622_v31 = vld [vmem:[%s11317_s5 + $0xf0] sm:$0xff] }
 0x44b   :  { %v11169_v16 = vrot.slane %v4179_v24, 2  ;;  %4795 = vmatpush.bf16.msra.mxu0 %v7632_v44  ;;  %v7623_v24 = vld [vmem:[%s11317_s5 + $0xf8] sm:$0xff] }
 0x44c   :  { %v4185_v0 = vrot.slane %v4178_v40, 2 }
 0x44d   :  { %v4189_v37 = vsel %vm72_vm1, %v4187_v11, %v11169_v16  ;;  %v4197_v2 = vmax.f32 %v11152_v61, %v11169_v16  ;;  %v7624_v61 = vld [vmem:[%s11317_s5 + $0x100] sm:$0xff]  ;;  %v7641_v11 = vld [vmem:[%s11317_s5 + $0x188] sm:$0xff] }
 0x44e   :  { %v4195_v18 = vmax.f32 %v4166_v59, %v4189_v37  ;;  %v4196_v32 = vmax.f32 %v4167_v63, %v4185_v0  ;;  %v4186_v34 = vsel %vm72_vm1, %v4184_v26, %v4185_v0  ;;  %v7625_v63 = vld [vmem:[%s11317_s5 + $0x108] sm:$0xff]  ;;  %v7640_v26 = vld [vmem:[%s11317_s5 + $0x180] sm:$0xff]  ;;  %v7649_v0 = vld [vmem:[%s11319_s7 + $0x38] sm:$0xff] }
 0x44f   :  { %v4194_v23 = vmax.f32 %v4165_v42, %v4186_v34  ;;  %v4206_v19 = vadd.f32 %v4200_v30, %v4197_v2 }
 0x450   :  { %v4204_v8 = vadd.f32 %v4200_v30, %v4195_v18  ;;  %v4205_v29 = vadd.f32 %v4199_v22, %v4196_v32 }
 0x451   :  { %v4203_v27 = vadd.f32 %v4199_v22, %v4194_v23  ;;  %v4210_v50 = vmax.f32 %v4206_v19, 0.0  ;;  %v7662_v19 = vld [vmem:[%s11320_s8] ss:$0 sm:$0xff] }
 0x452   :  { %v11185_v41 = vmax.f32 %v4204_v8, 0.0  ;;  %v4209_v53 = vmax.f32 %v4205_v29, 0.0  ;;  %v7647_v8 = vld [vmem:[%s11319_s7 + $0x28] sm:$0xff] }
 0x453   :  { %v4207_v6 = vmax.f32 %v4203_v27, 0.0  ;;  %v4582_v40 = vrot.slane %v4210_v50, 7 }
 0x454   :  { %v4242_v51 = vrot.slane %v11185_v41, 1  ;;  %v4246_v1 = vrot.slane %v11185_v41, 5  ;;  %v4581_v54 = vrot.slane %v4209_v53, 7  ;;  %v4214_v39 = vrot.slane %v11185_v41, 4 }
 0x455   :  { %v4241_v21 = vrot.slane %v4207_v6, 1  ;;  %v4245_v3 = vrot.slane %v4207_v6, 5  ;;  %v4213_v28 = vrot.slane %v4207_v6, 4  ;;  %v4452_v46 = vrot.slane %v4207_v6, 2 }
 0x456   :  { %v4456_v4 = vrot.slane %v4207_v6, 6  ;;  %v4250_v35 = vsel %vm82_vm6, %v4242_v51, %v4246_v1  ;;  %v4575_v5 = vrot.slane %v4207_v6, 3  ;;  %v4453_v10 = vrot.slane %v11185_v41, 2 }
 0x457   :  { %v4249_v25 = vsel %vm82_vm6, %v4241_v21, %v4245_v3  ;;  %v4252_v14 = vpack.c.bf16 %v4250_v35, %v4250_v35  ;;  %v4217_v58 = vsel %vm82_vm6, %v4207_v6, %v4213_v28  ;;  %v4700_v62 = vsel %vm82_vm6, %v4213_v28, %v4209_v53  ;;  %v7645_v6 = vld [vmem:[%s11319_s7 + $0x18] sm:$0xff]  ;;  %v7644_v28 = vld [vmem:[%s11319_s7 + $0x10] sm:$0xff] }
 0x458   :  { %v4251_v13 = vpack.c.bf16 %v4249_v25, %v4249_v25  ;;  %v4460_v60 = vsel %vm82_vm6, %v4452_v46, %v4456_v4  ;;  %v4219_v43 = vpack.c.bf16 %v4217_v58, %v4217_v58  ;;  %v4585_v52 = vsel %vm82_vm6, %v4575_v5, %v4581_v54  ;;  %v7643_v46 = vld [vmem:[%s11319_s7 + $0x8] sm:$0xff]  ;;  %v7657_v4 = vld [vmem:[%s11321_s9 + $0x38] sm:$0xff]  ;;  %v7656_v54 = vld [vmem:[%s11321_s9 + $0x30] sm:$0xff] }
 0x459   :  { %v4462_v57 = vpack.c.bf16 %v4460_v60, %v4460_v60  ;;  %6933 = vmatmul.msk.bf16.vlgmr.msra.gmra.mxu3 %vm1831_vm7, %v4252_v14  ;;  %v4457_v17 = vrot.slane %v11185_v41, 6  ;;  %v4218_v45 = vsel %vm82_vm6, %v11185_v41, %v4214_v39  ;;  %v4702_v56 = vpack.c.bf16 %v4700_v62, %v4700_v62  ;;  %4973 = vmatpush.bf16.msra.mxu1 %v7657_v4  ;;  %v7642_v25 = vld [vmem:[%s11319_s7] sm:$0xff] }
 0x45a   :  { %4345 = vmatmul.bf16.vlgmr.msra.gmra.mxu2 %v4251_v13  ;;  %4434 = vmatmul.bf16.vlgmr.msrb.gmra.mxu0 %v4219_v43  ;;  %v4220_v49 = vpack.c.bf16 %v4218_v45, %v4218_v45  ;;  %v4576_v7 = vrot.slane %v11185_v41, 3  ;;  %v4587_v55 = vpack.c.bf16 %v4585_v52, %v4585_v52  ;;  %v4701_v22 = vsel %vm82_vm6, %v4214_v39, %v4210_v50  ;;  %v7646_v41 = vld [vmem:[%s11319_s7 + $0x20] sm:$0xff]  ;;  %v7655_v13 = vld [vmem:[%s11321_s9 + $0x28] sm:$0xff] }
 0x45b   :  { %4556 = vmatmul.bf16.vlgmr.msrb.gmra.mxu1 %v4462_v57  ;;  %4673 = vmatpush.bf16.msra.mxu2 %v7629_v20  ;;  %v4461_v47 = vsel %vm82_vm6, %v4453_v10, %v4457_v17  ;;  %v4703_v30 = vpack.c.bf16 %v4701_v22, %v4701_v22  ;;  %v7654_v60 = vld [vmem:[%s11321_s9 + $0x20] sm:$0xff]  ;;  %v7653_v57 = vld [vmem:[%s11321_s9 + $0x18] sm:$0xff] }
 0x45c   :  { %4692 = vmatpush.bf16.msra.mxu3 %v7631_v36  ;;  %v4463_v15 = vpack.c.bf16 %v4461_v47, %v4461_v47  ;;  %v4586_v59 = vsel %vm82_vm6, %v4576_v7, %v4582_v40  ;;  %v7661_v17 = vld [vmem:[%s11318_s6] ss:$0 sm:$0xff] }
 0x45d   :  { %v4588_v16 = vpack.c.bf16 %v4586_v59, %v4586_v59  ;;  %4974 = vmatpush.bf16.msra.mxu1 %v7656_v54  ;;  %v7663_v40 = vld [vmem:[%s11322_s10] ss:$0 sm:$0xff] }
 0x45f   :  { %4674 = vmatpush.bf16.msra.mxu2 %v7628_v33 }
 0x460   :  { %4693 = vmatpush.bf16.msra.mxu3 %v7630_v9  ;;  %v7652_v9 = vld [vmem:[%s11321_s9 + $0x10] sm:$0xff] }
 0x461   :  { %4975 = vmatpush.bf16.msra.mxu1 %v7655_v13 }
 0x463   :  { %4675 = vmatpush.bf16.msra.mxu2 %v7627_v38 }
 0x465   :  { %4976 = vmatpush.bf16.msra.mxu1 %v7654_v60 }
 0x467   :  { %4676 = vmatpush.bf16.msra.mxu2 %v7626_v48 }
 0x469   :  { %7035 = vmatmul.msk.bf16.vlgmr.msrb.gmra.mxu3 %vm1831_vm7, %v4463_v15  ;;  %4977 = vmatpush.bf16.msra.mxu1 %v7653_v57 }
 0x46a   :  { %6974 = vmatmul.msk.bf16.vlgmr.msrb.gmra.mxu2 %vm1831_vm7, %v4220_v49  ;;  %4796 = vmatmul.bf16.vlgmr.msra.gmra.mxu0 %v4702_v56  ;;  %v7651_v49 = vld [vmem:[%s11321_s9 + $0x8] sm:$0xff] }
 0x46b   :  { %4677 = vmatpush.bf16.msra.mxu2 %v7625_v63  ;;  %4890 = vmatpush.bf16.msrb.mxu3 %v7649_v0  ;;  %v7650_v63 = vld [vmem:[%s11321_s9] sm:$0xff]  ;;  %s4994_s9 = sshll.u32 %s11323_s11, 4  ;;  %s4995_s9 = int_to_ptr.hbm [resolvable:$true] %s4994_s9 }
 0x46d   :  { %4978 = vmatpush.bf16.msra.mxu1 %v7652_v9 }
 0x46f   :  { %4678 = vmatpush.bf16.msra.mxu2 %v7624_v61  ;;  %4891 = vmatpush.bf16.msrb.mxu3 %v7648_v12 }
 0x471   :  { %4979 = vmatpush.bf16.msra.mxu1 %v7651_v49 }
 0x473   :  { %4679 = vmatpush.bf16.msra.mxu2 %v7623_v24  ;;  %4892 = vmatpush.bf16.msrb.mxu3 %v7647_v8 }
 0x475   :  { %4980 = vmatpush.bf16.msra.mxu1 %v7650_v63 }
 0x477   :  { %4680 = vmatpush.bf16.msra.mxu2 %v7622_v31  ;;  %4893 = vmatpush.bf16.msrb.mxu3 %v7646_v41 }
 0x479   :  { %7096 = vmatmul.msk.bf16.vlgmr.msra.gmra.mxu3 %vm1831_vm7, %v4588_v16 }
 0x47a   :  { %4681 = vmatmul.bf16.vlgmr.msra.gmra.mxu2 %v4587_v55 }
 0x47b   :  { %4807 = vmatpush.bf16.msrb.mxu2 %v7641_v11  ;;  %4894 = vmatpush.bf16.msrb.mxu3 %v7645_v6 }
 0x47f   :  { %4808 = vmatpush.bf16.msrb.mxu2 %v7640_v26  ;;  %4895 = vmatpush.bf16.msrb.mxu3 %v7644_v28 }
 0x483   :  { %4896 = vmatpush.bf16.msrb.mxu3 %v7643_v46 }
 0x487   :  { %4897 = vmatpush.bf16.msrb.mxu3 %v7642_v25 }
 0x48a   :  { %7157 = vmatmul.msk.bf16.vlgmr.msrb.gmra.mxu2 %vm1831_vm7, %v4703_v30 }
 0x4d7   :  { %v4435_v37 = vpop.f32.mrf.mxu0 }
 0x4d8   :  { %v4557_v42 = vpop.f32.mrf.mxu1 }
 0x4dc   :  { %v4359_v18 = vpop.f32.mrf.mxu3 }
 0x4dd   :  { %v4346_v32 = vpop.f32.mrf.mxu2 }
 0x4de   :  { %v4360_v58 = vadd.f32 %v4359_v18, %v4346_v32 }
 0x4df   :  { %v4437_v34 = vpop.f32.mrf.mxu0 }
 0x4e0   :  { %v4559_v23 = vpop.f32.mrf.mxu1  ;;  %v4436_v43 = vadd.f32 %v4435_v37, %v4360_v58 }
 0x4e4   :  { %v4361_v29 = vpop.f32.mrf.mxu3 }
 0x4e5   :  { %v4348_v27 = vpop.f32.mrf.mxu2 }
 0x4e7   :  { %v4797_v53 = vpop.f32.mrf.mxu0 }
 0x4ec   :  { %v4570_v44 = vpop.f32.mrf.mxu3 }
 0x4ed   :  { %v4448_v51 = vpop.f32.mrf.mxu2  ;;  %v4571_v62 = vadd.f32 %v4570_v44, %v4557_v42 }
 0x4ee   :  { %v4449_v5 = vadd.f32 %v4448_v51, %v4436_v43 }
 0x4ef   :  { %v4799_v1 = vpop.f32.mrf.mxu0 }
 0x4f0   :  { %v4574_v52 = vadd.f32 %v4571_v62, %v4449_v5 }
 0x4f4   :  { %v4572_v21 = vpop.f32.mrf.mxu3 }
 0x4f5   :  { %v4450_v3 = vpop.f32.mrf.mxu2 }
 0x4fc   :  { %v4695_v35 = vpop.f32.mrf.mxu3 }
 0x4fd   :  { %v4682_v14 = vpop.f32.mrf.mxu2 }
 0x4fe   :  { %v4696_v33 = vadd.f32 %v4695_v35, %v4682_v14 }
 0x500   :  { %v4699_v39 = vadd.f32 %v4696_v33, %v4574_v52 }
 0x504   :  { %v4697_v20 = vpop.f32.mrf.mxu3 }
 0x505   :  { %v4684_v36 = vpop.f32.mrf.mxu2 }
 0x50d   :  { %v4810_v38 = vpop.f32.mrf.mxu2 }
 0x50e   :  { %v4811_v10 = vadd.f32 %v4810_v38, %v4797_v53 }
 0x510   :  { %v4814_v48 = vadd.f32 %v4811_v10, %v4699_v39 }
 0x512   :  { %v4819_v2 = vadd.f32 %v7661_v17, %v4814_v48 }
 0x514   :  { %v4820_v47 = vmax.f32 %v4819_v2, 0.0 }
 0x515   :  { %v4812_v45 = vpop.f32.mrf.mxu2 }
 0x516   :  { %v4821_v15 = vpack.c.bf16 %v4820_v47, %v4820_v47 }
 0x518   :  { %4898 = vmatmul.bf16.vlgmr.msrb.gmra.mxu3 %v4821_v15 }
 0x59b   :  { %v4899_v56 = vpop.f32.mrf.mxu3 }
 0x59c   :  { %v4900_v61 = vadd.f32 %v7662_v19, %v4899_v56 }
 0x59e   :  { %v4903_v50 = vmax.f32 %v4900_v61, 0.0 }
 0x5a0   :  { %v4904_v24 = vpack.c.bf16 %v4903_v50, %v4903_v50 }
 0x5a2   :  { %4981 = vmatmul.bf16.vlgmr.msra.gmra.mxu1 %v4904_v24 }
 0x5a3   :  { %v4901_v7 = vpop.f32.mrf.mxu3 }
 0x61f   :  { %v4982_v31 = vpop.f32.mrf.mxu1 }
 0x620   :  { %v4983_v59 = vadd.f32 %v7663_v40, %v4982_v31 }
 0x622   :  { %4986 = vst [vmem:[#allocation2] sm:$0x3] %v4983_v59 }
 0x623   :  { %4997 = dma.vmem_to_hbm [thread:$0]  %s4993_s15, 32, %s4995_s9, [#allocation3]  }
 0x627   :  { %v4984_v11 = vpop.f32.mrf.mxu1 }
 0x628   :  { %7691 = dma.done.wait [#allocation3], 32  }
 0x629   :  { %7692 = vsyncadd [#allocation3], 4294967264 }
 0x62a   :  { %5002 = vsyncpa [#allocation3], 1 }

</bundles_post_ra>
